<compile_context>
chip_gen: v7x
topology: tpu7x:2x2x1
jax: 0.10.0
libtpu: 0.0.40
codegen_flags: <defaults>
</compile_context>

<pallas_src>
import math

import jax
import jax.numpy as jnp
from jax.experimental import pallas as pl
from jax.experimental.pallas import tpu as pltpu


def joint_mixture_rnn_kernel(z0_ref, x_ref, kmt_ref, vm_ref,
                             wq_ref, bq_ref, wk_ref, bk_ref, wv_ref, bv_ref,
                             gamma_ref, beta_ref,
                             wvoc_ref, bvoc_ref,
                             z_out_ref, y_ref, lse_ref,
                             m_scr, s_scr):
    """Grid = (batch blocks, vocab tiles).

    Per-grid-step shapes:
      z0    : (Bblk, E)        hidden_state block (size-1 dim squeezed in the wrapper)
      x     : (T, Bblk, E)     embedded output_sequence block (time-major)
      kmt   : (E, M)           decoder_mover keys, pre-projected + pre-transposed
      vm    : (M, E)           decoder_mover values, pre-projected
      wq/wk/wv : (E, E)        attention Linear weights (pre-transposed; 1/sqrt(E) in wq/bq)
      wvoc  : (E, block_v)     current vocab weight tile
      biases / gamma / beta : (1, E) or (1, block_v), f32
    Outputs:
      z_out : (Bblk, E)        final hidden state      (written at v == 0, resident across v)
      y     : (Bblk, block_v)  raw vocab logits tile   (written every v)
      lse   : (Bblk, 1)        log-sum-exp over V      (written at the last v)
    """
    v_idx = pl.program_id(1)
    n_v = pl.num_programs(1)
    cdt = wq_ref.dtype                            # matmul compute dtype (bf16 or f32)

    # ---- the T-step recurrence: once per batch block (first vocab tile only) ----------
    @pl.when(v_idx == 0)
    def _recurrence():
        Bblk, E = z0_ref.shape
        T = x_ref.shape[0]

        wq = wq_ref[...]
        wk = wk_ref[...]
        wv = wv_ref[...]
        k_m_t = kmt_ref[...]                      # (E, M) grid-invariant, precomputed
        v_m = vm_ref[...]                         # (M, E) grid-invariant, precomputed
        # hoisted bias / LayerNorm-parameter broadcasts (JAX does not CSE broadcast_in_dim)
        bq = jnp.broadcast_to(bq_ref[...], (Bblk, E))
        bk = jnp.broadcast_to(bk_ref[...], (Bblk, E))
        bv = jnp.broadcast_to(bv_ref[...], (Bblk, E))
        gamma = jnp.broadcast_to(gamma_ref[...], (Bblk, E))
        beta = jnp.broadcast_to(beta_ref[...], (Bblk, E))

        def step(i, z):
            zi = z + x_ref[i]                                      # z = z + x[:, i:i+1, :]
            zi_c = zi.astype(cdt)
            # SelfAttention(g, g, g) with g = [zi ; mover]; only row 0 of dg is consumed,
            # so only zi's query is computed.  Score scale is folded into wq/bq.
            q = jnp.dot(zi_c, wq, preferred_element_type=jnp.float32) + bq    # (Bblk, E)
            kz = jnp.dot(zi_c, wk, preferred_element_type=jnp.float32) + bk   # (Bblk, E)
            vz = jnp.dot(zi_c, wv, preferred_element_type=jnp.float32) + bv   # (Bblk, E)

            s_self = jnp.sum(q * kz, axis=-1, keepdims=True)                  # (Bblk, 1)
            s_mov = jnp.dot(q.astype(cdt), k_m_t,
                            preferred_element_type=jnp.float32)               # (Bblk, M)

            # softmax over the (1 + M) keys without materializing the concat
            m = jnp.maximum(s_self, jnp.max(s_mov, axis=-1, keepdims=True))
            e_self = jnp.exp(s_self - m)
            e_mov = jnp.exp(s_mov - m)
            denom = e_self + jnp.sum(e_mov, axis=-1, keepdims=True)
            # TODO(synk): for very small M a 4-term VPU broadcast-multiply-add may beat this
            # K=M MXU contraction; keep the MXU form unless the vext slot is the binder.
            num = e_self * vz + jnp.dot(e_mov.astype(cdt), v_m,
                                        preferred_element_type=jnp.float32)
            dg0 = num * pl.reciprocal(denom, approx=True)                     # dg[:, 0:1]

            # z = LayerNorm(zi + dg0)
            zn = zi + dg0
            mu = jnp.mean(zn, axis=-1, keepdims=True)
            var = jnp.mean(jnp.square(zn - mu), axis=-1, keepdims=True)
            return (zn - mu) * jax.lax.rsqrt(var + 1e-5) * gamma + beta

        z = jax.lax.fori_loop(0, T, step, z0_ref[...], unroll=True)
        z_out_ref[...] = z                        # output block stays resident across v

        # init online-logsumexp state for the vocab tiles
        m_scr[...] = jnp.full(m_scr.shape, -jnp.inf, m_scr.dtype)
        s_scr[...] = jnp.zeros(s_scr.shape, s_scr.dtype)

    # ---- vocab logits for this V tile + online logsumexp (every grid step) ------------
    z = z_out_ref[...]                            # resident from the v == 0 write
    logits = jnp.dot(z.astype(cdt), wvoc_ref[...],
                     preferred_element_type=jnp.float32) + bvoc_ref[...]      # (Bblk, block_v)
    y_ref[...] = logits

    t_max = jnp.max(logits, axis=-1, keepdims=True)
    m_prev = m_scr[...]
    m_new = jnp.maximum(m_prev, t_max)
    s_scr[...] = (s_scr[...] * jnp.exp(m_prev - m_new)
                  + jnp.sum(jnp.exp(logits - m_new), axis=-1, keepdims=True))
    m_scr[...] = m_new

    @pl.when(v_idx == n_v - 1)
    def _finalize():
        lse_ref[...] = m_scr[...] + jnp.log(s_scr[...])


def joint_mixture_rnn_forward(hidden_state, output_sequence, params, *,
                              block_b=None, block_v=None):
    """hidden_state: (B, 1, E) f32; output_sequence: (B, T) int token ids."""
    B, _, E = hidden_state.shape
    # Embedding lookup (data-dependent gather) is left to XLA; time-major (T, B, E) layout
    # so the kernel reads one dense (block_b, E) tile per recurrence step.
    x = jnp.take(params["embed_out"], output_sequence.T, axis=0)       # (T, B, E)
    T = x.shape[0]
    M = params["v_m"].shape[0]
    V = params["wvoc_t"].shape[1]

    if block_b is None:
        # multiple of 8 (dense sublanes); batch grid >= 2 so both v7x TensorCores get work
        block_b = B // 2 if (B % 16 == 0) else B
    assert B % block_b == 0, (B, block_b)
    if block_v is None:
        block_v = V if V <= 512 else 512
    assert V % block_v == 0, (V, block_v)

    z0 = hidden_state[:, 0, :]                                          # (B, E), squeezed

    const = lambda shape: pl.BlockSpec(shape, lambda b, v: (0, 0))

    grid_spec = pltpu.PrefetchScalarGridSpec(
        num_scalar_prefetch=0,
        grid=(B // block_b, V // block_v),
        in_specs=[
            pl.BlockSpec((block_b, E), lambda b, v: (b, 0)),            # z0
            pl.BlockSpec((T, block_b, E), lambda b, v: (0, b, 0)),      # x (time-major)
            const((E, M)),                                              # mover keys^T
            const((M, E)),                                              # mover values
            const((E, E)), const((1, E)),                               # Wq^T (scaled), bq (scaled)
            const((E, E)), const((1, E)),                               # Wk^T, bk
            const((E, E)), const((1, E)),                               # Wv^T, bv
            const((1, E)), const((1, E)),                               # norm2 gamma, beta
            pl.BlockSpec((E, block_v), lambda b, v: (0, v)),            # vocab W^T tile
            pl.BlockSpec((1, block_v), lambda b, v: (0, v)),            # vocab bias tile
        ],
        out_specs=[
            pl.BlockSpec((block_b, E), lambda b, v: (b, 0)),            # z
            pl.BlockSpec((block_b, block_v), lambda b, v: (b, v)),      # raw logits
            pl.BlockSpec((block_b, 1), lambda b, v: (b, 0)),            # logsumexp
        ],
        scratch_shapes=[pltpu.VMEM((block_b, 1), jnp.float32),          # running max
                        pltpu.VMEM((block_b, 1), jnp.float32)],         # running sum
    )

    z2d, logits, lse = pl.pallas_call(
        joint_mixture_rnn_kernel,
        out_shape=(jax.ShapeDtypeStruct((B, E), jnp.float32),
                   jax.ShapeDtypeStruct((B, V), jnp.float32),
                   jax.ShapeDtypeStruct((B, 1), jnp.float32)),
        grid_spec=grid_spec,
        compiler_params=pltpu.CompilerParams(
            dimension_semantics=("parallel", "arbitrary"),
            vmem_limit_bytes=32 * 1024 * 1024),
    )(z0, x,
      params["k_m_t"], params["v_m"],
      params["wq_t"], params["bq"],
      params["wk_t"], params["bk"],
      params["wv_t"], params["bv"],
      params["gamma"], params["beta"],
      params["wvoc_t"], params["bvoc"])

    # log-softmax finalize: earlier vocab tiles are already flushed to HBM, so the online
    # lse is applied here (one cheap memory-bound elementwise pass that XLA can fuse).
    y = (logits - lse)[:, None, :]                                      # (B, 1, V)
    z = z2d[:, None, :]                                                 # (B, 1, E)
    return z, y


def make_params(embed_dim, mixture_count, output_vocab_size, key,
                matmul_dtype=jnp.bfloat16):
    """Deterministic synthetic parameters matching the PyTorch module shapes, plus the
    parameter-prep glue:
      * nn.Linear weights pre-transposed (y = x @ W^T + b),
      * 1/sqrt(E) attention-score scale folded into the query weight AND bias,
      * grid-invariant mover key/value projections (k_m^T, v_m) precomputed in f32,
      * matmul operands cast to `matmul_dtype` (bf16 for the v6e/v7x MXU); biases and
        LayerNorm params stay f32 (softmax / LayerNorm math stays f32 in-kernel).
    """
    E, M, V = embed_dim, mixture_count, output_vocab_size
    ks = jax.random.split(key, 12)
    s = 0.1
    inv_sqrt_e = 1.0 / math.sqrt(E)

    embed_out = jax.random.normal(ks[0], (V, E), jnp.float32) * s   # embedding_out table
    mover = jax.random.normal(ks[1], (M, E), jnp.float32) * s       # decoder_mover.weight
    wq = jax.random.normal(ks[2], (E, E), jnp.float32) * s
    bq = jax.random.normal(ks[3], (E,), jnp.float32) * s
    wk = jax.random.normal(ks[4], (E, E), jnp.float32) * s
    bk = jax.random.normal(ks[5], (E,), jnp.float32) * s
    wv = jax.random.normal(ks[6], (E, E), jnp.float32) * s
    bv = jax.random.normal(ks[7], (E,), jnp.float32) * s
    gamma = jnp.ones((E,), jnp.float32)                             # norm2
    beta = jnp.zeros((E,), jnp.float32)
    wvoc = jax.random.normal(ks[8], (V, E), jnp.float32) * s        # VocabLogits linear
    bvoc = jax.random.normal(ks[9], (V,), jnp.float32) * s

    # grid-invariant mover projections: keys/values of the mover rows of g = [z ; mover]
    k_m = mover @ wk.T + bk[None, :]                                # (M, E), f32
    v_m = mover @ wv.T + bv[None, :]                                # (M, E), f32

    cdt = matmul_dtype
    return dict(
        embed_out=embed_out,
        k_m_t=k_m.T.astype(cdt),                                    # (E, M)
        v_m=v_m.astype(cdt),                                        # (M, E)
        wq_t=(wq.T * inv_sqrt_e).astype(cdt), bq=(bq * inv_sqrt_e).reshape(1, E),
        wk_t=wk.T.astype(cdt), bk=bk.reshape(1, E),
        wv_t=wv.T.astype(cdt), bv=bv.reshape(1, E),
        gamma=gamma.reshape(1, E), beta=beta.reshape(1, E),
        wvoc_t=wvoc.T.astype(cdt), bvoc=bvoc.reshape(1, V),
    )


if __name__ == "__main__":
    # batch, seq len, embed_dim, mixture_count, output_vocab
    B, T, E, M, V = 16, 8, 32, 4, 16

    root = jax.random.PRNGKey(0)
    kz, kt, kp = jax.random.split(root, 3)
    hidden_state = jax.random.normal(kz, (B, 1, E), jnp.float32)
    output_sequence = jax.random.randint(kt, (B, T), 0, V)
    params = make_params(E, M, V, kp)

    z, y = joint_mixture_rnn_forward(hidden_state, output_sequence, params, block_b=8)
    z = jax.block_until_ready(z)
    y = jax.block_until_ready(y)
    assert z.shape == (B, 1, E), z.shape
    assert y.shape == (B, 1, V), y.shape
    assert bool(jnp.all(jnp.isfinite(z))) and bool(jnp.all(jnp.isfinite(y)))
    print("KERNEL_OK")
</pallas_src>

<mosaic_0001>
module attributes {stable_mosaic.version = 11 : i64} {
  func.func @joint_mixture_rnn_kernel(%arg0: i32, %arg1: i32, %arg2: memref<8x32xf32, #tpu.memory_space<vmem>>, %arg3: memref<8x8x32xf32, #tpu.memory_space<vmem>>, %arg4: memref<32x4xbf16, #tpu.memory_space<vmem>>, %arg5: memref<4x32xbf16, #tpu.memory_space<vmem>>, %arg6: memref<32x32xbf16, #tpu.memory_space<vmem>>, %arg7: memref<1x32xf32, #tpu.memory_space<vmem>>, %arg8: memref<32x32xbf16, #tpu.memory_space<vmem>>, %arg9: memref<1x32xf32, #tpu.memory_space<vmem>>, %arg10: memref<32x32xbf16, #tpu.memory_space<vmem>>, %arg11: memref<1x32xf32, #tpu.memory_space<vmem>>, %arg12: memref<1x32xf32, #tpu.memory_space<vmem>>, %arg13: memref<1x32xf32, #tpu.memory_space<vmem>>, %arg14: memref<32x16xbf16, #tpu.memory_space<vmem>>, %arg15: memref<1x16xf32, #tpu.memory_space<vmem>>, %arg16: memref<8x32xf32, #tpu.memory_space<vmem>>, %arg17: memref<8x16xf32, #tpu.memory_space<vmem>>, %arg18: memref<8x1xf32, #tpu.memory_space<vmem>>, %arg19: memref<8x1xf32, #tpu.memory_space<vmem>>, %arg20: memref<8x1xf32, #tpu.memory_space<vmem>>) attributes {dimension_semantics = [#tpu.dimension_semantics<parallel>, #tpu.dimension_semantics<arbitrary>], iteration_bounds = array<i64: 2, 1>, scalar_prefetch = 0 : i64, scratch_operands = 2 : i64, tpu.core_type = #tpu.core_type<tc>, window_params = [{transform_indices = @transform_0, window_bounds = array<i64: 8, 32>}, {transform_indices = @transform_1, window_bounds = array<i64: 8, 8, 32>}, {pipeline_mode = #tpu.pipeline_mode<synchronous>, transform_indices = @transform_2, window_bounds = array<i64: 32, 4>}, {pipeline_mode = #tpu.pipeline_mode<synchronous>, transform_indices = @transform_3, window_bounds = array<i64: 4, 32>}, {pipeline_mode = #tpu.pipeline_mode<synchronous>, transform_indices = @transform_4, window_bounds = array<i64: 32, 32>}, {pipeline_mode = #tpu.pipeline_mode<synchronous>, transform_indices = @transform_5, window_bounds = array<i64: 1, 32>}, {pipeline_mode = #tpu.pipeline_mode<synchronous>, transform_indices = @transform_6, window_bounds = array<i64: 32, 32>}, {pipeline_mode = #tpu.pipeline_mode<synchronous>, transform_indices = @transform_7, window_bounds = array<i64: 1, 32>}, {pipeline_mode = #tpu.pipeline_mode<synchronous>, transform_indices = @transform_8, window_bounds = array<i64: 32, 32>}, {pipeline_mode = #tpu.pipeline_mode<synchronous>, transform_indices = @transform_9, window_bounds = array<i64: 1, 32>}, {pipeline_mode = #tpu.pipeline_mode<synchronous>, transform_indices = @transform_10, window_bounds = array<i64: 1, 32>}, {pipeline_mode = #tpu.pipeline_mode<synchronous>, transform_indices = @transform_11, window_bounds = array<i64: 1, 32>}, {transform_indices = @transform_12, window_bounds = array<i64: 32, 16>}, {transform_indices = @transform_13, window_bounds = array<i64: 1, 16>}, {transform_indices = @transform_14, window_bounds = array<i64: 8, 32>}, {transform_indices = @transform_15, window_bounds = array<i64: 8, 16>}, {transform_indices = @transform_16, window_bounds = array<i64: 8, 1>}]} {
    %c0_i32 = arith.constant 0 : i32
    %0 = arith.cmpi eq, %arg1, %c0_i32 : i32
    %1 = arith.extui %0 : i1 to i32
    %c0_i32_0 = arith.constant 0 : i32
    %2 = arith.cmpi ne, %1, %c0_i32_0 : i32
    scf.if %2 {
      %c0_20 = arith.constant 0 : index
      %c0_21 = arith.constant 0 : index
      %30 = vector.load %arg6[%c0_20, %c0_21] : memref<32x32xbf16, #tpu.memory_space<vmem>>, vector<32x32xbf16>
      %c0_22 = arith.constant 0 : index
      %c0_23 = arith.constant 0 : index
      %31 = vector.load %arg8[%c0_22, %c0_23] : memref<32x32xbf16, #tpu.memory_space<vmem>>, vector<32x32xbf16>
      %c0_24 = arith.constant 0 : index
      %c0_25 = arith.constant 0 : index
      %32 = vector.load %arg10[%c0_24, %c0_25] : memref<32x32xbf16, #tpu.memory_space<vmem>>, vector<32x32xbf16>
      %c0_26 = arith.constant 0 : index
      %c0_27 = arith.constant 0 : index
      %33 = vector.load %arg4[%c0_26, %c0_27] : memref<32x4xbf16, #tpu.memory_space<vmem>>, vector<32x4xbf16>
      %c0_28 = arith.constant 0 : index
      %c0_29 = arith.constant 0 : index
      %34 = vector.load %arg5[%c0_28, %c0_29] : memref<4x32xbf16, #tpu.memory_space<vmem>>, vector<4x32xbf16>
      %c0_30 = arith.constant 0 : index
      %c0_31 = arith.constant 0 : index
      %35 = vector.load %arg7[%c0_30, %c0_31] : memref<1x32xf32, #tpu.memory_space<vmem>>, vector<1x32xf32>
      %36 = vector.shape_cast %35 : vector<1x32xf32> to vector<1x32xf32>
      %37 = vector.broadcast %36 : vector<1x32xf32> to vector<8x32xf32>
      %c0_32 = arith.constant 0 : index
      %c0_33 = arith.constant 0 : index
      %38 = vector.load %arg9[%c0_32, %c0_33] : memref<1x32xf32, #tpu.memory_space<vmem>>, vector<1x32xf32>
      %39 = vector.shape_cast %38 : vector<1x32xf32> to vector<1x32xf32>
      %40 = vector.broadcast %39 : vector<1x32xf32> to vector<8x32xf32>
      %c0_34 = arith.constant 0 : index
      %c0_35 = arith.constant 0 : index
      %41 = vector.load %arg11[%c0_34, %c0_35] : memref<1x32xf32, #tpu.memory_space<vmem>>, vector<1x32xf32>
      %42 = vector.shape_cast %41 : vector<1x32xf32> to vector<1x32xf32>
      %43 = vector.broadcast %42 : vector<1x32xf32> to vector<8x32xf32>
      %c0_36 = arith.constant 0 : index
      %c0_37 = arith.constant 0 : index
      %44 = vector.load %arg12[%c0_36, %c0_37] : memref<1x32xf32, #tpu.memory_space<vmem>>, vector<1x32xf32>
      %45 = vector.shape_cast %44 : vector<1x32xf32> to vector<1x32xf32>
      %46 = vector.broadcast %45 : vector<1x32xf32> to vector<8x32xf32>
      %c0_38 = arith.constant 0 : index
      %c0_39 = arith.constant 0 : index
      %47 = vector.load %arg13[%c0_38, %c0_39] : memref<1x32xf32, #tpu.memory_space<vmem>>, vector<1x32xf32>
      %48 = vector.shape_cast %47 : vector<1x32xf32> to vector<1x32xf32>
      %49 = vector.broadcast %48 : vector<1x32xf32> to vector<8x32xf32>
      %c0_40 = arith.constant 0 : index
      %c0_41 = arith.constant 0 : index
      %50 = vector.load %arg2[%c0_40, %c0_41] : memref<8x32xf32, #tpu.memory_space<vmem>>, vector<8x32xf32>
      %c0_i32_42 = arith.constant 0 : i32
      %51 = arith.index_cast %c0_i32_42 : i32 to index
      %c0_43 = arith.constant 0 : index
      %c0_44 = arith.constant 0 : index
      %52 = vector.load %arg3[%51, %c0_43, %c0_44] : memref<8x8x32xf32, #tpu.memory_space<vmem>>, vector<1x8x32xf32>
      %53 = vector.shape_cast %52 : vector<1x8x32xf32> to vector<8x32xf32>
      %54 = arith.addf %50, %53 : vector<8x32xf32>
      %55 = arith.truncf %54 : vector<8x32xf32> to vector<8x32xbf16>
      %cst_45 = arith.constant dense<0.000000e+00> : vector<8x32xf32>
      %56 = tpu.matmul %55, %30, %cst_45 {dimension_numbers = #tpu.dot_dimension_numbers<[1], [0], [0], [1], [0, 0, 1, 1], [], []>} : vector<8x32xbf16>, vector<32x32xbf16>, vector<8x32xf32> -> vector<8x32xf32>
      %57 = arith.addf %56, %37 : vector<8x32xf32>
      %cst_46 = arith.constant dense<0.000000e+00> : vector<8x32xf32>
      %58 = tpu.matmul %55, %31, %cst_46 {dimension_numbers = #tpu.dot_dimension_numbers<[1], [0], [0], [1], [0, 0, 1, 1], [], []>} : vector<8x32xbf16>, vector<32x32xbf16>, vector<8x32xf32> -> vector<8x32xf32>
      %59 = arith.addf %58, %40 : vector<8x32xf32>
      %cst_47 = arith.constant dense<0.000000e+00> : vector<8x32xf32>
      %60 = tpu.matmul %55, %32, %cst_47 {dimension_numbers = #tpu.dot_dimension_numbers<[1], [0], [0], [1], [0, 0, 1, 1], [], []>} : vector<8x32xbf16>, vector<32x32xbf16>, vector<8x32xf32> -> vector<8x32xf32>
      %61 = arith.addf %60, %43 : vector<8x32xf32>
      %62 = arith.mulf %57, %59 : vector<8x32xf32>
      %cst_48 = arith.constant dense<0.000000e+00> : vector<8xf32>
      %63 = vector.multi_reduction <add>, %62, %cst_48 [1] : vector<8x32xf32> to vector<8xf32>
      %64 = vector.shape_cast %63 : vector<8xf32> to vector<8x1xf32>
      %65 = arith.truncf %57 : vector<8x32xf32> to vector<8x32xbf16>
      %cst_49 = arith.constant dense<0.000000e+00> : vector<8x4xf32>
      %66 = tpu.matmul %65, %33, %cst_49 {dimension_numbers = #tpu.dot_dimension_numbers<[1], [0], [0], [1], [0, 0, 1, 1], [], []>} : vector<8x32xbf16>, vector<32x4xbf16>, vector<8x4xf32> -> vector<8x4xf32>
      %cst_50 = arith.constant dense<0xFF800000> : vector<8xf32>
      %67 = vector.multi_reduction <maximumf>, %66, %cst_50 [1] : vector<8x4xf32> to vector<8xf32>
      %68 = vector.shape_cast %67 : vector<8xf32> to vector<8x1xf32>
      %69 = arith.maximumf %64, %68 : vector<8x1xf32>
      %70 = arith.subf %64, %69 : vector<8x1xf32>
      %71 = math.exp %70 : vector<8x1xf32>
      %72 = vector.broadcast %69 : vector<8x1xf32> to vector<8x4xf32>
      %73 = arith.subf %66, %72 : vector<8x4xf32>
      %74 = math.exp %73 : vector<8x4xf32>
      %cst_51 = arith.constant dense<0.000000e+00> : vector<8xf32>
      %75 = vector.multi_reduction <add>, %74, %cst_51 [1] : vector<8x4xf32> to vector<8xf32>
      %76 = vector.shape_cast %75 : vector<8xf32> to vector<8x1xf32>
      %77 = arith.addf %71, %76 : vector<8x1xf32>
      %78 = vector.broadcast %71 : vector<8x1xf32> to vector<8x32xf32>
      %79 = arith.mulf %78, %61 : vector<8x32xf32>
      %80 = arith.truncf %74 : vector<8x4xf32> to vector<8x4xbf16>
      %cst_52 = arith.constant dense<0.000000e+00> : vector<8x32xf32>
      %81 = tpu.matmul %80, %34, %cst_52 {dimension_numbers = #tpu.dot_dimension_numbers<[1], [0], [0], [1], [0, 0, 1, 1], [], []>} : vector<8x4xbf16>, vector<4x32xbf16>, vector<8x32xf32> -> vector<8x32xf32>
      %82 = arith.addf %79, %81 : vector<8x32xf32>
      %83 = tpu.reciprocal %77 {approx = true} : vector<8x1xf32> -> vector<8x1xf32>
      %84 = vector.broadcast %83 : vector<8x1xf32> to vector<8x32xf32>
      %85 = arith.mulf %82, %84 : vector<8x32xf32>
      %86 = arith.addf %54, %85 : vector<8x32xf32>
      %cst_53 = arith.constant dense<0.000000e+00> : vector<8xf32>
      %87 = vector.multi_reduction <add>, %86, %cst_53 [1] : vector<8x32xf32> to vector<8xf32>
      %88 = vector.shape_cast %87 : vector<8xf32> to vector<8x1xf32>
      %cst_54 = arith.constant 3.200000e+01 : f32
      %89 = vector.broadcast %cst_54 : f32 to vector<8x1xf32>
      %90 = arith.divf %88, %89 : vector<8x1xf32>
      %91 = vector.broadcast %90 : vector<8x1xf32> to vector<8x32xf32>
      %92 = arith.subf %86, %91 : vector<8x32xf32>
      %93 = arith.mulf %92, %92 : vector<8x32xf32>
      %cst_55 = arith.constant dense<0.000000e+00> : vector<8xf32>
      %94 = vector.multi_reduction <add>, %93, %cst_55 [1] : vector<8x32xf32> to vector<8xf32>
      %95 = vector.shape_cast %94 : vector<8xf32> to vector<8x1xf32>
      %cst_56 = arith.constant 3.200000e+01 : f32
      %96 = vector.broadcast %cst_56 : f32 to vector<8x1xf32>
      %97 = arith.divf %95, %96 : vector<8x1xf32>
      %98 = vector.broadcast %90 : vector<8x1xf32> to vector<8x32xf32>
      %99 = arith.subf %86, %98 : vector<8x32xf32>
      %cst_57 = arith.constant 9.99999974E-6 : f32
      %100 = vector.broadcast %cst_57 : f32 to vector<8x1xf32>
      %101 = arith.addf %97, %100 : vector<8x1xf32>
      %102 = math.rsqrt %101 : vector<8x1xf32>
      %103 = vector.broadcast %102 : vector<8x1xf32> to vector<8x32xf32>
      %104 = arith.mulf %99, %103 : vector<8x32xf32>
      %105 = arith.mulf %104, %46 : vector<8x32xf32>
      %106 = arith.addf %105, %49 : vector<8x32xf32>
      %c1_i32 = arith.constant 1 : i32
      %107 = arith.index_cast %c1_i32 : i32 to index
      %c0_58 = arith.constant 0 : index
      %c0_59 = arith.constant 0 : index
      %108 = vector.load %arg3[%107, %c0_58, %c0_59] : memref<8x8x32xf32, #tpu.memory_space<vmem>>, vector<1x8x32xf32>
      %109 = vector.shape_cast %108 : vector<1x8x32xf32> to vector<8x32xf32>
      %110 = arith.addf %106, %109 : vector<8x32xf32>
      %111 = arith.truncf %110 : vector<8x32xf32> to vector<8x32xbf16>
      %cst_60 = arith.constant dense<0.000000e+00> : vector<8x32xf32>
      %112 = tpu.matmul %111, %30, %cst_60 {dimension_numbers = #tpu.dot_dimension_numbers<[1], [0], [0], [1], [0, 0, 1, 1], [], []>} : vector<8x32xbf16>, vector<32x32xbf16>, vector<8x32xf32> -> vector<8x32xf32>
      %113 = arith.addf %112, %37 : vector<8x32xf32>
      %cst_61 = arith.constant dense<0.000000e+00> : vector<8x32xf32>
      %114 = tpu.matmul %111, %31, %cst_61 {dimension_numbers = #tpu.dot_dimension_numbers<[1], [0], [0], [1], [0, 0, 1, 1], [], []>} : vector<8x32xbf16>, vector<32x32xbf16>, vector<8x32xf32> -> vector<8x32xf32>
      %115 = arith.addf %114, %40 : vector<8x32xf32>
      %cst_62 = arith.constant dense<0.000000e+00> : vector<8x32xf32>
      %116 = tpu.matmul %111, %32, %cst_62 {dimension_numbers = #tpu.dot_dimension_numbers<[1], [0], [0], [1], [0, 0, 1, 1], [], []>} : vector<8x32xbf16>, vector<32x32xbf16>, vector<8x32xf32> -> vector<8x32xf32>
      %117 = arith.addf %116, %43 : vector<8x32xf32>
      %118 = arith.mulf %113, %115 : vector<8x32xf32>
      %cst_63 = arith.constant dense<0.000000e+00> : vector<8xf32>
      %119 = vector.multi_reduction <add>, %118, %cst_63 [1] : vector<8x32xf32> to vector<8xf32>
      %120 = vector.shape_cast %119 : vector<8xf32> to vector<8x1xf32>
      %121 = arith.truncf %113 : vector<8x32xf32> to vector<8x32xbf16>
      %cst_64 = arith.constant dense<0.000000e+00> : vector<8x4xf32>
      %122 = tpu.matmul %121, %33, %cst_64 {dimension_numbers = #tpu.dot_dimension_numbers<[1], [0], [0], [1], [0, 0, 1, 1], [], []>} : vector<8x32xbf16>, vector<32x4xbf16>, vector<8x4xf32> -> vector<8x4xf32>
      %cst_65 = arith.constant dense<0xFF800000> : vector<8xf32>
      %123 = vector.multi_reduction <maximumf>, %122, %cst_65 [1] : vector<8x4xf32> to vector<8xf32>
      %124 = vector.shape_cast %123 : vector<8xf32> to vector<8x1xf32>
      %125 = arith.maximumf %120, %124 : vector<8x1xf32>
      %126 = arith.subf %120, %125 : vector<8x1xf32>
      %127 = math.exp %126 : vector<8x1xf32>
      %128 = vector.broadcast %125 : vector<8x1xf32> to vector<8x4xf32>
      %129 = arith.subf %122, %128 : vector<8x4xf32>
      %130 = math.exp %129 : vector<8x4xf32>
      %cst_66 = arith.constant dense<0.000000e+00> : vector<8xf32>
      %131 = vector.multi_reduction <add>, %130, %cst_66 [1] : vector<8x4xf32> to vector<8xf32>
      %132 = vector.shape_cast %131 : vector<8xf32> to vector<8x1xf32>
      %133 = arith.addf %127, %132 : vector<8x1xf32>
      %134 = vector.broadcast %127 : vector<8x1xf32> to vector<8x32xf32>
      %135 = arith.mulf %134, %117 : vector<8x32xf32>
      %136 = arith.truncf %130 : vector<8x4xf32> to vector<8x4xbf16>
      %cst_67 = arith.constant dense<0.000000e+00> : vector<8x32xf32>
      %137 = tpu.matmul %136, %34, %cst_67 {dimension_numbers = #tpu.dot_dimension_numbers<[1], [0], [0], [1], [0, 0, 1, 1], [], []>} : vector<8x4xbf16>, vector<4x32xbf16>, vector<8x32xf32> -> vector<8x32xf32>
      %138 = arith.addf %135, %137 : vector<8x32xf32>
      %139 = tpu.reciprocal %133 {approx = true} : vector<8x1xf32> -> vector<8x1xf32>
      %140 = vector.broadcast %139 : vector<8x1xf32> to vector<8x32xf32>
      %141 = arith.mulf %138, %140 : vector<8x32xf32>
      %142 = arith.addf %110, %141 : vector<8x32xf32>
      %cst_68 = arith.constant dense<0.000000e+00> : vector<8xf32>
      %143 = vector.multi_reduction <add>, %142, %cst_68 [1] : vector<8x32xf32> to vector<8xf32>
      %144 = vector.shape_cast %143 : vector<8xf32> to vector<8x1xf32>
      %cst_69 = arith.constant 3.200000e+01 : f32
      %145 = vector.broadcast %cst_69 : f32 to vector<8x1xf32>
      %146 = arith.divf %144, %145 : vector<8x1xf32>
      %147 = vector.broadcast %146 : vector<8x1xf32> to vector<8x32xf32>
      %148 = arith.subf %142, %147 : vector<8x32xf32>
      %149 = arith.mulf %148, %148 : vector<8x32xf32>
      %cst_70 = arith.constant dense<0.000000e+00> : vector<8xf32>
      %150 = vector.multi_reduction <add>, %149, %cst_70 [1] : vector<8x32xf32> to vector<8xf32>
      %151 = vector.shape_cast %150 : vector<8xf32> to vector<8x1xf32>
      %cst_71 = arith.constant 3.200000e+01 : f32
      %152 = vector.broadcast %cst_71 : f32 to vector<8x1xf32>
      %153 = arith.divf %151, %152 : vector<8x1xf32>
      %154 = vector.broadcast %146 : vector<8x1xf32> to vector<8x32xf32>
      %155 = arith.subf %142, %154 : vector<8x32xf32>
      %cst_72 = arith.constant 9.99999974E-6 : f32
      %156 = vector.broadcast %cst_72 : f32 to vector<8x1xf32>
      %157 = arith.addf %153, %156 : vector<8x1xf32>
      %158 = math.rsqrt %157 : vector<8x1xf32>
      %159 = vector.broadcast %158 : vector<8x1xf32> to vector<8x32xf32>
      %160 = arith.mulf %155, %159 : vector<8x32xf32>
      %161 = arith.mulf %160, %46 : vector<8x32xf32>
      %162 = arith.addf %161, %49 : vector<8x32xf32>
      %c2_i32 = arith.constant 2 : i32
      %163 = arith.index_cast %c2_i32 : i32 to index
      %c0_73 = arith.constant 0 : index
      %c0_74 = arith.constant 0 : index
      %164 = vector.load %arg3[%163, %c0_73, %c0_74] : memref<8x8x32xf32, #tpu.memory_space<vmem>>, vector<1x8x32xf32>
      %165 = vector.shape_cast %164 : vector<1x8x32xf32> to vector<8x32xf32>
      %166 = arith.addf %162, %165 : vector<8x32xf32>
      %167 = arith.truncf %166 : vector<8x32xf32> to vector<8x32xbf16>
      %cst_75 = arith.constant dense<0.000000e+00> : vector<8x32xf32>
      %168 = tpu.matmul %167, %30, %cst_75 {dimension_numbers = #tpu.dot_dimension_numbers<[1], [0], [0], [1], [0, 0, 1, 1], [], []>} : vector<8x32xbf16>, vector<32x32xbf16>, vector<8x32xf32> -> vector<8x32xf32>
      %169 = arith.addf %168, %37 : vector<8x32xf32>
      %cst_76 = arith.constant dense<0.000000e+00> : vector<8x32xf32>
      %170 = tpu.matmul %167, %31, %cst_76 {dimension_numbers = #tpu.dot_dimension_numbers<[1], [0], [0], [1], [0, 0, 1, 1], [], []>} : vector<8x32xbf16>, vector<32x32xbf16>, vector<8x32xf32> -> vector<8x32xf32>
      %171 = arith.addf %170, %40 : vector<8x32xf32>
      %cst_77 = arith.constant dense<0.000000e+00> : vector<8x32xf32>
      %172 = tpu.matmul %167, %32, %cst_77 {dimension_numbers = #tpu.dot_dimension_numbers<[1], [0], [0], [1], [0, 0, 1, 1], [], []>} : vector<8x32xbf16>, vector<32x32xbf16>, vector<8x32xf32> -> vector<8x32xf32>
      %173 = arith.addf %172, %43 : vector<8x32xf32>
      %174 = arith.mulf %169, %171 : vector<8x32xf32>
      %cst_78 = arith.constant dense<0.000000e+00> : vector<8xf32>
      %175 = vector.multi_reduction <add>, %174, %cst_78 [1] : vector<8x32xf32> to vector<8xf32>
      %176 = vector.shape_cast %175 : vector<8xf32> to vector<8x1xf32>
      %177 = arith.truncf %169 : vector<8x32xf32> to vector<8x32xbf16>
      %cst_79 = arith.constant dense<0.000000e+00> : vector<8x4xf32>
      %178 = tpu.matmul %177, %33, %cst_79 {dimension_numbers = #tpu.dot_dimension_numbers<[1], [0], [0], [1], [0, 0, 1, 1], [], []>} : vector<8x32xbf16>, vector<32x4xbf16>, vector<8x4xf32> -> vector<8x4xf32>
      %cst_80 = arith.constant dense<0xFF800000> : vector<8xf32>
      %179 = vector.multi_reduction <maximumf>, %178, %cst_80 [1] : vector<8x4xf32> to vector<8xf32>
      %180 = vector.shape_cast %179 : vector<8xf32> to vector<8x1xf32>
      %181 = arith.maximumf %176, %180 : vector<8x1xf32>
      %182 = arith.subf %176, %181 : vector<8x1xf32>
      %183 = math.exp %182 : vector<8x1xf32>
      %184 = vector.broadcast %181 : vector<8x1xf32> to vector<8x4xf32>
      %185 = arith.subf %178, %184 : vector<8x4xf32>
      %186 = math.exp %185 : vector<8x4xf32>
      %cst_81 = arith.constant dense<0.000000e+00> : vector<8xf32>
      %187 = vector.multi_reduction <add>, %186, %cst_81 [1] : vector<8x4xf32> to vector<8xf32>
      %188 = vector.shape_cast %187 : vector<8xf32> to vector<8x1xf32>
      %189 = arith.addf %183, %188 : vector<8x1xf32>
      %190 = vector.broadcast %183 : vector<8x1xf32> to vector<8x32xf32>
      %191 = arith.mulf %190, %173 : vector<8x32xf32>
      %192 = arith.truncf %186 : vector<8x4xf32> to vector<8x4xbf16>
      %cst_82 = arith.constant dense<0.000000e+00> : vector<8x32xf32>
      %193 = tpu.matmul %192, %34, %cst_82 {dimension_numbers = #tpu.dot_dimension_numbers<[1], [0], [0], [1], [0, 0, 1, 1], [], []>} : vector<8x4xbf16>, vector<4x32xbf16>, vector<8x32xf32> -> vector<8x32xf32>
      %194 = arith.addf %191, %193 : vector<8x32xf32>
      %195 = tpu.reciprocal %189 {approx = true} : vector<8x1xf32> -> vector<8x1xf32>
      %196 = vector.broadcast %195 : vector<8x1xf32> to vector<8x32xf32>
      %197 = arith.mulf %194, %196 : vector<8x32xf32>
      %198 = arith.addf %166, %197 : vector<8x32xf32>
      %cst_83 = arith.constant dense<0.000000e+00> : vector<8xf32>
      %199 = vector.multi_reduction <add>, %198, %cst_83 [1] : vector<8x32xf32> to vector<8xf32>
      %200 = vector.shape_cast %199 : vector<8xf32> to vector<8x1xf32>
      %cst_84 = arith.constant 3.200000e+01 : f32
      %201 = vector.broadcast %cst_84 : f32 to vector<8x1xf32>
      %202 = arith.divf %200, %201 : vector<8x1xf32>
      %203 = vector.broadcast %202 : vector<8x1xf32> to vector<8x32xf32>
      %204 = arith.subf %198, %203 : vector<8x32xf32>
      %205 = arith.mulf %204, %204 : vector<8x32xf32>
      %cst_85 = arith.constant dense<0.000000e+00> : vector<8xf32>
      %206 = vector.multi_reduction <add>, %205, %cst_85 [1] : vector<8x32xf32> to vector<8xf32>
      %207 = vector.shape_cast %206 : vector<8xf32> to vector<8x1xf32>
      %cst_86 = arith.constant 3.200000e+01 : f32
      %208 = vector.broadcast %cst_86 : f32 to vector<8x1xf32>
      %209 = arith.divf %207, %208 : vector<8x1xf32>
      %210 = vector.broadcast %202 : vector<8x1xf32> to vector<8x32xf32>
      %211 = arith.subf %198, %210 : vector<8x32xf32>
      %cst_87 = arith.constant 9.99999974E-6 : f32
      %212 = vector.broadcast %cst_87 : f32 to vector<8x1xf32>
      %213 = arith.addf %209, %212 : vector<8x1xf32>
      %214 = math.rsqrt %213 : vector<8x1xf32>
      %215 = vector.broadcast %214 : vector<8x1xf32> to vector<8x32xf32>
      %216 = arith.mulf %211, %215 : vector<8x32xf32>
      %217 = arith.mulf %216, %46 : vector<8x32xf32>
      %218 = arith.addf %217, %49 : vector<8x32xf32>
      %c3_i32 = arith.constant 3 : i32
      %219 = arith.index_cast %c3_i32 : i32 to index
      %c0_88 = arith.constant 0 : index
      %c0_89 = arith.constant 0 : index
      %220 = vector.load %arg3[%219, %c0_88, %c0_89] : memref<8x8x32xf32, #tpu.memory_space<vmem>>, vector<1x8x32xf32>
      %221 = vector.shape_cast %220 : vector<1x8x32xf32> to vector<8x32xf32>
      %222 = arith.addf %218, %221 : vector<8x32xf32>
      %223 = arith.truncf %222 : vector<8x32xf32> to vector<8x32xbf16>
      %cst_90 = arith.constant dense<0.000000e+00> : vector<8x32xf32>
      %224 = tpu.matmul %223, %30, %cst_90 {dimension_numbers = #tpu.dot_dimension_numbers<[1], [0], [0], [1], [0, 0, 1, 1], [], []>} : vector<8x32xbf16>, vector<32x32xbf16>, vector<8x32xf32> -> vector<8x32xf32>
      %225 = arith.addf %224, %37 : vector<8x32xf32>
      %cst_91 = arith.constant dense<0.000000e+00> : vector<8x32xf32>
      %226 = tpu.matmul %223, %31, %cst_91 {dimension_numbers = #tpu.dot_dimension_numbers<[1], [0], [0], [1], [0, 0, 1, 1], [], []>} : vector<8x32xbf16>, vector<32x32xbf16>, vector<8x32xf32> -> vector<8x32xf32>
      %227 = arith.addf %226, %40 : vector<8x32xf32>
      %cst_92 = arith.constant dense<0.000000e+00> : vector<8x32xf32>
      %228 = tpu.matmul %223, %32, %cst_92 {dimension_numbers = #tpu.dot_dimension_numbers<[1], [0], [0], [1], [0, 0, 1, 1], [], []>} : vector<8x32xbf16>, vector<32x32xbf16>, vector<8x32xf32> -> vector<8x32xf32>
      %229 = arith.addf %228, %43 : vector<8x32xf32>
      %230 = arith.mulf %225, %227 : vector<8x32xf32>
      %cst_93 = arith.constant dense<0.000000e+00> : vector<8xf32>
      %231 = vector.multi_reduction <add>, %230, %cst_93 [1] : vector<8x32xf32> to vector<8xf32>
      %232 = vector.shape_cast %231 : vector<8xf32> to vector<8x1xf32>
      %233 = arith.truncf %225 : vector<8x32xf32> to vector<8x32xbf16>
      %cst_94 = arith.constant dense<0.000000e+00> : vector<8x4xf32>
      %234 = tpu.matmul %233, %33, %cst_94 {dimension_numbers = #tpu.dot_dimension_numbers<[1], [0], [0], [1], [0, 0, 1, 1], [], []>} : vector<8x32xbf16>, vector<32x4xbf16>, vector<8x4xf32> -> vector<8x4xf32>
      %cst_95 = arith.constant dense<0xFF800000> : vector<8xf32>
      %235 = vector.multi_reduction <maximumf>, %234, %cst_95 [1] : vector<8x4xf32> to vector<8xf32>
      %236 = vector.shape_cast %235 : vector<8xf32> to vector<8x1xf32>
      %237 = arith.maximumf %232, %236 : vector<8x1xf32>
      %238 = arith.subf %232, %237 : vector<8x1xf32>
      %239 = math.exp %238 : vector<8x1xf32>
      %240 = vector.broadcast %237 : vector<8x1xf32> to vector<8x4xf32>
      %241 = arith.subf %234, %240 : vector<8x4xf32>
      %242 = math.exp %241 : vector<8x4xf32>
      %cst_96 = arith.constant dense<0.000000e+00> : vector<8xf32>
      %243 = vector.multi_reduction <add>, %242, %cst_96 [1] : vector<8x4xf32> to vector<8xf32>
      %244 = vector.shape_cast %243 : vector<8xf32> to vector<8x1xf32>
      %245 = arith.addf %239, %244 : vector<8x1xf32>
      %246 = vector.broadcast %239 : vector<8x1xf32> to vector<8x32xf32>
      %247 = arith.mulf %246, %229 : vector<8x32xf32>
      %248 = arith.truncf %242 : vector<8x4xf32> to vector<8x4xbf16>
      %cst_97 = arith.constant dense<0.000000e+00> : vector<8x32xf32>
      %249 = tpu.matmul %248, %34, %cst_97 {dimension_numbers = #tpu.dot_dimension_numbers<[1], [0], [0], [1], [0, 0, 1, 1], [], []>} : vector<8x4xbf16>, vector<4x32xbf16>, vector<8x32xf32> -> vector<8x32xf32>
      %250 = arith.addf %247, %249 : vector<8x32xf32>
      %251 = tpu.reciprocal %245 {approx = true} : vector<8x1xf32> -> vector<8x1xf32>
      %252 = vector.broadcast %251 : vector<8x1xf32> to vector<8x32xf32>
      %253 = arith.mulf %250, %252 : vector<8x32xf32>
      %254 = arith.addf %222, %253 : vector<8x32xf32>
      %cst_98 = arith.constant dense<0.000000e+00> : vector<8xf32>
      %255 = vector.multi_reduction <add>, %254, %cst_98 [1] : vector<8x32xf32> to vector<8xf32>
      %256 = vector.shape_cast %255 : vector<8xf32> to vector<8x1xf32>
      %cst_99 = arith.constant 3.200000e+01 : f32
      %257 = vector.broadcast %cst_99 : f32 to vector<8x1xf32>
      %258 = arith.divf %256, %257 : vector<8x1xf32>
      %259 = vector.broadcast %258 : vector<8x1xf32> to vector<8x32xf32>
      %260 = arith.subf %254, %259 : vector<8x32xf32>
      %261 = arith.mulf %260, %260 : vector<8x32xf32>
      %cst_100 = arith.constant dense<0.000000e+00> : vector<8xf32>
      %262 = vector.multi_reduction <add>, %261, %cst_100 [1] : vector<8x32xf32> to vector<8xf32>
      %263 = vector.shape_cast %262 : vector<8xf32> to vector<8x1xf32>
      %cst_101 = arith.constant 3.200000e+01 : f32
      %264 = vector.broadcast %cst_101 : f32 to vector<8x1xf32>
      %265 = arith.divf %263, %264 : vector<8x1xf32>
      %266 = vector.broadcast %258 : vector<8x1xf32> to vector<8x32xf32>
      %267 = arith.subf %254, %266 : vector<8x32xf32>
      %cst_102 = arith.constant 9.99999974E-6 : f32
      %268 = vector.broadcast %cst_102 : f32 to vector<8x1xf32>
      %269 = arith.addf %265, %268 : vector<8x1xf32>
      %270 = math.rsqrt %269 : vector<8x1xf32>
      %271 = vector.broadcast %270 : vector<8x1xf32> to vector<8x32xf32>
      %272 = arith.mulf %267, %271 : vector<8x32xf32>
      %273 = arith.mulf %272, %46 : vector<8x32xf32>
      %274 = arith.addf %273, %49 : vector<8x32xf32>
      %c4_i32 = arith.constant 4 : i32
      %275 = arith.index_cast %c4_i32 : i32 to index
      %c0_103 = arith.constant 0 : index
      %c0_104 = arith.constant 0 : index
      %276 = vector.load %arg3[%275, %c0_103, %c0_104] : memref<8x8x32xf32, #tpu.memory_space<vmem>>, vector<1x8x32xf32>
      %277 = vector.shape_cast %276 : vector<1x8x32xf32> to vector<8x32xf32>
      %278 = arith.addf %274, %277 : vector<8x32xf32>
      %279 = arith.truncf %278 : vector<8x32xf32> to vector<8x32xbf16>
      %cst_105 = arith.constant dense<0.000000e+00> : vector<8x32xf32>
      %280 = tpu.matmul %279, %30, %cst_105 {dimension_numbers = #tpu.dot_dimension_numbers<[1], [0], [0], [1], [0, 0, 1, 1], [], []>} : vector<8x32xbf16>, vector<32x32xbf16>, vector<8x32xf32> -> vector<8x32xf32>
      %281 = arith.addf %280, %37 : vector<8x32xf32>
      %cst_106 = arith.constant dense<0.000000e+00> : vector<8x32xf32>
      %282 = tpu.matmul %279, %31, %cst_106 {dimension_numbers = #tpu.dot_dimension_numbers<[1], [0], [0], [1], [0, 0, 1, 1], [], []>} : vector<8x32xbf16>, vector<32x32xbf16>, vector<8x32xf32> -> vector<8x32xf32>
      %283 = arith.addf %282, %40 : vector<8x32xf32>
      %cst_107 = arith.constant dense<0.000000e+00> : vector<8x32xf32>
      %284 = tpu.matmul %279, %32, %cst_107 {dimension_numbers = #tpu.dot_dimension_numbers<[1], [0], [0], [1], [0, 0, 1, 1], [], []>} : vector<8x32xbf16>, vector<32x32xbf16>, vector<8x32xf32> -> vector<8x32xf32>
      %285 = arith.addf %284, %43 : vector<8x32xf32>
      %286 = arith.mulf %281, %283 : vector<8x32xf32>
      %cst_108 = arith.constant dense<0.000000e+00> : vector<8xf32>
      %287 = vector.multi_reduction <add>, %286, %cst_108 [1] : vector<8x32xf32> to vector<8xf32>
      %288 = vector.shape_cast %287 : vector<8xf32> to vector<8x1xf32>
      %289 = arith.truncf %281 : vector<8x32xf32> to vector<8x32xbf16>
      %cst_109 = arith.constant dense<0.000000e+00> : vector<8x4xf32>
      %290 = tpu.matmul %289, %33, %cst_109 {dimension_numbers = #tpu.dot_dimension_numbers<[1], [0], [0], [1], [0, 0, 1, 1], [], []>} : vector<8x32xbf16>, vector<32x4xbf16>, vector<8x4xf32> -> vector<8x4xf32>
      %cst_110 = arith.constant dense<0xFF800000> : vector<8xf32>
      %291 = vector.multi_reduction <maximumf>, %290, %cst_110 [1] : vector<8x4xf32> to vector<8xf32>
      %292 = vector.shape_cast %291 : vector<8xf32> to vector<8x1xf32>
      %293 = arith.maximumf %288, %292 : vector<8x1xf32>
      %294 = arith.subf %288, %293 : vector<8x1xf32>
      %295 = math.exp %294 : vector<8x1xf32>
      %296 = vector.broadcast %293 : vector<8x1xf32> to vector<8x4xf32>
      %297 = arith.subf %290, %296 : vector<8x4xf32>
      %298 = math.exp %297 : vector<8x4xf32>
      %cst_111 = arith.constant dense<0.000000e+00> : vector<8xf32>
      %299 = vector.multi_reduction <add>, %298, %cst_111 [1] : vector<8x4xf32> to vector<8xf32>
      %300 = vector.shape_cast %299 : vector<8xf32> to vector<8x1xf32>
      %301 = arith.addf %295, %300 : vector<8x1xf32>
      %302 = vector.broadcast %295 : vector<8x1xf32> to vector<8x32xf32>
      %303 = arith.mulf %302, %285 : vector<8x32xf32>
      %304 = arith.truncf %298 : vector<8x4xf32> to vector<8x4xbf16>
      %cst_112 = arith.constant dense<0.000000e+00> : vector<8x32xf32>
      %305 = tpu.matmul %304, %34, %cst_112 {dimension_numbers = #tpu.dot_dimension_numbers<[1], [0], [0], [1], [0, 0, 1, 1], [], []>} : vector<8x4xbf16>, vector<4x32xbf16>, vector<8x32xf32> -> vector<8x32xf32>
      %306 = arith.addf %303, %305 : vector<8x32xf32>
      %307 = tpu.reciprocal %301 {approx = true} : vector<8x1xf32> -> vector<8x1xf32>
      %308 = vector.broadcast %307 : vector<8x1xf32> to vector<8x32xf32>
      %309 = arith.mulf %306, %308 : vector<8x32xf32>
      %310 = arith.addf %278, %309 : vector<8x32xf32>
      %cst_113 = arith.constant dense<0.000000e+00> : vector<8xf32>
      %311 = vector.multi_reduction <add>, %310, %cst_113 [1] : vector<8x32xf32> to vector<8xf32>
      %312 = vector.shape_cast %311 : vector<8xf32> to vector<8x1xf32>
      %cst_114 = arith.constant 3.200000e+01 : f32
      %313 = vector.broadcast %cst_114 : f32 to vector<8x1xf32>
      %314 = arith.divf %312, %313 : vector<8x1xf32>
      %315 = vector.broadcast %314 : vector<8x1xf32> to vector<8x32xf32>
      %316 = arith.subf %310, %315 : vector<8x32xf32>
      %317 = arith.mulf %316, %316 : vector<8x32xf32>
      %cst_115 = arith.constant dense<0.000000e+00> : vector<8xf32>
      %318 = vector.multi_reduction <add>, %317, %cst_115 [1] : vector<8x32xf32> to vector<8xf32>
      %319 = vector.shape_cast %318 : vector<8xf32> to vector<8x1xf32>
      %cst_116 = arith.constant 3.200000e+01 : f32
      %320 = vector.broadcast %cst_116 : f32 to vector<8x1xf32>
      %321 = arith.divf %319, %320 : vector<8x1xf32>
      %322 = vector.broadcast %314 : vector<8x1xf32> to vector<8x32xf32>
      %323 = arith.subf %310, %322 : vector<8x32xf32>
      %cst_117 = arith.constant 9.99999974E-6 : f32
      %324 = vector.broadcast %cst_117 : f32 to vector<8x1xf32>
      %325 = arith.addf %321, %324 : vector<8x1xf32>
      %326 = math.rsqrt %325 : vector<8x1xf32>
      %327 = vector.broadcast %326 : vector<8x1xf32> to vector<8x32xf32>
      %328 = arith.mulf %323, %327 : vector<8x32xf32>
      %329 = arith.mulf %328, %46 : vector<8x32xf32>
      %330 = arith.addf %329, %49 : vector<8x32xf32>
      %c5_i32 = arith.constant 5 : i32
      %331 = arith.index_cast %c5_i32 : i32 to index
      %c0_118 = arith.constant 0 : index
      %c0_119 = arith.constant 0 : index
      %332 = vector.load %arg3[%331, %c0_118, %c0_119] : memref<8x8x32xf32, #tpu.memory_space<vmem>>, vector<1x8x32xf32>
      %333 = vector.shape_cast %332 : vector<1x8x32xf32> to vector<8x32xf32>
      %334 = arith.addf %330, %333 : vector<8x32xf32>
      %335 = arith.truncf %334 : vector<8x32xf32> to vector<8x32xbf16>
      %cst_120 = arith.constant dense<0.000000e+00> : vector<8x32xf32>
      %336 = tpu.matmul %335, %30, %cst_120 {dimension_numbers = #tpu.dot_dimension_numbers<[1], [0], [0], [1], [0, 0, 1, 1], [], []>} : vector<8x32xbf16>, vector<32x32xbf16>, vector<8x32xf32> -> vector<8x32xf32>
      %337 = arith.addf %336, %37 : vector<8x32xf32>
      %cst_121 = arith.constant dense<0.000000e+00> : vector<8x32xf32>
      %338 = tpu.matmul %335, %31, %cst_121 {dimension_numbers = #tpu.dot_dimension_numbers<[1], [0], [0], [1], [0, 0, 1, 1], [], []>} : vector<8x32xbf16>, vector<32x32xbf16>, vector<8x32xf32> -> vector<8x32xf32>
      %339 = arith.addf %338, %40 : vector<8x32xf32>
      %cst_122 = arith.constant dense<0.000000e+00> : vector<8x32xf32>
      %340 = tpu.matmul %335, %32, %cst_122 {dimension_numbers = #tpu.dot_dimension_numbers<[1], [0], [0], [1], [0, 0, 1, 1], [], []>} : vector<8x32xbf16>, vector<32x32xbf16>, vector<8x32xf32> -> vector<8x32xf32>
      %341 = arith.addf %340, %43 : vector<8x32xf32>
      %342 = arith.mulf %337, %339 : vector<8x32xf32>
      %cst_123 = arith.constant dense<0.000000e+00> : vector<8xf32>
      %343 = vector.multi_reduction <add>, %342, %cst_123 [1] : vector<8x32xf32> to vector<8xf32>
      %344 = vector.shape_cast %343 : vector<8xf32> to vector<8x1xf32>
      %345 = arith.truncf %337 : vector<8x32xf32> to vector<8x32xbf16>
      %cst_124 = arith.constant dense<0.000000e+00> : vector<8x4xf32>
      %346 = tpu.matmul %345, %33, %cst_124 {dimension_numbers = #tpu.dot_dimension_numbers<[1], [0], [0], [1], [0, 0, 1, 1], [], []>} : vector<8x32xbf16>, vector<32x4xbf16>, vector<8x4xf32> -> vector<8x4xf32>
      %cst_125 = arith.constant dense<0xFF800000> : vector<8xf32>
      %347 = vector.multi_reduction <maximumf>, %346, %cst_125 [1] : vector<8x4xf32> to vector<8xf32>
      %348 = vector.shape_cast %347 : vector<8xf32> to vector<8x1xf32>
      %349 = arith.maximumf %344, %348 : vector<8x1xf32>
      %350 = arith.subf %344, %349 : vector<8x1xf32>
      %351 = math.exp %350 : vector<8x1xf32>
      %352 = vector.broadcast %349 : vector<8x1xf32> to vector<8x4xf32>
      %353 = arith.subf %346, %352 : vector<8x4xf32>
      %354 = math.exp %353 : vector<8x4xf32>
      %cst_126 = arith.constant dense<0.000000e+00> : vector<8xf32>
      %355 = vector.multi_reduction <add>, %354, %cst_126 [1] : vector<8x4xf32> to vector<8xf32>
      %356 = vector.shape_cast %355 : vector<8xf32> to vector<8x1xf32>
      %357 = arith.addf %351, %356 : vector<8x1xf32>
      %358 = vector.broadcast %351 : vector<8x1xf32> to vector<8x32xf32>
      %359 = arith.mulf %358, %341 : vector<8x32xf32>
      %360 = arith.truncf %354 : vector<8x4xf32> to vector<8x4xbf16>
      %cst_127 = arith.constant dense<0.000000e+00> : vector<8x32xf32>
      %361 = tpu.matmul %360, %34, %cst_127 {dimension_numbers = #tpu.dot_dimension_numbers<[1], [0], [0], [1], [0, 0, 1, 1], [], []>} : vector<8x4xbf16>, vector<4x32xbf16>, vector<8x32xf32> -> vector<8x32xf32>
      %362 = arith.addf %359, %361 : vector<8x32xf32>
      %363 = tpu.reciprocal %357 {approx = true} : vector<8x1xf32> -> vector<8x1xf32>
      %364 = vector.broadcast %363 : vector<8x1xf32> to vector<8x32xf32>
      %365 = arith.mulf %362, %364 : vector<8x32xf32>
      %366 = arith.addf %334, %365 : vector<8x32xf32>
      %cst_128 = arith.constant dense<0.000000e+00> : vector<8xf32>
      %367 = vector.multi_reduction <add>, %366, %cst_128 [1] : vector<8x32xf32> to vector<8xf32>
      %368 = vector.shape_cast %367 : vector<8xf32> to vector<8x1xf32>
      %cst_129 = arith.constant 3.200000e+01 : f32
      %369 = vector.broadcast %cst_129 : f32 to vector<8x1xf32>
      %370 = arith.divf %368, %369 : vector<8x1xf32>
      %371 = vector.broadcast %370 : vector<8x1xf32> to vector<8x32xf32>
      %372 = arith.subf %366, %371 : vector<8x32xf32>
      %373 = arith.mulf %372, %372 : vector<8x32xf32>
      %cst_130 = arith.constant dense<0.000000e+00> : vector<8xf32>
      %374 = vector.multi_reduction <add>, %373, %cst_130 [1] : vector<8x32xf32> to vector<8xf32>
      %375 = vector.shape_cast %374 : vector<8xf32> to vector<8x1xf32>
      %cst_131 = arith.constant 3.200000e+01 : f32
      %376 = vector.broadcast %cst_131 : f32 to vector<8x1xf32>
      %377 = arith.divf %375, %376 : vector<8x1xf32>
      %378 = vector.broadcast %370 : vector<8x1xf32> to vector<8x32xf32>
      %379 = arith.subf %366, %378 : vector<8x32xf32>
      %cst_132 = arith.constant 9.99999974E-6 : f32
      %380 = vector.broadcast %cst_132 : f32 to vector<8x1xf32>
      %381 = arith.addf %377, %380 : vector<8x1xf32>
      %382 = math.rsqrt %381 : vector<8x1xf32>
      %383 = vector.broadcast %382 : vector<8x1xf32> to vector<8x32xf32>
      %384 = arith.mulf %379, %383 : vector<8x32xf32>
      %385 = arith.mulf %384, %46 : vector<8x32xf32>
      %386 = arith.addf %385, %49 : vector<8x32xf32>
      %c6_i32 = arith.constant 6 : i32
      %387 = arith.index_cast %c6_i32 : i32 to index
      %c0_133 = arith.constant 0 : index
      %c0_134 = arith.constant 0 : index
      %388 = vector.load %arg3[%387, %c0_133, %c0_134] : memref<8x8x32xf32, #tpu.memory_space<vmem>>, vector<1x8x32xf32>
      %389 = vector.shape_cast %388 : vector<1x8x32xf32> to vector<8x32xf32>
      %390 = arith.addf %386, %389 : vector<8x32xf32>
      %391 = arith.truncf %390 : vector<8x32xf32> to vector<8x32xbf16>
      %cst_135 = arith.constant dense<0.000000e+00> : vector<8x32xf32>
      %392 = tpu.matmul %391, %30, %cst_135 {dimension_numbers = #tpu.dot_dimension_numbers<[1], [0], [0], [1], [0, 0, 1, 1], [], []>} : vector<8x32xbf16>, vector<32x32xbf16>, vector<8x32xf32> -> vector<8x32xf32>
      %393 = arith.addf %392, %37 : vector<8x32xf32>
      %cst_136 = arith.constant dense<0.000000e+00> : vector<8x32xf32>
      %394 = tpu.matmul %391, %31, %cst_136 {dimension_numbers = #tpu.dot_dimension_numbers<[1], [0], [0], [1], [0, 0, 1, 1], [], []>} : vector<8x32xbf16>, vector<32x32xbf16>, vector<8x32xf32> -> vector<8x32xf32>
      %395 = arith.addf %394, %40 : vector<8x32xf32>
      %cst_137 = arith.constant dense<0.000000e+00> : vector<8x32xf32>
      %396 = tpu.matmul %391, %32, %cst_137 {dimension_numbers = #tpu.dot_dimension_numbers<[1], [0], [0], [1], [0, 0, 1, 1], [], []>} : vector<8x32xbf16>, vector<32x32xbf16>, vector<8x32xf32> -> vector<8x32xf32>
      %397 = arith.addf %396, %43 : vector<8x32xf32>
      %398 = arith.mulf %393, %395 : vector<8x32xf32>
      %cst_138 = arith.constant dense<0.000000e+00> : vector<8xf32>
      %399 = vector.multi_reduction <add>, %398, %cst_138 [1] : vector<8x32xf32> to vector<8xf32>
      %400 = vector.shape_cast %399 : vector<8xf32> to vector<8x1xf32>
      %401 = arith.truncf %393 : vector<8x32xf32> to vector<8x32xbf16>
      %cst_139 = arith.constant dense<0.000000e+00> : vector<8x4xf32>
      %402 = tpu.matmul %401, %33, %cst_139 {dimension_numbers = #tpu.dot_dimension_numbers<[1], [0], [0], [1], [0, 0, 1, 1], [], []>} : vector<8x32xbf16>, vector<32x4xbf16>, vector<8x4xf32> -> vector<8x4xf32>
      %cst_140 = arith.constant dense<0xFF800000> : vector<8xf32>
      %403 = vector.multi_reduction <maximumf>, %402, %cst_140 [1] : vector<8x4xf32> to vector<8xf32>
      %404 = vector.shape_cast %403 : vector<8xf32> to vector<8x1xf32>
      %405 = arith.maximumf %400, %404 : vector<8x1xf32>
      %406 = arith.subf %400, %405 : vector<8x1xf32>
      %407 = math.exp %406 : vector<8x1xf32>
      %408 = vector.broadcast %405 : vector<8x1xf32> to vector<8x4xf32>
      %409 = arith.subf %402, %408 : vector<8x4xf32>
      %410 = math.exp %409 : vector<8x4xf32>
      %cst_141 = arith.constant dense<0.000000e+00> : vector<8xf32>
      %411 = vector.multi_reduction <add>, %410, %cst_141 [1] : vector<8x4xf32> to vector<8xf32>
      %412 = vector.shape_cast %411 : vector<8xf32> to vector<8x1xf32>
      %413 = arith.addf %407, %412 : vector<8x1xf32>
      %414 = vector.broadcast %407 : vector<8x1xf32> to vector<8x32xf32>
      %415 = arith.mulf %414, %397 : vector<8x32xf32>
      %416 = arith.truncf %410 : vector<8x4xf32> to vector<8x4xbf16>
      %cst_142 = arith.constant dense<0.000000e+00> : vector<8x32xf32>
      %417 = tpu.matmul %416, %34, %cst_142 {dimension_numbers = #tpu.dot_dimension_numbers<[1], [0], [0], [1], [0, 0, 1, 1], [], []>} : vector<8x4xbf16>, vector<4x32xbf16>, vector<8x32xf32> -> vector<8x32xf32>
      %418 = arith.addf %415, %417 : vector<8x32xf32>
      %419 = tpu.reciprocal %413 {approx = true} : vector<8x1xf32> -> vector<8x1xf32>
      %420 = vector.broadcast %419 : vector<8x1xf32> to vector<8x32xf32>
      %421 = arith.mulf %418, %420 : vector<8x32xf32>
      %422 = arith.addf %390, %421 : vector<8x32xf32>
      %cst_143 = arith.constant dense<0.000000e+00> : vector<8xf32>
      %423 = vector.multi_reduction <add>, %422, %cst_143 [1] : vector<8x32xf32> to vector<8xf32>
      %424 = vector.shape_cast %423 : vector<8xf32> to vector<8x1xf32>
      %cst_144 = arith.constant 3.200000e+01 : f32
      %425 = vector.broadcast %cst_144 : f32 to vector<8x1xf32>
      %426 = arith.divf %424, %425 : vector<8x1xf32>
      %427 = vector.broadcast %426 : vector<8x1xf32> to vector<8x32xf32>
      %428 = arith.subf %422, %427 : vector<8x32xf32>
      %429 = arith.mulf %428, %428 : vector<8x32xf32>
      %cst_145 = arith.constant dense<0.000000e+00> : vector<8xf32>
      %430 = vector.multi_reduction <add>, %429, %cst_145 [1] : vector<8x32xf32> to vector<8xf32>
      %431 = vector.shape_cast %430 : vector<8xf32> to vector<8x1xf32>
      %cst_146 = arith.constant 3.200000e+01 : f32
      %432 = vector.broadcast %cst_146 : f32 to vector<8x1xf32>
      %433 = arith.divf %431, %432 : vector<8x1xf32>
      %434 = vector.broadcast %426 : vector<8x1xf32> to vector<8x32xf32>
      %435 = arith.subf %422, %434 : vector<8x32xf32>
      %cst_147 = arith.constant 9.99999974E-6 : f32
      %436 = vector.broadcast %cst_147 : f32 to vector<8x1xf32>
      %437 = arith.addf %433, %436 : vector<8x1xf32>
      %438 = math.rsqrt %437 : vector<8x1xf32>
      %439 = vector.broadcast %438 : vector<8x1xf32> to vector<8x32xf32>
      %440 = arith.mulf %435, %439 : vector<8x32xf32>
      %441 = arith.mulf %440, %46 : vector<8x32xf32>
      %442 = arith.addf %441, %49 : vector<8x32xf32>
      %c7_i32 = arith.constant 7 : i32
      %443 = arith.index_cast %c7_i32 : i32 to index
      %c0_148 = arith.constant 0 : index
      %c0_149 = arith.constant 0 : index
      %444 = vector.load %arg3[%443, %c0_148, %c0_149] : memref<8x8x32xf32, #tpu.memory_space<vmem>>, vector<1x8x32xf32>
      %445 = vector.shape_cast %444 : vector<1x8x32xf32> to vector<8x32xf32>
      %446 = arith.addf %442, %445 : vector<8x32xf32>
      %447 = arith.truncf %446 : vector<8x32xf32> to vector<8x32xbf16>
      %cst_150 = arith.constant dense<0.000000e+00> : vector<8x32xf32>
      %448 = tpu.matmul %447, %30, %cst_150 {dimension_numbers = #tpu.dot_dimension_numbers<[1], [0], [0], [1], [0, 0, 1, 1], [], []>} : vector<8x32xbf16>, vector<32x32xbf16>, vector<8x32xf32> -> vector<8x32xf32>
      %449 = arith.addf %448, %37 : vector<8x32xf32>
      %cst_151 = arith.constant dense<0.000000e+00> : vector<8x32xf32>
      %450 = tpu.matmul %447, %31, %cst_151 {dimension_numbers = #tpu.dot_dimension_numbers<[1], [0], [0], [1], [0, 0, 1, 1], [], []>} : vector<8x32xbf16>, vector<32x32xbf16>, vector<8x32xf32> -> vector<8x32xf32>
      %451 = arith.addf %450, %40 : vector<8x32xf32>
      %cst_152 = arith.constant dense<0.000000e+00> : vector<8x32xf32>
      %452 = tpu.matmul %447, %32, %cst_152 {dimension_numbers = #tpu.dot_dimension_numbers<[1], [0], [0], [1], [0, 0, 1, 1], [], []>} : vector<8x32xbf16>, vector<32x32xbf16>, vector<8x32xf32> -> vector<8x32xf32>
      %453 = arith.addf %452, %43 : vector<8x32xf32>
      %454 = arith.mulf %449, %451 : vector<8x32xf32>
      %cst_153 = arith.constant dense<0.000000e+00> : vector<8xf32>
      %455 = vector.multi_reduction <add>, %454, %cst_153 [1] : vector<8x32xf32> to vector<8xf32>
      %456 = vector.shape_cast %455 : vector<8xf32> to vector<8x1xf32>
      %457 = arith.truncf %449 : vector<8x32xf32> to vector<8x32xbf16>
      %cst_154 = arith.constant dense<0.000000e+00> : vector<8x4xf32>
      %458 = tpu.matmul %457, %33, %cst_154 {dimension_numbers = #tpu.dot_dimension_numbers<[1], [0], [0], [1], [0, 0, 1, 1], [], []>} : vector<8x32xbf16>, vector<32x4xbf16>, vector<8x4xf32> -> vector<8x4xf32>
      %cst_155 = arith.constant dense<0xFF800000> : vector<8xf32>
      %459 = vector.multi_reduction <maximumf>, %458, %cst_155 [1] : vector<8x4xf32> to vector<8xf32>
      %460 = vector.shape_cast %459 : vector<8xf32> to vector<8x1xf32>
      %461 = arith.maximumf %456, %460 : vector<8x1xf32>
      %462 = arith.subf %456, %461 : vector<8x1xf32>
      %463 = math.exp %462 : vector<8x1xf32>
      %464 = vector.broadcast %461 : vector<8x1xf32> to vector<8x4xf32>
      %465 = arith.subf %458, %464 : vector<8x4xf32>
      %466 = math.exp %465 : vector<8x4xf32>
      %cst_156 = arith.constant dense<0.000000e+00> : vector<8xf32>
      %467 = vector.multi_reduction <add>, %466, %cst_156 [1] : vector<8x4xf32> to vector<8xf32>
      %468 = vector.shape_cast %467 : vector<8xf32> to vector<8x1xf32>
      %469 = arith.addf %463, %468 : vector<8x1xf32>
      %470 = vector.broadcast %463 : vector<8x1xf32> to vector<8x32xf32>
      %471 = arith.mulf %470, %453 : vector<8x32xf32>
      %472 = arith.truncf %466 : vector<8x4xf32> to vector<8x4xbf16>
      %cst_157 = arith.constant dense<0.000000e+00> : vector<8x32xf32>
      %473 = tpu.matmul %472, %34, %cst_157 {dimension_numbers = #tpu.dot_dimension_numbers<[1], [0], [0], [1], [0, 0, 1, 1], [], []>} : vector<8x4xbf16>, vector<4x32xbf16>, vector<8x32xf32> -> vector<8x32xf32>
      %474 = arith.addf %471, %473 : vector<8x32xf32>
      %475 = tpu.reciprocal %469 {approx = true} : vector<8x1xf32> -> vector<8x1xf32>
      %476 = vector.broadcast %475 : vector<8x1xf32> to vector<8x32xf32>
      %477 = arith.mulf %474, %476 : vector<8x32xf32>
      %478 = arith.addf %446, %477 : vector<8x32xf32>
      %cst_158 = arith.constant dense<0.000000e+00> : vector<8xf32>
      %479 = vector.multi_reduction <add>, %478, %cst_158 [1] : vector<8x32xf32> to vector<8xf32>
      %480 = vector.shape_cast %479 : vector<8xf32> to vector<8x1xf32>
      %cst_159 = arith.constant 3.200000e+01 : f32
      %481 = vector.broadcast %cst_159 : f32 to vector<8x1xf32>
      %482 = arith.divf %480, %481 : vector<8x1xf32>
      %483 = vector.broadcast %482 : vector<8x1xf32> to vector<8x32xf32>
      %484 = arith.subf %478, %483 : vector<8x32xf32>
      %485 = arith.mulf %484, %484 : vector<8x32xf32>
      %cst_160 = arith.constant dense<0.000000e+00> : vector<8xf32>
      %486 = vector.multi_reduction <add>, %485, %cst_160 [1] : vector<8x32xf32> to vector<8xf32>
      %487 = vector.shape_cast %486 : vector<8xf32> to vector<8x1xf32>
      %cst_161 = arith.constant 3.200000e+01 : f32
      %488 = vector.broadcast %cst_161 : f32 to vector<8x1xf32>
      %489 = arith.divf %487, %488 : vector<8x1xf32>
      %490 = vector.broadcast %482 : vector<8x1xf32> to vector<8x32xf32>
      %491 = arith.subf %478, %490 : vector<8x32xf32>
      %cst_162 = arith.constant 9.99999974E-6 : f32
      %492 = vector.broadcast %cst_162 : f32 to vector<8x1xf32>
      %493 = arith.addf %489, %492 : vector<8x1xf32>
      %494 = math.rsqrt %493 : vector<8x1xf32>
      %495 = vector.broadcast %494 : vector<8x1xf32> to vector<8x32xf32>
      %496 = arith.mulf %491, %495 : vector<8x32xf32>
      %497 = arith.mulf %496, %46 : vector<8x32xf32>
      %498 = arith.addf %497, %49 : vector<8x32xf32>
      %c8_i32 = arith.constant 8 : i32
      %c0_163 = arith.constant 0 : index
      %c0_164 = arith.constant 0 : index
      %499 = vector.load %arg16[%c0_163, %c0_164] : memref<8x32xf32, #tpu.memory_space<vmem>>, vector<8x32xf32>
      tpu.vector_store %arg16[%c0_163, %c0_164], %498 {strides = array<i32>} : memref<8x32xf32, #tpu.memory_space<vmem>>, vector<8x32xf32>,
      %cst_165 = arith.constant 0xFF800000 : f32
      %500 = vector.broadcast %cst_165 : f32 to vector<8x1xf32>
      %c0_166 = arith.constant 0 : index
      %c0_167 = arith.constant 0 : index
      %501 = vector.load %arg19[%c0_166, %c0_167] : memref<8x1xf32, #tpu.memory_space<vmem>>, vector<8x1xf32>
      tpu.vector_store %arg19[%c0_166, %c0_167], %500 {strides = array<i32>} : memref<8x1xf32, #tpu.memory_space<vmem>>, vector<8x1xf32>,
      %cst_168 = arith.constant 0.000000e+00 : f32
      %502 = vector.broadcast %cst_168 : f32 to vector<8x1xf32>
      %c0_169 = arith.constant 0 : index
      %c0_170 = arith.constant 0 : index
      %503 = vector.load %arg20[%c0_169, %c0_170] : memref<8x1xf32, #tpu.memory_space<vmem>>, vector<8x1xf32>
      tpu.vector_store %arg20[%c0_169, %c0_170], %502 {strides = array<i32>} : memref<8x1xf32, #tpu.memory_space<vmem>>, vector<8x1xf32>,
    } else {
    }
    %c0 = arith.constant 0 : index
    %c0_1 = arith.constant 0 : index
    %3 = vector.load %arg16[%c0, %c0_1] : memref<8x32xf32, #tpu.memory_space<vmem>>, vector<8x32xf32>
    %4 = arith.truncf %3 : vector<8x32xf32> to vector<8x32xbf16>
    %c0_2 = arith.constant 0 : index
    %c0_3 = arith.constant 0 : index
    %5 = vector.load %arg14[%c0_2, %c0_3] : memref<32x16xbf16, #tpu.memory_space<vmem>>, vector<32x16xbf16>
    %cst = arith.constant dense<0.000000e+00> : vector<8x16xf32>
    %6 = tpu.matmul %4, %5, %cst {dimension_numbers = #tpu.dot_dimension_numbers<[1], [0], [0], [1], [0, 0, 1, 1], [], []>} : vector<8x32xbf16>, vector<32x16xbf16>, vector<8x16xf32> -> vector<8x16xf32>
    %c0_4 = arith.constant 0 : index
    %c0_5 = arith.constant 0 : index
    %7 = vector.load %arg15[%c0_4, %c0_5] : memref<1x16xf32, #tpu.memory_space<vmem>>, vector<1x16xf32>
    %8 = vector.broadcast %7 : vector<1x16xf32> to vector<8x16xf32>
    %9 = arith.addf %6, %8 : vector<8x16xf32>
    %c0_6 = arith.constant 0 : index
    %c0_7 = arith.constant 0 : index
    %10 = vector.load %arg17[%c0_6, %c0_7] : memref<8x16xf32, #tpu.memory_space<vmem>>, vector<8x16xf32>
    tpu.vector_store %arg17[%c0_6, %c0_7], %9 {strides = array<i32>} : memref<8x16xf32, #tpu.memory_space<vmem>>, vector<8x16xf32>,
    %cst_8 = arith.constant dense<0xFF800000> : vector<8xf32>
    %11 = vector.multi_reduction <maximumf>, %9, %cst_8 [1] : vector<8x16xf32> to vector<8xf32>
    %12 = vector.shape_cast %11 : vector<8xf32> to vector<8x1xf32>
    %c0_9 = arith.constant 0 : index
    %c0_10 = arith.constant 0 : index
    %13 = vector.load %arg19[%c0_9, %c0_10] : memref<8x1xf32, #tpu.memory_space<vmem>>, vector<8x1xf32>
    %14 = arith.maximumf %13, %12 : vector<8x1xf32>
    %c0_11 = arith.constant 0 : index
    %c0_12 = arith.constant 0 : index
    %15 = vector.load %arg20[%c0_11, %c0_12] : memref<8x1xf32, #tpu.memory_space<vmem>>, vector<8x1xf32>
    %16 = arith.subf %13, %14 : vector<8x1xf32>
    %17 = math.exp %16 : vector<8x1xf32>
    %18 = arith.mulf %15, %17 : vector<8x1xf32>
    %19 = vector.broadcast %14 : vector<8x1xf32> to vector<8x16xf32>
    %20 = arith.subf %9, %19 : vector<8x16xf32>
    %21 = math.exp %20 : vector<8x16xf32>
    %cst_13 = arith.constant dense<0.000000e+00> : vector<8xf32>
    %22 = vector.multi_reduction <add>, %21, %cst_13 [1] : vector<8x16xf32> to vector<8xf32>
    %23 = vector.shape_cast %22 : vector<8xf32> to vector<8x1xf32>
    %24 = arith.addf %18, %23 : vector<8x1xf32>
    %c0_14 = arith.constant 0 : index
    %c0_15 = arith.constant 0 : index
    %25 = vector.load %arg20[%c0_14, %c0_15] : memref<8x1xf32, #tpu.memory_space<vmem>>, vector<8x1xf32>
    tpu.vector_store %arg20[%c0_14, %c0_15], %24 {strides = array<i32>} : memref<8x1xf32, #tpu.memory_space<vmem>>, vector<8x1xf32>,
    %c0_16 = arith.constant 0 : index
    %c0_17 = arith.constant 0 : index
    %26 = vector.load %arg19[%c0_16, %c0_17] : memref<8x1xf32, #tpu.memory_space<vmem>>, vector<8x1xf32>
    tpu.vector_store %arg19[%c0_16, %c0_17], %14 {strides = array<i32>} : memref<8x1xf32, #tpu.memory_space<vmem>>, vector<8x1xf32>,
    %c0_i32_18 = arith.constant 0 : i32
    %27 = arith.cmpi eq, %arg1, %c0_i32_18 : i32
    %28 = arith.extui %27 : i1 to i32
    %c0_i32_19 = arith.constant 0 : i32
    %29 = arith.cmpi ne, %28, %c0_i32_19 : i32
    scf.if %29 {
      %c0_20 = arith.constant 0 : index
      %c0_21 = arith.constant 0 : index
      %30 = vector.load %arg19[%c0_20, %c0_21] : memref<8x1xf32, #tpu.memory_space<vmem>>, vector<8x1xf32>
      %c0_22 = arith.constant 0 : index
      %c0_23 = arith.constant 0 : index
      %31 = vector.load %arg20[%c0_22, %c0_23] : memref<8x1xf32, #tpu.memory_space<vmem>>, vector<8x1xf32>
      %32 = math.log %31 : vector<8x1xf32>
      %33 = arith.addf %30, %32 : vector<8x1xf32>
      %c0_24 = arith.constant 0 : index
      %c0_25 = arith.constant 0 : index
      %34 = vector.load %arg18[%c0_24, %c0_25] : memref<8x1xf32, #tpu.memory_space<vmem>>, vector<8x1xf32>
      tpu.vector_store %arg18[%c0_24, %c0_25], %33 {strides = array<i32>} : memref<8x1xf32, #tpu.memory_space<vmem>>, vector<8x1xf32>,
    } else {
    }
    return
  }
  func.func @transform_0(%arg0: i32, %arg1: i32) -> (i32, i32) {
    %c0_i32 = arith.constant 0 : i32
    %c0_i32_0 = arith.constant 0 : i32
    return %arg0, %c0_i32 : i32, i32
  }
  func.func @transform_1(%arg0: i32, %arg1: i32) -> (i32, i32, i32) {
    %c0_i32 = arith.constant 0 : i32
    %c0_i32_0 = arith.constant 0 : i32
    %c0_i32_1 = arith.constant 0 : i32
    return %c0_i32, %arg0, %c0_i32_0 : i32, i32, i32
  }
  func.func @transform_2(%arg0: i32, %arg1: i32) -> (i32, i32) {
    %c0_i32 = arith.constant 0 : i32
    %c0_i32_0 = arith.constant 0 : i32
    %c0_i32_1 = arith.constant 0 : i32
    return %c0_i32, %c0_i32_0 : i32, i32
  }
  func.func @transform_3(%arg0: i32, %arg1: i32) -> (i32, i32) {
    %c0_i32 = arith.constant 0 : i32
    %c0_i32_0 = arith.constant 0 : i32
    %c0_i32_1 = arith.constant 0 : i32
    return %c0_i32, %c0_i32_0 : i32, i32
  }
  func.func @transform_4(%arg0: i32, %arg1: i32) -> (i32, i32) {
    %c0_i32 = arith.constant 0 : i32
    %c0_i32_0 = arith.constant 0 : i32
    %c0_i32_1 = arith.constant 0 : i32
    return %c0_i32, %c0_i32_0 : i32, i32
  }
  func.func @transform_5(%arg0: i32, %arg1: i32) -> (i32, i32) {
    %c0_i32 = arith.constant 0 : i32
    %c0_i32_0 = arith.constant 0 : i32
    %c0_i32_1 = arith.constant 0 : i32
    return %c0_i32, %c0_i32_0 : i32, i32
  }
  func.func @transform_6(%arg0: i32, %arg1: i32) -> (i32, i32) {
    %c0_i32 = arith.constant 0 : i32
    %c0_i32_0 = arith.constant 0 : i32
    %c0_i32_1 = arith.constant 0 : i32
    return %c0_i32, %c0_i32_0 : i32, i32
  }
  func.func @transform_7(%arg0: i32, %arg1: i32) -> (i32, i32) {
    %c0_i32 = arith.constant 0 : i32
    %c0_i32_0 = arith.constant 0 : i32
    %c0_i32_1 = arith.constant 0 : i32
    return %c0_i32, %c0_i32_0 : i32, i32
  }
  func.func @transform_8(%arg0: i32, %arg1: i32) -> (i32, i32) {
    %c0_i32 = arith.constant 0 : i32
    %c0_i32_0 = arith.constant 0 : i32
    %c0_i32_1 = arith.constant 0 : i32
    return %c0_i32, %c0_i32_0 : i32, i32
  }
  func.func @transform_9(%arg0: i32, %arg1: i32) -> (i32, i32) {
    %c0_i32 = arith.constant 0 : i32
    %c0_i32_0 = arith.constant 0 : i32
    %c0_i32_1 = arith.constant 0 : i32
    return %c0_i32, %c0_i32_0 : i32, i32
  }
  func.func @transform_10(%arg0: i32, %arg1: i32) -> (i32, i32) {
    %c0_i32 = arith.constant 0 : i32
    %c0_i32_0 = arith.constant 0 : i32
    %c0_i32_1 = arith.constant 0 : i32
    return %c0_i32, %c0_i32_0 : i32, i32
  }
  func.func @transform_11(%arg0: i32, %arg1: i32) -> (i32, i32) {
    %c0_i32 = arith.constant 0 : i32
    %c0_i32_0 = arith.constant 0 : i32
    %c0_i32_1 = arith.constant 0 : i32
    return %c0_i32, %c0_i32_0 : i32, i32
  }
  func.func @transform_12(%arg0: i32, %arg1: i32) -> (i32, i32) {
    %c0_i32 = arith.constant 0 : i32
    %c0_i32_0 = arith.constant 0 : i32
    return %c0_i32, %arg1 : i32, i32
  }
  func.func @transform_13(%arg0: i32, %arg1: i32) -> (i32, i32) {
    %c0_i32 = arith.constant 0 : i32
    %c0_i32_0 = arith.constant 0 : i32
    return %c0_i32, %arg1 : i32, i32
  }
  func.func @transform_14(%arg0: i32, %arg1: i32) -> (i32, i32) {
    %c0_i32 = arith.constant 0 : i32
    %c0_i32_0 = arith.constant 0 : i32
    return %arg0, %c0_i32 : i32, i32
  }
  func.func @transform_15(%arg0: i32, %arg1: i32) -> (i32, i32) {
    %c0_i32 = arith.constant 0 : i32
    return %arg0, %arg1 : i32, i32
  }
  func.func @transform_16(%arg0: i32, %arg1: i32) -> (i32, i32) {
    %c0_i32 = arith.constant 0 : i32
    %c0_i32_0 = arith.constant 0 : i32
    return %arg0, %c0_i32 : i32, i32
  }
}

</mosaic_0001>

<bundles_post_ra>
// kernel: tpu_custom_call.1
= control target key start
LH: loop header
LB: loop body
LE: loop exit
PB: predicated region body
PF: predicated region fallthrough
CT: control target
= control target key end

     0   :  { %s5064_s0 = inlined_call_operand.vmem [shape: f32[16,32], index: 0, kind: input, shape index: {}]   ;;  %s5065_s1 = inlined_call_operand.hbm [shape: f32[8,16,32], index: 1, kind: input, shape index: {}]   ;;  %s5066_s2 = inlined_call_operand.vmem [shape: bf16[32,4], index: 2, kind: input, shape index: {}]   ;;  %s5067_s3 = inlined_call_operand.hbm [shape: bf16[4,32], index: 3, kind: input, shape index: {}]   ;;  %s5068_s4 = inlined_call_operand.vmem [shape: bf16[32,32], index: 4, kind: input, shape index: {}]   ;;  %s5069_s5 = inlined_call_operand.hbm [shape: f32[1,32], index: 5, kind: input, shape index: {}]   ;;  %s5070_s6 = inlined_call_operand.vmem [shape: bf16[32,32], index: 6, kind: input, shape index: {}]   ;;  %s5071_s7 = inlined_call_operand.hbm [shape: f32[1,32], index: 7, kind: input, shape index: {}]   ;;  %s5072_s8 = inlined_call_operand.vmem [shape: bf16[32,32], index: 8, kind: input, shape index: {}]   ;;  %s5073_s9 = inlined_call_operand.vmem [shape: f32[1,32], index: 9, kind: input, shape index: {}]   ;;  %s5074_s10 = inlined_call_operand.vmem [shape: f32[1,32], index: 10, kind: input, shape index: {}]   ;;  %s5075_s11 = inlined_call_operand.vmem [shape: f32[1,32], index: 11, kind: input, shape index: {}]   ;;  %s5076_s12 = inlined_call_operand.vmem [shape: bf16[32,16], index: 12, kind: input, shape index: {}]   ;;  %s5077_s13 = inlined_call_operand.vmem [shape: f32[1,16], index: 13, kind: input, shape index: {}]   ;;  %s5078_s14 = inlined_call_operand.hbm [shape: f32[16,32], index: 14, kind: output, shape index: {0}]   ;;  %s5079_s15 = inlined_call_operand.hbm [shape: f32[16,16], index: 15, kind: output, shape index: {1}]   ;;  %s5080_s16 = inlined_call_operand.vmem [shape: f32[16,1], index: 16, kind: output, shape index: {2}]  }
   0x1   :  { %5100 = sst [smem:[#allocation24_spill]] %s5064_s0 }
   0x2   :  { %5101 = sst [smem:[#allocation25_spill]] %s5065_s1 }
   0x3   :  { %5102 = sst [smem:[#allocation26_spill]] %s5066_s2 }
   0x4   :  { %5103 = sst [smem:[#allocation27_spill]] %s5067_s3 }
   0x5   :  { %5104 = sst [smem:[#allocation28_spill]] %s5068_s4 }
   0x6   :  { %5105 = sst [smem:[#allocation29_spill]] %s5069_s5 }
   0x7   :  { %5106 = sst [smem:[#allocation30_spill]] %s5070_s6 }
   0x8   :  { %5107 = sst [smem:[#allocation31_spill]] %s5074_s10 }
   0x9   :  { %5108 = sst [smem:[#allocation32_spill]] %s5075_s11 }
   0xa   :  { %5109 = sst [smem:[#allocation33_spill]] %s5076_s12 }
   0xb   :  { %5110 = sst [smem:[#allocation34_spill]] %s5077_s13 }
   0xc   :  { %5111 = sst [smem:[#allocation35_spill]] %s5078_s14 }
   0xd   :  { %5112 = sst [smem:[#allocation36_spill]] %s5079_s15 }
   0xe   :  { %5113 = sst [smem:[#allocation37_spill]] %s5080_s16 }
   0xf   :  { %22 = vsyncpa [#allocation5], 0 }
  0x10   :  { %24 = vsyncpa [#allocation5 + $0x1], 0 }
  0x11   :  { %25 = vsyncpa [#allocation8], 0 }
  0x12   :  { %26 = vsyncpa [#allocation11], 0 }
  0x13   :  { %27 = vsyncpa [#allocation6], 0 }
  0x14   :  { %29 = vsyncpa [#allocation6 + $0x1], 0 }
  0x15   :  { %30 = vsyncpa [#allocation14], 0 }
  0x16   :  { %32 = vsyncpa [#allocation14 + $0x1], 0  ;;  %s4201_s21 = smov 0   ;;  %s4203_s22 = smov 0  }
  0x17   :  { %s4205_s23 = smov 0   ;;  %s4207_s24 = smov 0  }
  0x18   :  { %s4209_s25 = smov 0   ;;  %s4211_s26 = smov 0  }
  0x19 LB: > { %5114 = sst [smem:[#allocation20_spill]] %s4081_s21  ;;  %s3148_s27 = sadd.s32 4294967295, %s4101_s26   ;;  %s4101_s26 = sphi %s4211_s26, %s38_s26   ;;  %s4097_s25 = sphi %s4209_s25, %s5158_s25   ;;  %s4093_s24 = sphi %s4207_s24, %s5157_s24   ;;  %s4089_s23 = sphi %s4205_s23, %s5156_s23   ;;  %s4085_s22 = sphi %s4203_s22, %s5155_s22   ;;  %s4081_s21 = sphi %s4201_s21, %s5154_s21  }
  0x1a   : > { %5115 = sst [smem:[#allocation21_spill]] %s4101_s26  ;;  %s3149_s28 = sadd.s32 4294967294, %s4101_s26  }
  0x1b   : > { %p90_p0 = scmp.ne.s32.totalorder %s4089_s23, %s4085_s22  ;;  %p91_p1 = scmp.eq.s32.totalorder %s4101_s26, 0 }
  0x1c   : > { %p96_p2 = scmp.ne.s32.totalorder %s4085_s22, %s4081_s21  ;;  %p4238_p3 = scmp.eq.s32.totalorder %s3148_s27, 0 }
  0x1d   : > { %p4242_p4 = por %p91_p1, %p90_p0  ;;  %p382_p5 = scmp.eq.s32.totalorder %s3148_s27, 1 }
  0x1e   : > { %s5116_s29 = scalar_select %p4238_p3, 1, 0 }
  0x1f   : > { %p4248_p6 = por %p4238_p3, %p96_p2  ;;  %p388_p7 = scmp.eq.s32.totalorder %s3149_s28, 1 }
  0x20   : > { %p4252_p8 = por %p382_p5, %p90_p0  ;;  %p3150_p9 = scmp.ge.s32.totalorder %s4101_s26, 1 }
  0x21   : > { %s5118_s0 = scalar_select %p4248_p6, 1, 0 }
  0x22   : > { %s5119_s17 = scalar_select %p4252_p8, 1, 0 }
  0x23   : > { %p4257_p10 = por %p388_p7, %p96_p2  ;;  %p449_p11 = scmp.lt.s32.totalorder %s4101_s26, 3 }
  0x24   : > { %5120 = sst [smem:[#allocation22_spill]] %s5119_s17  ;;  %s4103_s20 = smov [#allocation7]  }
  0x25   : > { %s5121_s18 = scalar_select %p4257_p10, 1, 0 }
  0x26   : > { %p4262_p12 = pnand %p3150_p9, %p449_p11  ;;  %s465_s27 = sshll.u32 %s4103_s20, 4  ;;  %s466_s27 = int_to_ptr.vmem [resolvable:$true] %s465_s27 }
  0x27   : > { %5122 = sst [smem:[#allocation23_spill]] %s5121_s18  ;;  %p3707_p1 = scmp.lt.s32.totalorder %s4101_s26, 2 }
  0x28   : > { %s5123_s19 = scalar_select %p4262_p12, 1, 0 }
  0x29   : > { %p3683_p0 = pneg %p4262_p12  ;;  %p4278_p2 = pnand %p3707_p1, %p4242_p4 }
  0x2a   : > { %s4104_s21 = smov [#allocation9]   ;;  %s4105_s15 = smov [#allocation10]  }
  0x2b   : > { %p4272_p5 = pnand %p3683_p0, %p4238_p3  ;;  %s479_s16 = sshll.u32 %s4104_s21, 4  ;;  %s480_s16 = int_to_ptr.vmem [resolvable:$true] %s479_s16 }
  0x2c   : > { %s5125_s18 = scalar_select %p4278_p2, 1, 0 }
  0x2d   : > { %s493_s20 = sshll.u32 %s4105_s15, 4  ;;  %s5126_s3 = sld [smem:[#allocation27_spill]]  ;;  %s4306_s20 = int_to_ptr.vmem [resolvable:$true] %s493_s20 }
  0x2e   : > { %p4290_p9 = pneg %p4272_p5 }
  0x33   : > { %s3865_s13 = scalar_lea.hbm %s5126_s3, 32 }
  0x34   : > { %p3866_p7 = scmp.ne.s32.totalorder %s5126_s3, %s3865_s13  ;;  %p3872_p0 = scmp.lt.u32.totalorder %s3865_s13, %s5126_s3 }
  0x36   : > { %p3868_p4 = pnand %p4290_p9, %p3866_p7 }
  0x38   : > { %p3869_p11 = pneg %p3868_p4 }
  0x3a   : > { %p3874_p1 = pnand %p3872_p0, %p3869_p11 }
  0x3c   : > { %3877 = shalt.err (!%p3874_p1)
}
  0x3d   : > { %s3878_s14 = scalar_lea.vmem %s466_s27, 32  ;;  %p3886_p3 = scmp.lt.s32.totalorder %s466_s27, %s466_s27 }
  0x3e   : > { %p3879_p13 = scmp.ne.s32.totalorder %s466_s27, %s3878_s14  ;;  %p3887_p6 = scmp.lt.s32.totalorder %s3878_s14, %s3878_s14 }
  0x40   : > { %p3881_p10 = pnand %p3879_p13, %p4290_p9  ;;  %p3888_p12 = por %p3887_p6, %p3886_p3 }
  0x42   : > { %p3882_p8 = pneg %p3881_p10 }
  0x44   : > { %p3889_p2 = pnand %p3888_p12, %p3882_p8 }
  0x46   : > { %3892 = shalt.err (!%p3889_p2)
}
  0x47   : > { %3686 = dma.hbm_to_vmem [thread:$0]  (!%p4272_p5), %s5126_s3, 32, %s466_s27, [#allocation8]  }
  0x48   : > { %s5128_s5 = sld [smem:[#allocation29_spill]] }
  0x4e   : > { %s3893_s26 = scalar_lea.hbm %s5128_s5, 16 }
  0x4f   : > { %p3894_p3 = scmp.ne.s32.totalorder %s5128_s5, %s3893_s26  ;;  %p3900_p10 = scmp.lt.u32.totalorder %s3893_s26, %s5128_s5 }
  0x51   : > { %p3896_p6 = pnand %p3894_p3, %p4290_p9 }
  0x53   : > { %p3897_p8 = pneg %p3896_p6 }
  0x55   : > { %p3902_p12 = pnand %p3900_p10, %p3897_p8 }
  0x57   : > { %3905 = shalt.err (!%p3902_p12)
}
  0x58   : > { %s3906_s27 = scalar_lea.vmem %s480_s16, 16  ;;  %s3913_s12 = scalar_lea.vmem %s480_s16, 32 }
  0x59   : > { %p3907_p13 = scmp.ne.s32.totalorder %s480_s16, %s3906_s27  ;;  %p3914_p4 = scmp.lt.s32.totalorder %s480_s16, %s480_s16 }
  0x5a   : > { %p3915_p11 = scmp.lt.s32.totalorder %s3913_s12, %s3906_s27 }
  0x5b   : > { %p3909_p2 = pnand %p3907_p13, %p4290_p9 }
  0x5c   : > { %p3916_p0 = por %p3915_p11, %p3914_p4 }
  0x5d   : > { %p3910_p7 = pneg %p3909_p2 }
  0x5f   : > { %p3917_p1 = pnand %p3916_p0, %p3910_p7 }
  0x61   : > { %3920 = shalt.err (!%p3917_p1)
}
  0x62   : > { %3689 = dma.hbm_to_vmem [thread:$0]  (!%p4272_p5), %s5128_s5, 16, %s480_s16, [#allocation8]  }
  0x63   : > { %s3921_s26 = scalar_lea.hbm %s5071_s7, 16 }
  0x64   : > { %p3922_p3 = scmp.ne.s32.totalorder %s5071_s7, %s3921_s26  ;;  %p3928_p10 = scmp.lt.u32.totalorder %s3921_s26, %s5071_s7 }
  0x66   : > { %p3924_p6 = pnand %p3922_p3, %p4290_p9 }
  0x68   : > { %p3925_p8 = pneg %p3924_p6 }
  0x6a   : > { %p3930_p12 = pnand %p3928_p10, %p3925_p8 }
  0x6c   : > { %3933 = shalt.err (!%p3930_p12)
}
  0x6d   : > { %s3934_s16 = scalar_lea.vmem %s4306_s20, 16  ;;  %s3941_s12 = scalar_lea.vmem %s4306_s20, 32 }
  0x6e   : > { %p3935_p13 = scmp.ne.s32.totalorder %s4306_s20, %s3934_s16  ;;  %p3942_p4 = scmp.lt.s32.totalorder %s4306_s20, %s4306_s20 }
  0x6f   : > { %p3943_p11 = scmp.lt.s32.totalorder %s3941_s12, %s3934_s16 }
  0x70   : > { %p3937_p2 = pnand %p3935_p13, %p4290_p9 }
  0x71   : > { %p3944_p0 = por %p3943_p11, %p3942_p4 }
  0x72   : > { %p3938_p7 = pneg %p3937_p2 }
  0x74   : > { %p3945_p1 = pnand %p3944_p0, %p3938_p7 }
  0x76   : > { %3948 = shalt.err (!%p3945_p1)
}
  0x77   : > { %3692 = dma.hbm_to_vmem [thread:$0]  (!%p4272_p5), %s5071_s7, 16, %s4306_s20, [#allocation11]  }
  0x78   : > { %s83_s30 = sadd.s32 1, %s4089_s23  ;;  %s536_s10 = sand.u32 1, %s4089_s23  }
  0x79   : > { %s50_s13 = sadd.s32 1, %s4097_s25  ;;  %s3157_s26 = sshll.u32 %s536_s10, 6 }
  0x7a   : > { %p52_p9 = scmp.ge.s32.totalorder %s50_s13, 2  ;;  %s3158_s17 = sshll.u32 %s4097_s25, 7 }
  0x7b   : > { %s5129_s1 = sld [smem:[#allocation25_spill]]  ;;  %s540_s20 = scalar_lea.vmem [#allocation4], %s3157_s26 }
  0x7c   : > { %s5160_s13 = smov (%p52_p9, %s50_s13), 0  ;;  %s546_s27 = sshll.u32 %s540_s20, 4  ;;  %s4363_s27 = int_to_ptr.vmem [resolvable:$true] %s546_s27 }
  0x7d   : > { %s80_s16 = ssub.s32 %s4097_s25, %s5160_s13  ;;  %s4368_s15 = scalar_lea.sflag [#allocation5], %s536_s10 }
  0x7e   : > { %p81_p5 = scmp.eq.s32.totalorder %s80_s16, 0  ;;  %p5130_p6 = scmp.ne.s32.totalorder %s5125_s18, 0 }
  0x80   : > { %s4366_s12 = scalar_select %p81_p5, %s4089_s23, %s83_s30  }
  0x81   : > { %s4359_s14 = scalar_lea.hbm %s5129_s1, %s3158_s17  ;;  %p3951_p8 = pneg %p5130_p6 }
  0x82   : > { %s3949_s11 = scalar_lea.hbm %s4359_s14, 1024  ;;  %s3954_s28 = scalar_lea.hbm %s5129_s1, 2048 }
  0x83   : > { %p3950_p3 = scmp.ne.s32.totalorder %s4359_s14, %s3949_s11  ;;  %p3955_p13 = scmp.lt.u32.totalorder %s4359_s14, %s5129_s1 }
  0x84   : > { %p3956_p2 = scmp.lt.u32.totalorder %s3954_s28, %s3949_s11  ;;  %p3958_p4 = scmp.lt.u32.totalorder %s3949_s11, %s4359_s14 }
  0x85   : > { %p3952_p10 = pnand %p3951_p8, %p3950_p3 }
  0x86   : > { %p3957_p7 = por %p3956_p2, %p3955_p13 }
  0x87   : > { %p3953_p12 = pneg %p3952_p10 }
  0x88   : > { %p3959_p11 = por %p3958_p4, %p3957_p7 }
  0x8a   : > { %p3960_p0 = pnand %p3959_p11, %p3953_p12 }
  0x8c   : > { %3963 = shalt.err (!%p3960_p0)
}
  0x8d   : > { %s3964_s30 = scalar_lea.vmem %s4363_s27, 1024  ;;  %s4106_s10 = smov [#allocation4]  }
  0x8e   : > { %p3965_p1 = scmp.ne.s32.totalorder %s4363_s27, %s3964_s30  ;;  %s3969_s16 = sshll.u32 %s4106_s10, 4  ;;  %s3970_s16 = int_to_ptr.vmem [resolvable:$false] %s3969_s16 }
  0x8f   : > { %s3971_s17 = scalar_lea.vmem %s3970_s16, 2048  ;;  %p3972_p3 = scmp.lt.s32.totalorder %s4363_s27, %s3970_s16 }
  0x90   : > { %p3967_p9 = pnand %p3965_p1, %p3951_p8  ;;  %p3973_p10 = scmp.lt.s32.totalorder %s3971_s17, %s3964_s30 }
  0x92   : > { %p3968_p5 = pneg %p3967_p9  ;;  %p3974_p13 = por %p3973_p10, %p3972_p3 }
  0x94   : > { %p3975_p2 = pnand %p3974_p13, %p3968_p5 }
  0x96   : > { %3978 = shalt.err (!%p3975_p2)
}
  0x97   : > { %s4107_s11 = smov 256   ;;  %s4108_s26 = smov 128  }
  0x98   : > { %s4109_s28 = smov 8   ;;  %p5131_p8 = scmp.ne.s32.totalorder %s5123_s19, 0 }
  0x99   : > { %3696 = dma.hbm_to_vmem [thread:$0]  (!%p5130_p6), %s4359_s14, 1024, %s4363_s27, %s4368_s15, %s4107_s11, %s4108_s26, %s4109_s28  }
  0x9a   : > { %558 = sbr.rel (%p5131_p8) target bundleno = 9866 (0x268a), region = 76  ;;  %s4399_s21 = sand.u32 (!%p5131_p8), 1, %s4085_s22  }
  0x9b   : > { %s3160_s20 = sshll.u32 (!%p5131_p8), %s4399_s21, 6  ;;  %s561_s30 = scalar_lea.sflag (!%p5131_p8), [#allocation5], %s4399_s21 }
  0x9c   : > { %s4403_s10 = scalar_lea.vmem (!%p5131_p8), [#allocation4], %s3160_s20  ;;  %p5132_p12 = scmp.ne.s32.totalorder (!%p5131_p8), %s5118_s0, 0 }
  0xa1   : > { %4060 = dma.done.wait (%p5132_p12), %s561_s30, 1024  }
  0xa2   : > { %4062 = vsyncadd (%p5132_p12), %s561_s30, 4294966272  ;;  %p5133_p6 = scmp.ne.s32.totalorder %s5116_s29, 0 }
  0xa4   : > { %4064 = dma.done.wait (%p5133_p6), [#allocation8], 48  }
  0xa5   : > { %4066 = vsyncadd (%p5133_p6), [#allocation8], 4294967248 }
  0xa6   : > { %4068 = dma.done.wait (%p5133_p6), [#allocation11], 16  }
  0xa7   : > { %4070 = vsyncadd (%p5133_p6), [#allocation11], 4294967280  ;;  %p645_p7 = scmp.lt.s32.totalorder %s4093_s24, 1  ;;  %v4110_v0 = vmov 0.0   ;;  %vm4111_vm0 = vmmov 0   ;;  %s5134_s4 = sld [smem:[#allocation28_spill]] }
  0xa8   : > { %3353 = vmatprep.subr.bf16.mxu0 %v4110_v0  ;;  %3361 = vmatprep.subr.bf16.mxu1 %v4110_v0  ;;  %s5135_s6 = sld [smem:[#allocation30_spill]]  ;;  %s5136_s17 = sld [smem:[#allocation24_spill]]  ;;  %v718_v6 = vld [vmem:[%s4403_s10] sm:$0xff]  ;;  %vm733_vm1 = vcmask 261120   ;;  %v4503_v26 = vld [vmem:[%s5072_s8] sm:$0xff]   ;;  %v4509_v27 = vld [vmem:[%s5072_s8 + $0x8] sm:$0xff]  }
  0xa9   : > { %3357 = vmatprep.mubr.msk.bf16.mxu0 %vm4111_vm0, %v4110_v0  ;;  %3365 = vmatprep.mubr.msk.bf16.mxu1 %vm4111_vm0, %v4110_v0  ;;  %s4425_s0 = scalar_select %p645_p7, %s4093_s24, 1  ;;  %v4486_v11 = vld [vmem:[#allocation9] ss:$0 sm:$0xff]  ;;  %v4488_v12 = vld [vmem:[#allocation10] ss:$0 sm:$0xff]  ;;  %vm941_vm2 = vcmask 31744  }
  0xaa   : > { %s5137_s2 = sld [smem:[#allocation26_spill]]  ;;  %v681_v33 = vld [vmem:[#allocation7] sm:$0x3]  ;;  %vm961_vm3 = vcmask 1041408   ;;  %v4525_v46 = vld [vmem:[%s5073_s9] ss:$0 sm:$0xff] }
  0xab   : > { %s5098_s29 = sshll.u32 %s4425_s0, 3  ;;  %v4518_v34 = vsel %vm961_vm3, %v681_v33, 0  ;;  %s5138_s18 = sld [smem:[#allocation31_spill]]  ;;  %vm2797_vm4 = vcmask 7168   ;;  %vm2869_vm5 = vcmask 130048  }
  0xac   : > { %s5139_s27 = sld [smem:[#allocation32_spill]]  ;;  %s3164_s20 = sshll.u32 %s4399_s21, 3  ;;  %2799 = vst.msk [vmem:[#allocation3] sm:$0xff] %vm2797_vm4, %v4110_v0 }
  0xad   : > { %v4431_v1 = vld [vmem:[%s5134_s4] sm:$0xff]   ;;  %v4447_v3 = vld [vmem:[%s5134_s4 + $0x8] sm:$0xff]   ;;  %s4950_s30 = scalar_lea.vmem [#allocation12], %s3164_s20  ;;  %s5141_s15 = sld [smem:[#allocation34_spill]] }
  0xae   : > { %v4436_v2 = vld [vmem:[%s5135_s6] sm:$0xff]   ;;  %s648_s11 = scalar_lea.vmem %s5136_s17, %s5098_s29  ;;  %3354 = vmatpush3.bf16.msra.mxu0 %v4431_v1  ;;  %v4454_v4 = vld [vmem:[%s5135_s6 + $0x8] sm:$0xff]   ;;  %s4963_s16 = scalar_lea.vmem [#allocation13], %s3164_s20 }
  0xaf   : > { %3362 = vmatpush3.bf16.msra.mxu1 %v4436_v2  ;;  %3355 = vmatprep.subr.bf16.mxu0 %v4110_v0  ;;  %v717_v5 = vld [vmem:[%s648_s11] sm:$0xff]  ;;  %s5140_s11 = sld [smem:[#allocation33_spill]]  ;;  %s5099_s17 = sshll.u32 %s4093_s24, 7 }
  0xb0   : > { %3363 = vmatprep.subr.bf16.mxu1 %v4110_v0  ;;  %v4458_v7 = vadd.f32 %v718_v6, %v717_v5  ;;  %v4463_v8 = vld [vmem:[%s5137_s2] sm:$0xff]   ;;  %v4482_v10 = vld [vmem:[%s5137_s2 + $0x8] sm:$0xff]   ;;  %s2928_s26 = sshll.u32 %s4950_s30, 4  ;;  %s5143_s19 = sld [smem:[#allocation35_spill]]  ;;  %s2929_s26 = int_to_ptr.vmem [resolvable:$true] %s2928_s26 }
  0xb1   : > { %s3979_s29 = scalar_lea.vmem %s2929_s26, 128  ;;  %s4114_s1 = smov [#allocation12]  }
  0xb2   : > { %3356 = vmatpush3.bf16.msra.mxu0 %v4447_v3  ;;  %v720_v9 = vpack.c.bf16 %v4458_v7, %v4458_v7  ;;  %p3980_p4 = scmp.ne.s32.totalorder %s2929_s26, %s3979_s29 }
  0xb3   : > { %3364 = vmatpush3.bf16.msra.mxu1 %v4454_v4  ;;  %3369 = vmatprep.subr.bf16.mxu0 %v4110_v0 }
  0xb4   : > { %3377 = vmatprep.subr.bf16.mxu1 %v4110_v0 }
  0xb5   : > { %3358 = vmatmul.mubr.msk.bf16.vlgmr.msra.gmra.mrb[0].mxu0 %vm733_vm1, %v720_v9 }
  0xb6   : > { %3366 = vmatmul.mubr.msk.bf16.vlgmr.msra.gmra.mrb[0].mxu1 %vm733_vm1, %v720_v9  ;;  %3373 = vmatprep.mubr.msk.bf16.mxu0 %vm4111_vm0, %v4110_v0  ;;  %s4985_s14 = scalar_lea.hbm %s5143_s19, %s5099_s17 }
  0xb7   : > { %3378 = vmatpush3.bf16.msra.mxu1 %v4463_v8  ;;  %3381 = vmatprep.mubr.msk.bf16.mxu1 %vm4111_vm0, %v4110_v0 }
  0xb8   : > { %3379 = vmatprep.subr.bf16.mxu1 %v4110_v0  ;;  %3370 = vmatpush3.bf16.msra.mxu0 %v4503_v26 }
  0xb9   : > { %3371 = vmatprep.subr.bf16.mxu0 %v4110_v0 }
  0xbb   : > { %3380 = vmatpush3.bf16.msra.mxu1 %v4482_v10 }
  0xbc   : > { %3391 = vmatprep.subr.bf16.mxu1 %v4110_v0  ;;  %3372 = vmatpush3.bf16.msra.mxu0 %v4509_v27 }
  0xbd   : > { %3385 = vmatprep.subr.bf16.mxu0 %v4110_v0 }
  0xbf   : > { %3374 = vmatmul.mubr.msk.bf16.vlgmr.msra.gmra.mrb[4].mxu0 %vm733_vm1, %v720_v9 }
  0xc0   : > { %3387 = vmatprep.mubr.msk.bf16.mxu0 %vm4111_vm0, %v4110_v0  ;;  %3386 = vmatpush3.bf16.msra.mxu0 %v4518_v34 }
  0xc1   : > { %3399 = vmatprep.subr.bf16.mxu0 %v4110_v0 }
 0x188   : > { %v771_v13 = vpop.f32.mrb[0].mxu0 }
 0x189   : > { %v772_v14 = vadd.f32 %v4486_v11, %v771_v13  ;;  %v823_v15 = vpop.f32.mrb[0].mxu1  ;;  %v3359_v16 = vpop.f32.mrb[1].mxu0 }
 0x18a   : > { %v824_v17 = vadd.f32 %v4488_v12, %v823_v15  ;;  %v774_v18 = vpop.f32.mrb[2].mxu0  ;;  %v3367_v19 = vpop.f32.mrb[1].mxu1 }
 0x18b   : > { %v885_v20 = vpack.c.bf16 %v772_v14, %v772_v14  ;;  %v3360_v21 = vpop.f32.mrb[3].mxu0  ;;  %v826_v22 = vpop.f32.mrb[2].mxu1 }
 0x18c   : > { %v881_v23 = vmul.f32 %v824_v17, %v772_v14  ;;  %v3368_v24 = vpop.f32.mrb[3].mxu1  ;;  %v3186_v22 = vld [vmem:[%s4403_s10 + $0x8] sm:$0xff] }
 0x18d   : > { %3382 = vmatmul.mubr.msk.bf16.vlgmr.msra.gmra.mrb[4].mxu1 %vm733_vm1, %v885_v20  ;;  %v4547_v20 = vld [vmem:[%s5139_s27] ss:$0 sm:$0xff] }
 0x18e   : > { %v882_v25 = vsel %vm733_vm1, %v881_v23, 0.0  ;;  %3392 = vmatpush3.bf16.msra.mxu1 %v4431_v1  ;;  %3395 = vmatprep.mubr.msk.bf16.mxu1 %vm4111_vm0, %v4110_v0 }
 0x18f   : > { %883 = vadd.xlane.f32.xlu0 %v882_v25  ;;  %3393 = vmatprep.subr.bf16.mxu1 %v4110_v0 }
 0x192   : > { %3394 = vmatpush3.bf16.msra.mxu1 %v4447_v3  ;;  %v875_v35 = vpop.f32.mrb[4].mxu0 }
 0x193   : > { %3407 = vmatprep.subr.bf16.mxu1 %v4110_v0  ;;  %v3375_v36 = vpop.f32.mrb[5].mxu0  ;;  %v876_v47 = vadd.f32 %v4525_v46, %v875_v35 }
 0x194   : > { %v878_v37 = vpop.f32.mrb[6].mxu0 }
 0x195   : > { %v3376_v38 = vpop.f32.mrb[7].mxu0 }
 0x21c   : > { %v884_v39 = vpop.xlane.xlu0 %883 }
 0x260   : > { %v935_v28 = vpop.f32.mrb[4].mxu1 }
 0x261   : > { %v3383_v29 = vpop.f32.mrb[5].mxu1  ;;  %v942_v30 = vsel %vm941_vm2, %v935_v28, -inf }
 0x262   : > { %v938_v31 = vpop.f32.mrb[6].mxu1  ;;  %943 = vmax.xlane.f32.xlu0 %v942_v30 }
 0x263   : > { %v3384_v32 = vpop.f32.mrb[7].mxu1 }
 0x2ef   : > { %v944_v40 = vpop.xlane.xlu0 %943 }
 0x2f0   : > { %v945_v41 = vmax.f32 %v884_v39, %v944_v40 }
 0x2f2   : > { %v946_v42 = vsub.f32 %v884_v39, %v945_v41  ;;  %v949_v43 = vsub.f32 %v935_v28, %v945_v41 }
 0x2f4   : > { %v947_v44 = vmul.f32 1.442695, %v946_v42  ;;  %v950_v45 = vmul.f32 1.442695, %v949_v43 }
 0x2f6   : > { %3782 = vpow2.f32 %v947_v44 }
 0x2f7   : > { %3784 = vpow2.f32 %v950_v45 }
 0x300   : > { %v3783_v48 = vpop.eup %3782 }
 0x301   : > { %v3785_v49 = vpop.eup %3784  ;;  %v956_v50 = vmul.f32 %v3783_v48, %v876_v47 }
 0x302   : > { %v952_v51 = vsel %vm941_vm2, %v3785_v49, 0.0  ;;  %v957_v52 = vpack.c.bf16 %v3785_v49, %v3785_v49 }
 0x303   : > { %953 = vadd.xlane.f32.xlu1 %v952_v51 }
 0x304   : > { %3388 = vmatmul.mubr.msk.bf16.vlgmr.msra.gmra.mrb[8].mxu0 %vm941_vm2, %v957_v52 }
 0x305   : > { %3400 = vmatpush3.bf16.msra.mxu0 %v4436_v2  ;;  %3403 = vmatprep.mubr.msk.bf16.mxu0 %vm4111_vm0, %v4110_v0 }
 0x306   : > { %3401 = vmatprep.subr.bf16.mxu0 %v4110_v0 }
 0x309   : > { %3402 = vmatpush3.bf16.msra.mxu0 %v4454_v4 }
 0x30a   : > { %3415 = vmatprep.subr.bf16.mxu0 %v4110_v0 }
 0x390   : > { %v954_v53 = vpop.xlane.xlu1 %953 }
 0x391   : > { %v955_v54 = vadd.f32 %v3783_v48, %v954_v53 }
 0x393   : > { %3786 = vrcp.f32 %v955_v54 }
 0x39d   : > { %v3787_v58 = vpop.eup %3786 }
 0x3d7   : > { %v999_v55 = vpop.f32.mrb[8].mxu0 }
 0x3d8   : > { %v1005_v56 = vadd.f32 %v999_v55, %v956_v50  ;;  %v3389_v57 = vpop.f32.mrb[9].mxu0 }
 0x3d9   : > { %v1002_v59 = vpop.f32.mrb[10].mxu0 }
 0x3da   : > { %v1007_v60 = vmul.f32 %v3787_v58, %v1005_v56  ;;  %v3390_v61 = vpop.f32.mrb[11].mxu0 }
 0x3dc   : > { %v1008_v62 = vadd.f32 %v1007_v60, %v4458_v7  ;;  %v4542_v7 = vld [vmem:[%s5138_s18] ss:$0 sm:$0xff] }
 0x3de   : > { %v1009_v63 = vsel %vm733_vm1, %v1008_v62, 0.0 }
 0x3df   : > { %1010 = vadd.xlane.f32.xlu1 %v1009_v63 }
 0x46c   : > { %v1011_v5 = vpop.xlane.xlu1 %1010 }
 0x46d   : > { %v1013_v6 = vmul.f32 0.03125, %v1011_v5 }
 0x46f   : > { %v1014_v9 = vsub.f32 %v1008_v62, %v1013_v6 }
 0x471   : > { %v1015_v13 = vmul.f32 %v1014_v9, %v1014_v9 }
 0x473   : > { %v1016_v14 = vsel %vm733_vm1, %v1015_v13, 0.0 }
 0x474   : > { %1017 = vadd.xlane.f32.xlu0 %v1016_v14 }
 0x501   : > { %v1018_v15 = vpop.xlane.xlu0 %1017 }
 0x502   : > { %v1019_v16 = vmul.f32 0.03125, %v1018_v15 }
 0x504   : > { %v1020_v17 = vadd.f32 1e-05, %v1019_v16 }
 0x506   : > { %3788 = vrsqrt.f32 %v1020_v17 }
 0x510   : > { %v3789_v18 = vpop.eup %3788 }
 0x511   : > { %v1022_v19 = vmul.f32 %v3789_v18, %v1014_v9 }
 0x513   : > { %v1023_v21 = vmul.f32 %v4542_v7, %v1022_v19 }
 0x515   : > { %v1024_v23 = vadd.f32 %v4547_v20, %v1023_v21 }
 0x517   : > { %v4552_v24 = vadd.f32 %v3186_v22, %v1024_v23 }
 0x519   : > { %v1028_v25 = vpack.c.bf16 %v4552_v24, %v4552_v24 }
 0x51b   : > { %3396 = vmatmul.mubr.msk.bf16.vlgmr.msra.gmra.mrb[8].mxu1 %vm733_vm1, %v1028_v25  ;;  %3404 = vmatmul.mubr.msk.bf16.vlgmr.msra.gmra.mrb[12].mxu0 %vm733_vm1, %v1028_v25 }
 0x51c   : > { %3408 = vmatpush3.bf16.msra.mxu1 %v4503_v26  ;;  %3411 = vmatprep.mubr.msk.bf16.mxu1 %vm4111_vm0, %v4110_v0 }
 0x51d   : > { %3409 = vmatprep.subr.bf16.mxu1 %v4110_v0  ;;  %3416 = vmatpush3.bf16.msra.mxu0 %v4463_v8 }
 0x51e   : > { %3417 = vmatprep.subr.bf16.mxu0 %v4110_v0  ;;  %3419 = vmatprep.mubr.msk.bf16.mxu0 %vm4111_vm0, %v4110_v0 }
 0x520   : > { %3410 = vmatpush3.bf16.msra.mxu1 %v4509_v27 }
 0x521   : > { %3418 = vmatpush3.bf16.msra.mxu0 %v4482_v10  ;;  %3423 = vmatprep.subr.bf16.mxu1 %v4110_v0 }
 0x522   : > { %3429 = vmatprep.subr.bf16.mxu0 %v4110_v0 }
 0x523   : > { %3412 = vmatmul.mubr.msk.bf16.vlgmr.msra.gmra.mrb[12].mxu1 %vm733_vm1, %v1028_v25 }
 0x524   : > { %3424 = vmatpush3.bf16.msra.mxu1 %v4518_v34  ;;  %3425 = vmatprep.mubr.msk.bf16.mxu1 %vm4111_vm0, %v4110_v0 }
 0x525   : > { %3437 = vmatprep.subr.bf16.mxu1 %v4110_v0 }
 0x5ee   : > { %v1066_v28 = vpop.f32.mrb[8].mxu1  ;;  %v1106_v29 = vpop.f32.mrb[12].mxu0 }
 0x5ef   : > { %v1067_v30 = vadd.f32 %v4486_v11, %v1066_v28  ;;  %v1107_v31 = vadd.f32 %v4488_v12, %v1106_v29  ;;  %v3397_v32 = vpop.f32.mrb[9].mxu1  ;;  %v3405_v33 = vpop.f32.mrb[13].mxu0 }
 0x5f0   : > { %v1069_v35 = vpop.f32.mrb[10].mxu1  ;;  %v1109_v36 = vpop.f32.mrb[14].mxu0 }
 0x5f1   : > { %v1156_v37 = vpack.c.bf16 %v1067_v30, %v1067_v30  ;;  %v3398_v38 = vpop.f32.mrb[11].mxu1  ;;  %v3406_v39 = vpop.f32.mrb[15].mxu0  ;;  %v1152_v40 = vmul.f32 %v1107_v31, %v1067_v30 }
 0x5f3   : > { %3420 = vmatmul.mubr.msk.bf16.vlgmr.msra.gmra.mrb[16].mxu0 %vm733_vm1, %v1156_v37  ;;  %v1153_v41 = vsel %vm733_vm1, %v1152_v40, 0.0 }
 0x5f4   : > { %1154 = vadd.xlane.f32.xlu1 %v1153_v41  ;;  %3430 = vmatpush3.bf16.msra.mxu0 %v4431_v1 }
 0x5f5   : > { %3431 = vmatprep.subr.bf16.mxu0 %v4110_v0  ;;  %3433 = vmatprep.mubr.msk.bf16.mxu0 %vm4111_vm0, %v4110_v0 }
 0x5f6   : > { %v1146_v42 = vpop.f32.mrb[12].mxu1 }
 0x5f7   : > { %v3413_v43 = vpop.f32.mrb[13].mxu1  ;;  %v1147_v59 = vadd.f32 %v4525_v46, %v1146_v42 }
 0x5f8   : > { %v1149_v44 = vpop.f32.mrb[14].mxu1  ;;  %3432 = vmatpush3.bf16.msra.mxu0 %v4447_v3 }
 0x5f9   : > { %v3414_v45 = vpop.f32.mrb[15].mxu1  ;;  %3445 = vmatprep.subr.bf16.mxu0 %v4110_v0 }
 0x681   : > { %v1155_v52 = vpop.xlane.xlu1 %1154 }
 0x6c6   : > { %v1194_v47 = vpop.f32.mrb[16].mxu0 }
 0x6c7   : > { %v3421_v48 = vpop.f32.mrb[17].mxu0  ;;  %v1200_v49 = vsel %vm941_vm2, %v1194_v47, -inf }
 0x6c8   : > { %1201 = vmax.xlane.f32.xlu0 %v1200_v49  ;;  %v1197_v50 = vpop.f32.mrb[18].mxu0 }
 0x6c9   : > { %v3422_v51 = vpop.f32.mrb[19].mxu0 }
 0x755   : > { %v1202_v53 = vpop.xlane.xlu0 %1201 }
 0x756   : > { %v1203_v54 = vmax.f32 %v1155_v52, %v1202_v53 }
 0x758   : > { %v1204_v55 = vsub.f32 %v1155_v52, %v1203_v54  ;;  %v1207_v56 = vsub.f32 %v1194_v47, %v1203_v54 }
 0x75a   : > { %v1205_v57 = vmul.f32 1.442695, %v1204_v55  ;;  %v1208_v58 = vmul.f32 1.442695, %v1207_v56 }
 0x75c   : > { %3790 = vpow2.f32 %v1205_v57 }
 0x75d   : > { %3792 = vpow2.f32 %v1208_v58 }
 0x766   : > { %v3791_v60 = vpop.eup %3790 }
 0x767   : > { %v3793_v61 = vpop.eup %3792  ;;  %v1214_v62 = vmul.f32 %v3791_v60, %v1147_v59 }
 0x768   : > { %v1210_v63 = vsel %vm941_vm2, %v3793_v61, 0.0  ;;  %v1215_v5 = vpack.c.bf16 %v3793_v61, %v3793_v61 }
 0x769   : > { %1211 = vadd.xlane.f32.xlu1 %v1210_v63 }
 0x76a   : > { %3426 = vmatmul.mubr.msk.bf16.vlgmr.msra.gmra.mrb[16].mxu1 %vm941_vm2, %v1215_v5 }
 0x76b   : > { %3438 = vmatpush3.bf16.msra.mxu1 %v4436_v2  ;;  %3441 = vmatprep.mubr.msk.bf16.mxu1 %vm4111_vm0, %v4110_v0 }
 0x76c   : > { %3439 = vmatprep.subr.bf16.mxu1 %v4110_v0 }
 0x76f   : > { %3440 = vmatpush3.bf16.msra.mxu1 %v4454_v4 }
 0x770   : > { %3453 = vmatprep.subr.bf16.mxu1 %v4110_v0 }
 0x7f6   : > { %v1212_v6 = vpop.xlane.xlu1 %1211 }
 0x7f7   : > { %v1213_v9 = vadd.f32 %v3791_v60, %v1212_v6 }
 0x7f9   : > { %3794 = vrcp.f32 %v1213_v9 }
 0x803   : > { %v3795_v16 = vpop.eup %3794 }
 0x83d   : > { %v1253_v13 = vpop.f32.mrb[16].mxu1 }
 0x83e   : > { %v1259_v14 = vadd.f32 %v1253_v13, %v1214_v62  ;;  %v3427_v15 = vpop.f32.mrb[17].mxu1 }
 0x83f   : > { %v1256_v17 = vpop.f32.mrb[18].mxu1 }
 0x840   : > { %v1261_v18 = vmul.f32 %v3795_v16, %v1259_v14  ;;  %v3428_v19 = vpop.f32.mrb[19].mxu1 }
 0x842   : > { %v1262_v21 = vadd.f32 %v1261_v18, %v4552_v24  ;;  %v3192_v24 = vld [vmem:[%s4403_s10 + $0x10] sm:$0xff] }
 0x844   : > { %v1263_v22 = vsel %vm733_vm1, %v1262_v21, 0.0 }
 0x845   : > { %1264 = vadd.xlane.f32.xlu0 %v1263_v22 }
 0x8d2   : > { %v1265_v23 = vpop.xlane.xlu0 %1264 }
 0x8d3   : > { %v1266_v25 = vmul.f32 0.03125, %v1265_v23 }
 0x8d5   : > { %v1267_v28 = vsub.f32 %v1262_v21, %v1266_v25 }
 0x8d7   : > { %v1268_v29 = vmul.f32 %v1267_v28, %v1267_v28 }
 0x8d9   : > { %v1269_v30 = vsel %vm733_vm1, %v1268_v29, 0.0 }
 0x8da   : > { %1270 = vadd.xlane.f32.xlu1 %v1269_v30 }
 0x967   : > { %v1271_v31 = vpop.xlane.xlu1 %1270 }
 0x968   : > { %v1272_v32 = vmul.f32 0.03125, %v1271_v31 }
 0x96a   : > { %v1273_v33 = vadd.f32 1e-05, %v1272_v32 }
 0x96c   : > { %3796 = vrsqrt.f32 %v1273_v33 }
 0x976   : > { %v3797_v35 = vpop.eup %3796 }
 0x977   : > { %v1275_v36 = vmul.f32 %v3797_v35, %v1267_v28 }
 0x979   : > { %v1276_v37 = vmul.f32 %v4542_v7, %v1275_v36 }
 0x97b   : > { %v1277_v38 = vadd.f32 %v4547_v20, %v1276_v37 }
 0x97d   : > { %v4601_v39 = vadd.f32 %v3192_v24, %v1277_v38 }
 0x97f   : > { %v1281_v40 = vpack.c.bf16 %v4601_v39, %v4601_v39 }
 0x981   : > { %3434 = vmatmul.mubr.msk.bf16.vlgmr.msra.gmra.mrb[20].mxu0 %vm733_vm1, %v1281_v40  ;;  %3442 = vmatmul.mubr.msk.bf16.vlgmr.msra.gmra.mrb[20].mxu1 %vm733_vm1, %v1281_v40 }
 0x982   : > { %3446 = vmatpush3.bf16.msra.mxu0 %v4503_v26  ;;  %3449 = vmatprep.mubr.msk.bf16.mxu0 %vm4111_vm0, %v4110_v0 }
 0x983   : > { %3447 = vmatprep.subr.bf16.mxu0 %v4110_v0  ;;  %3454 = vmatpush3.bf16.msra.mxu1 %v4463_v8 }
 0x984   : > { %3455 = vmatprep.subr.bf16.mxu1 %v4110_v0  ;;  %3457 = vmatprep.mubr.msk.bf16.mxu1 %vm4111_vm0, %v4110_v0 }
 0x986   : > { %3448 = vmatpush3.bf16.msra.mxu0 %v4509_v27 }
 0x987   : > { %3456 = vmatpush3.bf16.msra.mxu1 %v4482_v10  ;;  %3461 = vmatprep.subr.bf16.mxu0 %v4110_v0 }
 0x988   : > { %3467 = vmatprep.subr.bf16.mxu1 %v4110_v0 }
 0x989   : > { %3450 = vmatmul.mubr.msk.bf16.vlgmr.msra.gmra.mrb[24].mxu0 %vm733_vm1, %v1281_v40 }
 0x98a   : > { %3462 = vmatpush3.bf16.msra.mxu0 %v4518_v34  ;;  %3463 = vmatprep.mubr.msk.bf16.mxu0 %vm4111_vm0, %v4110_v0 }
 0x98b   : > { %3475 = vmatprep.subr.bf16.mxu0 %v4110_v0 }
 0xa54   : > { %v1319_v41 = vpop.f32.mrb[20].mxu0  ;;  %v1359_v42 = vpop.f32.mrb[20].mxu1 }
 0xa55   : > { %v1320_v43 = vadd.f32 %v4486_v11, %v1319_v41  ;;  %v1360_v44 = vadd.f32 %v4488_v12, %v1359_v42  ;;  %v3435_v45 = vpop.f32.mrb[21].mxu0  ;;  %v3443_v47 = vpop.f32.mrb[21].mxu1 }
 0xa56   : > { %v1322_v48 = vpop.f32.mrb[22].mxu0  ;;  %v1362_v49 = vpop.f32.mrb[22].mxu1 }
 0xa57   : > { %v1409_v50 = vpack.c.bf16 %v1320_v43, %v1320_v43  ;;  %v3436_v51 = vpop.f32.mrb[23].mxu0  ;;  %v3444_v52 = vpop.f32.mrb[23].mxu1  ;;  %v1405_v53 = vmul.f32 %v1360_v44, %v1320_v43 }
 0xa59   : > { %3458 = vmatmul.mubr.msk.bf16.vlgmr.msra.gmra.mrb[24].mxu1 %vm733_vm1, %v1409_v50  ;;  %v1406_v54 = vsel %vm733_vm1, %v1405_v53, 0.0 }
 0xa5a   : > { %1407 = vadd.xlane.f32.xlu0 %v1406_v54  ;;  %3468 = vmatpush3.bf16.msra.mxu1 %v4431_v1 }
 0xa5b   : > { %3469 = vmatprep.subr.bf16.mxu1 %v4110_v0  ;;  %3471 = vmatprep.mubr.msk.bf16.mxu1 %vm4111_vm0, %v4110_v0 }
 0xa5c   : > { %v1399_v55 = vpop.f32.mrb[24].mxu0 }
 0xa5d   : > { %v3451_v56 = vpop.f32.mrb[25].mxu0  ;;  %v1400_v17 = vadd.f32 %v4525_v46, %v1399_v55 }
 0xa5e   : > { %v1402_v57 = vpop.f32.mrb[26].mxu0  ;;  %3470 = vmatpush3.bf16.msra.mxu1 %v4447_v3 }
 0xa5f   : > { %v3452_v58 = vpop.f32.mrb[27].mxu0  ;;  %3483 = vmatprep.subr.bf16.mxu1 %v4110_v0 }
 0xae7   : > { %v1408_v5 = vpop.xlane.xlu0 %1407 }
 0xb2c   : > { %v1447_v59 = vpop.f32.mrb[24].mxu1 }
 0xb2d   : > { %v3459_v60 = vpop.f32.mrb[25].mxu1  ;;  %v1453_v61 = vsel %vm941_vm2, %v1447_v59, -inf }
 0xb2e   : > { %1454 = vmax.xlane.f32.xlu1 %v1453_v61  ;;  %v1450_v62 = vpop.f32.mrb[26].mxu1 }
 0xb2f   : > { %v3460_v63 = vpop.f32.mrb[27].mxu1 }
 0xbbb   : > { %v1455_v6 = vpop.xlane.xlu1 %1454 }
 0xbbc   : > { %v1456_v9 = vmax.f32 %v1408_v5, %v1455_v6 }
 0xbbe   : > { %v1457_v13 = vsub.f32 %v1408_v5, %v1456_v9  ;;  %v1460_v14 = vsub.f32 %v1447_v59, %v1456_v9 }
 0xbc0   : > { %v1458_v15 = vmul.f32 1.442695, %v1457_v13  ;;  %v1461_v16 = vmul.f32 1.442695, %v1460_v14 }
 0xbc2   : > { %3798 = vpow2.f32 %v1458_v15 }
 0xbc3   : > { %3800 = vpow2.f32 %v1461_v16 }
 0xbcc   : > { %v3799_v18 = vpop.eup %3798 }
 0xbcd   : > { %v3801_v19 = vpop.eup %3800  ;;  %v1467_v21 = vmul.f32 %v3799_v18, %v1400_v17 }
 0xbce   : > { %v1463_v22 = vsel %vm941_vm2, %v3801_v19, 0.0  ;;  %v1468_v23 = vpack.c.bf16 %v3801_v19, %v3801_v19 }
 0xbcf   : > { %1464 = vadd.xlane.f32.xlu0 %v1463_v22 }
 0xbd0   : > { %3464 = vmatmul.mubr.msk.bf16.vlgmr.msra.gmra.mrb[28].mxu0 %vm941_vm2, %v1468_v23 }
 0xbd1   : > { %3476 = vmatpush3.bf16.msra.mxu0 %v4436_v2  ;;  %3479 = vmatprep.mubr.msk.bf16.mxu0 %vm4111_vm0, %v4110_v0 }
 0xbd2   : > { %3477 = vmatprep.subr.bf16.mxu0 %v4110_v0 }
 0xbd5   : > { %3478 = vmatpush3.bf16.msra.mxu0 %v4454_v4 }
 0xbd6   : > { %3491 = vmatprep.subr.bf16.mxu0 %v4110_v0 }
 0xc5c   : > { %v1465_v25 = vpop.xlane.xlu0 %1464 }
 0xc5d   : > { %v1466_v28 = vadd.f32 %v3799_v18, %v1465_v25 }
 0xc5f   : > { %3802 = vrcp.f32 %v1466_v28 }
 0xc69   : > { %v3803_v32 = vpop.eup %3802 }
 0xca3   : > { %v1506_v29 = vpop.f32.mrb[28].mxu0 }
 0xca4   : > { %v1512_v30 = vadd.f32 %v1506_v29, %v1467_v21  ;;  %v3465_v31 = vpop.f32.mrb[29].mxu0 }
 0xca5   : > { %v1509_v33 = vpop.f32.mrb[30].mxu0 }
 0xca6   : > { %v1514_v35 = vmul.f32 %v3803_v32, %v1512_v30  ;;  %v3466_v36 = vpop.f32.mrb[31].mxu0 }
 0xca8   : > { %v1515_v37 = vadd.f32 %v1514_v35, %v4601_v39  ;;  %v3198_v39 = vld [vmem:[%s4403_s10 + $0x18] sm:$0xff] }
 0xcaa   : > { %v1516_v24 = vsel %vm733_vm1, %v1515_v37, 0.0 }
 0xcab   : > { %1517 = vadd.xlane.f32.xlu1 %v1516_v24 }
 0xd38   : > { %v1518_v38 = vpop.xlane.xlu1 %1517 }
 0xd39   : > { %v1519_v40 = vmul.f32 0.03125, %v1518_v38 }
 0xd3b   : > { %v1520_v41 = vsub.f32 %v1515_v37, %v1519_v40 }
 0xd3d   : > { %v1521_v42 = vmul.f32 %v1520_v41, %v1520_v41 }
 0xd3f   : > { %v1522_v43 = vsel %vm733_vm1, %v1521_v42, 0.0 }
 0xd40   : > { %1523 = vadd.xlane.f32.xlu0 %v1522_v43 }
 0xdcd   : > { %v1524_v44 = vpop.xlane.xlu0 %1523 }
 0xdce   : > { %v1525_v45 = vmul.f32 0.03125, %v1524_v44 }
 0xdd0   : > { %v1526_v47 = vadd.f32 1e-05, %v1525_v45 }
 0xdd2   : > { %3804 = vrsqrt.f32 %v1526_v47 }
 0xddc   : > { %v3805_v48 = vpop.eup %3804 }
 0xddd   : > { %v1528_v49 = vmul.f32 %v3805_v48, %v1520_v41 }
 0xddf   : > { %v1529_v50 = vmul.f32 %v4542_v7, %v1528_v49 }
 0xde1   : > { %v1530_v51 = vadd.f32 %v4547_v20, %v1529_v50 }
 0xde3   : > { %v4650_v52 = vadd.f32 %v3198_v39, %v1530_v51 }
 0xde5   : > { %v1534_v53 = vpack.c.bf16 %v4650_v52, %v4650_v52 }
 0xde7   : > { %3472 = vmatmul.mubr.msk.bf16.vlgmr.msra.gmra.mrb[28].mxu1 %vm733_vm1, %v1534_v53  ;;  %3480 = vmatmul.mubr.msk.bf16.vlgmr.msra.gmra.mrb[32].mxu0 %vm733_vm1, %v1534_v53 }
 0xde8   : > { %3484 = vmatpush3.bf16.msra.mxu1 %v4503_v26  ;;  %3487 = vmatprep.mubr.msk.bf16.mxu1 %vm4111_vm0, %v4110_v0 }
 0xde9   : > { %3485 = vmatprep.subr.bf16.mxu1 %v4110_v0  ;;  %3492 = vmatpush3.bf16.msra.mxu0 %v4463_v8 }
 0xdea   : > { %3493 = vmatprep.subr.bf16.mxu0 %v4110_v0  ;;  %3495 = vmatprep.mubr.msk.bf16.mxu0 %vm4111_vm0, %v4110_v0 }
 0xdec   : > { %3486 = vmatpush3.bf16.msra.mxu1 %v4509_v27 }
 0xded   : > { %3494 = vmatpush3.bf16.msra.mxu0 %v4482_v10  ;;  %3499 = vmatprep.subr.bf16.mxu1 %v4110_v0 }
 0xdee   : > { %3505 = vmatprep.subr.bf16.mxu0 %v4110_v0 }
 0xdef   : > { %3488 = vmatmul.mubr.msk.bf16.vlgmr.msra.gmra.mrb[32].mxu1 %vm733_vm1, %v1534_v53 }
 0xdf0   : > { %3500 = vmatpush3.bf16.msra.mxu1 %v4518_v34  ;;  %3501 = vmatprep.mubr.msk.bf16.mxu1 %vm4111_vm0, %v4110_v0 }
 0xdf1   : > { %3513 = vmatprep.subr.bf16.mxu1 %v4110_v0 }
 0xeba   : > { %v1572_v54 = vpop.f32.mrb[28].mxu1  ;;  %v1612_v55 = vpop.f32.mrb[32].mxu0 }
 0xebb   : > { %v1573_v56 = vadd.f32 %v4486_v11, %v1572_v54  ;;  %v1613_v57 = vadd.f32 %v4488_v12, %v1612_v55  ;;  %v3473_v58 = vpop.f32.mrb[29].mxu1  ;;  %v3481_v59 = vpop.f32.mrb[33].mxu0 }
 0xebc   : > { %v1575_v60 = vpop.f32.mrb[30].mxu1  ;;  %v1615_v61 = vpop.f32.mrb[34].mxu0 }
 0xebd   : > { %v1662_v62 = vpack.c.bf16 %v1573_v56, %v1573_v56  ;;  %v3474_v63 = vpop.f32.mrb[31].mxu1  ;;  %v3482_v5 = vpop.f32.mrb[35].mxu0  ;;  %v1658_v6 = vmul.f32 %v1613_v57, %v1573_v56 }
 0xebf   : > { %3496 = vmatmul.mubr.msk.bf16.vlgmr.msra.gmra.mrb[36].mxu0 %vm733_vm1, %v1662_v62  ;;  %v1659_v9 = vsel %vm733_vm1, %v1658_v6, 0.0 }
 0xec0   : > { %1660 = vadd.xlane.f32.xlu1 %v1659_v9  ;;  %3506 = vmatpush3.bf16.msra.mxu0 %v4431_v1 }
 0xec1   : > { %3507 = vmatprep.subr.bf16.mxu0 %v4110_v0  ;;  %3509 = vmatprep.mubr.msk.bf16.mxu0 %vm4111_vm0, %v4110_v0 }
 0xec2   : > { %v1652_v13 = vpop.f32.mrb[32].mxu1 }
 0xec3   : > { %v3489_v14 = vpop.f32.mrb[33].mxu1  ;;  %v1653_v33 = vadd.f32 %v4525_v46, %v1652_v13 }
 0xec4   : > { %v1655_v15 = vpop.f32.mrb[34].mxu1  ;;  %3508 = vmatpush3.bf16.msra.mxu0 %v4447_v3 }
 0xec5   : > { %v3490_v16 = vpop.f32.mrb[35].mxu1  ;;  %3521 = vmatprep.subr.bf16.mxu0 %v4110_v0 }
 0xf4d   : > { %v1661_v23 = vpop.xlane.xlu1 %1660 }
 0xf92   : > { %v1700_v17 = vpop.f32.mrb[36].mxu0 }
 0xf93   : > { %v3497_v18 = vpop.f32.mrb[37].mxu0  ;;  %v1706_v19 = vsel %vm941_vm2, %v1700_v17, -inf }
 0xf94   : > { %1707 = vmax.xlane.f32.xlu0 %v1706_v19  ;;  %v1703_v21 = vpop.f32.mrb[38].mxu0 }
 0xf95   : > { %v3498_v22 = vpop.f32.mrb[39].mxu0 }
0x1021   : > { %v1708_v25 = vpop.xlane.xlu0 %1707 }
0x1022   : > { %v1709_v28 = vmax.f32 %v1661_v23, %v1708_v25 }
0x1024   : > { %v1710_v29 = vsub.f32 %v1661_v23, %v1709_v28  ;;  %v1713_v30 = vsub.f32 %v1700_v17, %v1709_v28 }
0x1026   : > { %v1711_v31 = vmul.f32 1.442695, %v1710_v29  ;;  %v1714_v32 = vmul.f32 1.442695, %v1713_v30 }
0x1028   : > { %3806 = vpow2.f32 %v1711_v31 }
0x1029   : > { %3808 = vpow2.f32 %v1714_v32 }
0x1032   : > { %v3807_v35 = vpop.eup %3806 }
0x1033   : > { %v3809_v36 = vpop.eup %3808  ;;  %v1720_v37 = vmul.f32 %v3807_v35, %v1653_v33 }
0x1034   : > { %v1716_v24 = vsel %vm941_vm2, %v3809_v36, 0.0  ;;  %v1721_v38 = vpack.c.bf16 %v3809_v36, %v3809_v36 }
0x1035   : > { %1717 = vadd.xlane.f32.xlu1 %v1716_v24 }
0x1036   : > { %3502 = vmatmul.mubr.msk.bf16.vlgmr.msra.gmra.mrb[36].mxu1 %vm941_vm2, %v1721_v38 }
0x1037   : > { %3514 = vmatpush3.bf16.msra.mxu1 %v4436_v2  ;;  %3517 = vmatprep.mubr.msk.bf16.mxu1 %vm4111_vm0, %v4110_v0 }
0x1038   : > { %3515 = vmatprep.subr.bf16.mxu1 %v4110_v0 }
0x103b   : > { %3516 = vmatpush3.bf16.msra.mxu1 %v4454_v4 }
0x103c   : > { %3529 = vmatprep.subr.bf16.mxu1 %v4110_v0 }
0x10c2   : > { %v1718_v40 = vpop.xlane.xlu1 %1717 }
0x10c3   : > { %v1719_v41 = vadd.f32 %v3807_v35, %v1718_v40 }
0x10c5   : > { %3810 = vrcp.f32 %v1719_v41 }
0x10cf   : > { %v3811_v45 = vpop.eup %3810 }
0x1109   : > { %v1759_v42 = vpop.f32.mrb[36].mxu1 }
0x110a   : > { %v1765_v43 = vadd.f32 %v1759_v42, %v1720_v37  ;;  %v3503_v44 = vpop.f32.mrb[37].mxu1 }
0x110b   : > { %v1762_v47 = vpop.f32.mrb[38].mxu1 }
0x110c   : > { %v1767_v48 = vmul.f32 %v3811_v45, %v1765_v43  ;;  %v3504_v49 = vpop.f32.mrb[39].mxu1 }
0x110e   : > { %v1768_v50 = vadd.f32 %v1767_v48, %v4650_v52  ;;  %v3204_v52 = vld [vmem:[%s4403_s10 + $0x20] sm:$0xff] }
0x1110   : > { %v1769_v39 = vsel %vm733_vm1, %v1768_v50, 0.0 }
0x1111   : > { %1770 = vadd.xlane.f32.xlu0 %v1769_v39 }
0x119e   : > { %v1771_v51 = vpop.xlane.xlu0 %1770 }
0x119f   : > { %v1772_v53 = vmul.f32 0.03125, %v1771_v51 }
0x11a1   : > { %v1773_v54 = vsub.f32 %v1768_v50, %v1772_v53 }
0x11a3   : > { %v1774_v55 = vmul.f32 %v1773_v54, %v1773_v54 }
0x11a5   : > { %v1775_v56 = vsel %vm733_vm1, %v1774_v55, 0.0 }
0x11a6   : > { %1776 = vadd.xlane.f32.xlu1 %v1775_v56 }
0x1233   : > { %v1777_v57 = vpop.xlane.xlu1 %1776 }
0x1234   : > { %v1778_v58 = vmul.f32 0.03125, %v1777_v57 }
0x1236   : > { %v1779_v59 = vadd.f32 1e-05, %v1778_v58 }
0x1238   : > { %3812 = vrsqrt.f32 %v1779_v59 }
0x1242   : > { %v3813_v60 = vpop.eup %3812 }
0x1243   : > { %v1781_v61 = vmul.f32 %v3813_v60, %v1773_v54 }
0x1245   : > { %v1782_v62 = vmul.f32 %v4542_v7, %v1781_v61 }
0x1247   : > { %v1783_v63 = vadd.f32 %v4547_v20, %v1782_v62 }
0x1249   : > { %v4699_v5 = vadd.f32 %v3204_v52, %v1783_v63 }
0x124b   : > { %v1787_v6 = vpack.c.bf16 %v4699_v5, %v4699_v5 }
0x124d   : > { %3510 = vmatmul.mubr.msk.bf16.vlgmr.msra.gmra.mrb[40].mxu0 %vm733_vm1, %v1787_v6  ;;  %3518 = vmatmul.mubr.msk.bf16.vlgmr.msra.gmra.mrb[40].mxu1 %vm733_vm1, %v1787_v6 }
0x124e   : > { %3522 = vmatpush3.bf16.msra.mxu0 %v4503_v26  ;;  %3525 = vmatprep.mubr.msk.bf16.mxu0 %vm4111_vm0, %v4110_v0 }
0x124f   : > { %3523 = vmatprep.subr.bf16.mxu0 %v4110_v0  ;;  %3530 = vmatpush3.bf16.msra.mxu1 %v4463_v8 }
0x1250   : > { %3531 = vmatprep.subr.bf16.mxu1 %v4110_v0  ;;  %3533 = vmatprep.mubr.msk.bf16.mxu1 %vm4111_vm0, %v4110_v0 }
0x1252   : > { %3524 = vmatpush3.bf16.msra.mxu0 %v4509_v27 }
0x1253   : > { %3532 = vmatpush3.bf16.msra.mxu1 %v4482_v10  ;;  %3537 = vmatprep.subr.bf16.mxu0 %v4110_v0 }
0x1254   : > { %3543 = vmatprep.subr.bf16.mxu1 %v4110_v0 }
0x1255   : > { %3526 = vmatmul.mubr.msk.bf16.vlgmr.msra.gmra.mrb[44].mxu0 %vm733_vm1, %v1787_v6 }
0x1256   : > { %3538 = vmatpush3.bf16.msra.mxu0 %v4518_v34  ;;  %3539 = vmatprep.mubr.msk.bf16.mxu0 %vm4111_vm0, %v4110_v0 }
0x1257   : > { %3551 = vmatprep.subr.bf16.mxu0 %v4110_v0 }
0x1320   : > { %v1825_v8 = vpop.f32.mrb[40].mxu0  ;;  %v1865_v9 = vpop.f32.mrb[40].mxu1 }
0x1321   : > { %v1826_v13 = vadd.f32 %v4486_v11, %v1825_v8  ;;  %v1866_v14 = vadd.f32 %v4488_v12, %v1865_v9  ;;  %v3511_v15 = vpop.f32.mrb[41].mxu0  ;;  %v3519_v16 = vpop.f32.mrb[41].mxu1 }
0x1322   : > { %v1828_v17 = vpop.f32.mrb[42].mxu0  ;;  %v1868_v18 = vpop.f32.mrb[42].mxu1 }
0x1323   : > { %v1915_v19 = vpack.c.bf16 %v1826_v13, %v1826_v13  ;;  %v3512_v21 = vpop.f32.mrb[43].mxu0  ;;  %v3520_v22 = vpop.f32.mrb[43].mxu1  ;;  %v1911_v23 = vmul.f32 %v1866_v14, %v1826_v13  ;;  %v4761_v18 = vld [vmem:[%s5137_s2] sm:$0xff]  }
0x1325   : > { %3534 = vmatmul.mubr.msk.bf16.vlgmr.msra.gmra.mrb[44].mxu1 %vm733_vm1, %v1915_v19  ;;  %v1912_v25 = vsel %vm733_vm1, %v1911_v23, 0.0 }
0x1326   : > { %1913 = vadd.xlane.f32.xlu0 %v1912_v25  ;;  %3544 = vmatpush3.bf16.msra.mxu1 %v4431_v1 }
0x1327   : > { %3545 = vmatprep.subr.bf16.mxu1 %v4110_v0  ;;  %3547 = vmatprep.mubr.msk.bf16.mxu1 %vm4111_vm0, %v4110_v0 }
0x1328   : > { %v1905_v28 = vpop.f32.mrb[44].mxu0 }
0x1329   : > { %v3527_v29 = vpop.f32.mrb[45].mxu0 }
0x132a   : > { %v1908_v30 = vpop.f32.mrb[46].mxu0  ;;  %3546 = vmatpush3.bf16.msra.mxu1 %v4447_v3  ;;  %v1906_v3 = vadd.f32 %v4525_v46, %v1905_v28 }
0x132b   : > { %v3528_v31 = vpop.f32.mrb[47].mxu0  ;;  %3559 = vmatprep.subr.bf16.mxu1 %v4110_v0 }
0x13b3   : > { %v1914_v37 = vpop.xlane.xlu0 %1913 }
0x13f8   : > { %v1953_v32 = vpop.f32.mrb[44].mxu1 }
0x13f9   : > { %v3535_v33 = vpop.f32.mrb[45].mxu1  ;;  %v1959_v35 = vsel %vm941_vm2, %v1953_v32, -inf }
0x13fa   : > { %1960 = vmax.xlane.f32.xlu1 %v1959_v35  ;;  %v1956_v36 = vpop.f32.mrb[46].mxu1  ;;  %v4783_v33 = vld [vmem:[%s5134_s4] sm:$0xff]  }
0x13fb   : > { %v3536_v1 = vpop.f32.mrb[47].mxu1  ;;  %v4792_v36 = vld [vmem:[%s5134_s4 + $0x8] sm:$0xff]  }
0x1487   : > { %v1961_v24 = vpop.xlane.xlu1 %1960 }
0x1488   : > { %v1962_v38 = vmax.f32 %v1914_v37, %v1961_v24 }
0x148a   : > { %v1963_v40 = vsub.f32 %v1914_v37, %v1962_v38  ;;  %v1966_v41 = vsub.f32 %v1953_v32, %v1962_v38 }
0x148c   : > { %v1964_v42 = vmul.f32 1.442695, %v1963_v40  ;;  %v1967_v43 = vmul.f32 1.442695, %v1966_v41 }
0x148e   : > { %3814 = vpow2.f32 %v1964_v42 }
0x148f   : > { %3816 = vpow2.f32 %v1967_v43 }
0x1498   : > { %v3815_v44 = vpop.eup %3814 }
0x1499   : > { %v3817_v45 = vpop.eup %3816  ;;  %v1973_v47 = vmul.f32 %v3815_v44, %v1906_v3 }
0x149a   : > { %v1969_v48 = vsel %vm941_vm2, %v3817_v45, 0.0  ;;  %v1974_v49 = vpack.c.bf16 %v3817_v45, %v3817_v45 }
0x149b   : > { %1970 = vadd.xlane.f32.xlu0 %v1969_v48 }
0x149c   : > { %3540 = vmatmul.mubr.msk.bf16.vlgmr.msra.gmra.mrb[48].mxu0 %vm941_vm2, %v1974_v49 }
0x149d   : > { %3552 = vmatpush3.bf16.msra.mxu0 %v4436_v2  ;;  %3555 = vmatprep.mubr.msk.bf16.mxu0 %vm4111_vm0, %v4110_v0 }
0x149e   : > { %3553 = vmatprep.subr.bf16.mxu0 %v4110_v0 }
0x14a1   : > { %3554 = vmatpush3.bf16.msra.mxu0 %v4454_v4 }
0x14a2   : > { %3567 = vmatprep.subr.bf16.mxu0 %v4110_v0 }
0x1528   : > { %v1971_v50 = vpop.xlane.xlu0 %1970 }
0x1529   : > { %v1972_v39 = vadd.f32 %v3815_v44, %v1971_v50 }
0x152b   : > { %3818 = vrcp.f32 %v1972_v39 }
0x1535   : > { %v3819_v55 = vpop.eup %3818 }
0x156f   : > { %v2012_v51 = vpop.f32.mrb[48].mxu0 }
0x1570   : > { %v2018_v53 = vadd.f32 %v2012_v51, %v1973_v47  ;;  %v3541_v54 = vpop.f32.mrb[49].mxu0 }
0x1571   : > { %v2015_v56 = vpop.f32.mrb[50].mxu0 }
0x1572   : > { %v2020_v57 = vmul.f32 %v3819_v55, %v2018_v53  ;;  %v3542_v58 = vpop.f32.mrb[51].mxu0  ;;  %v4803_v55 = vld [vmem:[%s5135_s6] sm:$0xff]  }
0x1574   : > { %v2021_v2 = vadd.f32 %v2020_v57, %v4699_v5  ;;  %v3210_v5 = vld [vmem:[%s4403_s10 + $0x28] sm:$0xff] }
0x1576   : > { %v2022_v59 = vsel %vm733_vm1, %v2021_v2, 0.0 }
0x1577   : > { %2023 = vadd.xlane.f32.xlu1 %v2022_v59 }
0x1604   : > { %v2024_v60 = vpop.xlane.xlu1 %2023 }
0x1605   : > { %v2025_v4 = vmul.f32 0.03125, %v2024_v60 }
0x1607   : > { %v2026_v61 = vsub.f32 %v2021_v2, %v2025_v4 }
0x1609   : > { %v2027_v62 = vmul.f32 %v2026_v61, %v2026_v61 }
0x160b   : > { %v2028_v52 = vsel %vm733_vm1, %v2027_v62, 0.0 }
0x160c   : > { %2029 = vadd.xlane.f32.xlu0 %v2028_v52 }
0x1699   : > { %v2030_v63 = vpop.xlane.xlu0 %2029 }
0x169a   : > { %v2031_v6 = vmul.f32 0.03125, %v2030_v63 }
0x169c   : > { %v2032_v8 = vadd.f32 1e-05, %v2031_v6 }
0x169e   : > { %3820 = vrsqrt.f32 %v2032_v8 }
0x16a8   : > { %v3821_v9 = vpop.eup %3820 }
0x16a9   : > { %v2034_v13 = vmul.f32 %v3821_v9, %v2026_v61 }
0x16ab   : > { %v2035_v14 = vmul.f32 %v4542_v7, %v2034_v13 }
0x16ad   : > { %v2036_v15 = vadd.f32 %v4547_v20, %v2035_v14 }
0x16af   : > { %v4748_v16 = vadd.f32 %v3210_v5, %v2036_v15 }
0x16b1   : > { %v2040_v17 = vpack.c.bf16 %v4748_v16, %v4748_v16 }
0x16b3   : > { %3548 = vmatmul.mubr.msk.bf16.vlgmr.msra.gmra.mrb[48].mxu1 %vm733_vm1, %v2040_v17  ;;  %3556 = vmatmul.mubr.msk.bf16.vlgmr.msra.gmra.mrb[52].mxu0 %vm733_vm1, %v2040_v17 }
0x16b4   : > { %3560 = vmatpush3.bf16.msra.mxu1 %v4503_v26  ;;  %3563 = vmatprep.mubr.msk.bf16.mxu1 %vm4111_vm0, %v4110_v0 }
0x16b5   : > { %3561 = vmatprep.subr.bf16.mxu1 %v4110_v0  ;;  %3568 = vmatpush3.bf16.msra.mxu0 %v4761_v18 }
0x16b6   : > { %3569 = vmatprep.subr.bf16.mxu0 %v4110_v0  ;;  %3571 = vmatprep.mubr.msk.bf16.mxu0 %vm4111_vm0, %v4110_v0 }
0x16b8   : > { %3562 = vmatpush3.bf16.msra.mxu1 %v4509_v27 }
0x16b9   : > { %3570 = vmatpush3.bf16.msra.mxu0 %v4482_v10  ;;  %3575 = vmatprep.subr.bf16.mxu1 %v4110_v0 }
0x16ba   : > { %3581 = vmatprep.subr.bf16.mxu0 %v4110_v0 }
0x16bb   : > { %3564 = vmatmul.mubr.msk.bf16.vlgmr.msra.gmra.mrb[52].mxu1 %vm733_vm1, %v2040_v17 }
0x16bc   : > { %3576 = vmatpush3.bf16.msra.mxu1 %v4518_v34  ;;  %3577 = vmatprep.mubr.msk.bf16.mxu1 %vm4111_vm0, %v4110_v0 }
0x16bd   : > { %3589 = vmatprep.subr.bf16.mxu1 %v4110_v0 }
0x1786   : > { %v2078_v26 = vpop.f32.mrb[48].mxu1  ;;  %v2118_v19 = vpop.f32.mrb[52].mxu0 }
0x1787   : > { %v2079_v21 = vadd.f32 %v4486_v11, %v2078_v26  ;;  %v2119_v27 = vadd.f32 %v4488_v12, %v2118_v19  ;;  %v3549_v10 = vpop.f32.mrb[49].mxu1  ;;  %v3557_v22 = vpop.f32.mrb[53].mxu0 }
0x1788   : > { %v2081_v23 = vpop.f32.mrb[50].mxu1  ;;  %v2121_v25 = vpop.f32.mrb[54].mxu0 }
0x1789   : > { %v2168_v28 = vpack.c.bf16 %v2079_v21, %v2079_v21  ;;  %v3550_v29 = vpop.f32.mrb[51].mxu1  ;;  %v3558_v30 = vpop.f32.mrb[55].mxu0  ;;  %v2164_v31 = vmul.f32 %v2119_v27, %v2079_v21  ;;  %v4831_v23 = vld [vmem:[%s5072_s8] sm:$0xff]  }
0x178a   : > { %v4860_v29 = vld [vmem:[#allocation9] ss:$0 sm:$0xff] }
0x178b   : > { %3572 = vmatmul.mubr.msk.bf16.vlgmr.msra.gmra.mrb[56].mxu0 %vm733_vm1, %v2168_v28  ;;  %v2165_v32 = vsel %vm733_vm1, %v2164_v31, 0.0  ;;  %v4863_v31 = vld [vmem:[#allocation10] ss:$0 sm:$0xff] }
0x178c   : > { %2166 = vadd.xlane.f32.xlu1 %v2165_v32  ;;  %3582 = vmatpush3.bf16.msra.mxu0 %v4783_v33 }
0x178d   : > { %3583 = vmatprep.subr.bf16.mxu0 %v4110_v0  ;;  %3585 = vmatprep.mubr.msk.bf16.mxu0 %vm4111_vm0, %v4110_v0 }
0x178e   : > { %v2158_v11 = vpop.f32.mrb[52].mxu1 }
0x178f   : > { %v3565_v12 = vpop.f32.mrb[53].mxu1  ;;  %v2159_v49 = vadd.f32 %v4525_v46, %v2158_v11  ;;  %v4812_v46 = vld [vmem:[%s5135_s6 + $0x8] sm:$0xff]  }
0x1790   : > { %v2161_v35 = vpop.f32.mrb[54].mxu1  ;;  %3584 = vmatpush3.bf16.msra.mxu0 %v4792_v36 }
0x1791   : > { %v3566_v1 = vpop.f32.mrb[55].mxu1  ;;  %3597 = vmatprep.subr.bf16.mxu0 %v4110_v0 }
0x1819   : > { %v2167_v42 = vpop.xlane.xlu1 %2166 }
0x185e   : > { %v2206_v37 = vpop.f32.mrb[56].mxu0 }
0x185f   : > { %v3573_v24 = vpop.f32.mrb[57].mxu0  ;;  %v2212_v38 = vsel %vm941_vm2, %v2206_v37, -inf }
0x1860   : > { %2213 = vmax.xlane.f32.xlu0 %v2212_v38  ;;  %v2209_v40 = vpop.f32.mrb[58].mxu0 }
0x1861   : > { %v3574_v41 = vpop.f32.mrb[59].mxu0 }
0x18ed   : > { %v2214_v43 = vpop.xlane.xlu0 %2213 }
0x18ee   : > { %v2215_v3 = vmax.f32 %v2167_v42, %v2214_v43 }
0x18f0   : > { %v2216_v44 = vsub.f32 %v2167_v42, %v2215_v3  ;;  %v2219_v45 = vsub.f32 %v2206_v37, %v2215_v3 }
0x18f2   : > { %v2217_v47 = vmul.f32 1.442695, %v2216_v44  ;;  %v2220_v48 = vmul.f32 1.442695, %v2219_v45 }
0x18f4   : > { %3822 = vpow2.f32 %v2217_v47 }
0x18f5   : > { %3824 = vpow2.f32 %v2220_v48 }
0x18fe   : > { %v3823_v50 = vpop.eup %3822 }
0x18ff   : > { %v3825_v39 = vpop.eup %3824  ;;  %v2226_v51 = vmul.f32 %v3823_v50, %v2159_v49 }
0x1900   : > { %v2222_v53 = vsel %vm941_vm2, %v3825_v39, 0.0  ;;  %v2227_v54 = vpack.c.bf16 %v3825_v39, %v3825_v39 }
0x1901   : > { %2223 = vadd.xlane.f32.xlu1 %v2222_v53 }
0x1902   : > { %3578 = vmatmul.mubr.msk.bf16.vlgmr.msra.gmra.mrb[56].mxu1 %vm941_vm2, %v2227_v54 }
0x1903   : > { %3590 = vmatpush3.bf16.msra.mxu1 %v4803_v55  ;;  %3593 = vmatprep.mubr.msk.bf16.mxu1 %vm4111_vm0, %v4110_v0 }
0x1904   : > { %3591 = vmatprep.subr.bf16.mxu1 %v4110_v0 }
0x1907   : > { %3592 = vmatpush3.bf16.msra.mxu1 %v4812_v46 }
0x1908   : > { %3605 = vmatprep.subr.bf16.mxu1 %v4110_v0 }
0x198e   : > { %v2224_v56 = vpop.xlane.xlu1 %2223 }
0x198f   : > { %v2225_v57 = vadd.f32 %v3823_v50, %v2224_v56 }
0x1991   : > { %3826 = vrcp.f32 %v2225_v57 }
0x199b   : > { %v3827_v60 = vpop.eup %3826 }
0x19d5   : > { %v2265_v58 = vpop.f32.mrb[56].mxu1 }
0x19d6   : > { %v2271_v2 = vadd.f32 %v2265_v58, %v2226_v51  ;;  %v3579_v59 = vpop.f32.mrb[57].mxu1 }
0x19d7   : > { %v2268_v4 = vpop.f32.mrb[58].mxu1 }
0x19d8   : > { %v2273_v61 = vmul.f32 %v3827_v60, %v2271_v2  ;;  %v3580_v62 = vpop.f32.mrb[59].mxu1 }
0x19da   : > { %v2274_v52 = vadd.f32 %v2273_v61, %v4748_v16  ;;  %v3216_v16 = vld [vmem:[%s4403_s10 + $0x30] sm:$0xff] }
0x19dc   : > { %v2275_v63 = vsel %vm733_vm1, %v2274_v52, 0.0 }
0x19dd   : > { %2276 = vadd.xlane.f32.xlu0 %v2275_v63 }
0x1a6a   : > { %v2277_v6 = vpop.xlane.xlu0 %2276 }
0x1a6b   : > { %v2278_v8 = vmul.f32 0.03125, %v2277_v6 }
0x1a6d   : > { %v2279_v9 = vsub.f32 %v2274_v52, %v2278_v8 }
0x1a6f   : > { %v2280_v13 = vmul.f32 %v2279_v9, %v2279_v9 }
0x1a71   : > { %v2281_v14 = vsel %vm733_vm1, %v2280_v13, 0.0 }
0x1a72   : > { %2282 = vadd.xlane.f32.xlu1 %v2281_v14 }
0x1aff   : > { %v2283_v5 = vpop.xlane.xlu1 %2282 }
0x1b00   : > { %v2284_v15 = vmul.f32 0.03125, %v2283_v5 }
0x1b02   : > { %v2285_v17 = vadd.f32 1e-05, %v2284_v15 }
0x1b04   : > { %3828 = vrsqrt.f32 %v2285_v17 }
0x1b0e   : > { %v3829_v26 = vpop.eup %3828 }
0x1b0f   : > { %v2287_v19 = vmul.f32 %v3829_v26, %v2279_v9 }
0x1b11   : > { %v2288_v21 = vmul.f32 %v4542_v7, %v2287_v19  ;;  %v4844_v7 = vld [vmem:[%s5072_s8 + $0x8] sm:$0xff]  }
0x1b13   : > { %v2289_v27 = vadd.f32 %v4547_v20, %v2288_v21  ;;  %v4850_v20 = vld [vmem:[%s5137_s2 + $0x8] sm:$0xff]   ;;  %s3983_s2 = sshll.u32 %s4114_s1, 4  ;;  %s3984_s2 = int_to_ptr.vmem [resolvable:$false] %s3983_s2 }
0x1b14   : > { %s3985_s3 = scalar_lea.vmem %s3984_s2, 256  ;;  %p3986_p9 = scmp.lt.s32.totalorder %s2929_s26, %s3984_s2 }
0x1b15   : > { %v4822_v10 = vadd.f32 %v3216_v16, %v2289_v27  ;;  %p3987_p5 = scmp.lt.s32.totalorder %s3985_s3, %s3979_s29 }
0x1b17   : > { %v2293_v22 = vpack.c.bf16 %v4822_v10, %v4822_v10  ;;  %p3988_p3 = por %p3987_p5, %p3986_p9 }
0x1b19   : > { %3586 = vmatmul.mubr.msk.bf16.vlgmr.msra.gmra.mrb[60].mxu0 %vm733_vm1, %v2293_v22  ;;  %3594 = vmatmul.mubr.msk.bf16.vlgmr.msra.gmra.mrb[60].mxu1 %vm733_vm1, %v2293_v22 }
0x1b1a   : > { %3598 = vmatpush3.bf16.msra.mxu0 %v4831_v23  ;;  %3601 = vmatprep.mubr.msk.bf16.mxu0 %vm4111_vm0, %v4110_v0 }
0x1b1b   : > { %3599 = vmatprep.subr.bf16.mxu0 %v4110_v0  ;;  %3606 = vmatpush3.bf16.msra.mxu1 %v4761_v18 }
0x1b1c   : > { %3607 = vmatprep.subr.bf16.mxu1 %v4110_v0  ;;  %3609 = vmatprep.mubr.msk.bf16.mxu1 %vm4111_vm0, %v4110_v0 }
0x1b1e   : > { %3600 = vmatpush3.bf16.msra.mxu0 %v4844_v7 }
0x1b1f   : > { %3608 = vmatpush3.bf16.msra.mxu1 %v4850_v20  ;;  %3613 = vmatprep.subr.bf16.mxu0 %v4110_v0 }
0x1b20   : > { %3619 = vmatprep.subr.bf16.mxu1 %v4110_v0 }
0x1b21   : > { %3602 = vmatmul.mubr.msk.bf16.vlgmr.msra.gmra.mrb[64].mxu0 %vm733_vm1, %v2293_v22 }
0x1b22   : > { %3614 = vmatpush3.bf16.msra.mxu0 %v4518_v34  ;;  %3615 = vmatprep.mubr.msk.bf16.mxu0 %vm4111_vm0, %v4110_v0 }
0x1b23   : > { %3627 = vmatprep.subr.bf16.mxu0 %v4110_v0 }
0x1bec   : > { %v2331_v25 = vpop.f32.mrb[60].mxu0  ;;  %v2371_v28 = vpop.f32.mrb[60].mxu1 }
0x1bed   : > { %v2332_v30 = vadd.f32 %v4860_v29, %v2331_v25  ;;  %v2372_v32 = vadd.f32 %v4863_v31, %v2371_v28  ;;  %v3587_v11 = vpop.f32.mrb[61].mxu0  ;;  %v3595_v12 = vpop.f32.mrb[61].mxu1 }
0x1bee   : > { %v2334_v35 = vpop.f32.mrb[62].mxu0  ;;  %v2374_v1 = vpop.f32.mrb[62].mxu1  ;;  %v4902_v11 = vld [vmem:[%s5139_s27] ss:$0 sm:$0xff] }
0x1bef   : > { %v2421_v37 = vpack.c.bf16 %v2332_v30, %v2332_v30  ;;  %v3588_v24 = vpop.f32.mrb[63].mxu0  ;;  %v3596_v38 = vpop.f32.mrb[63].mxu1  ;;  %v2417_v40 = vmul.f32 %v2372_v32, %v2332_v30  ;;  %v3222_v32 = vld [vmem:[%s4403_s10 + $0x38] sm:$0xff]  ;;  %s5142_s10 = sld [smem:[#allocation22_spill]] }
0x1bf1   : > { %3610 = vmatmul.mubr.msk.bf16.vlgmr.msra.gmra.mrb[64].mxu1 %vm733_vm1, %v2421_v37  ;;  %v2418_v41 = vsel %vm733_vm1, %v2417_v40, 0.0 }
0x1bf2   : > { %2419 = vadd.xlane.f32.xlu0 %v2418_v41  ;;  %3620 = vmatpush3.bf16.msra.mxu1 %v4783_v33 }
0x1bf3   : > { %3621 = vmatprep.subr.bf16.mxu1 %v4110_v0  ;;  %3623 = vmatprep.mubr.msk.bf16.mxu1 %vm4111_vm0, %v4110_v0 }
0x1bf4   : > { %v2411_v42 = vpop.f32.mrb[64].mxu0 }
0x1bf5   : > { %v3603_v43 = vpop.f32.mrb[65].mxu0  ;;  %p5144_p11 = scmp.ne.s32.totalorder %s5142_s10, 0 }
0x1bf6   : > { %v2414_v3 = vpop.f32.mrb[66].mxu0  ;;  %3622 = vmatpush3.bf16.msra.mxu1 %v4792_v36  ;;  %v4878_v36 = vld [vmem:[%s5073_s9] ss:$0 sm:$0xff] }
0x1bf7   : > { %v3604_v44 = vpop.f32.mrb[67].mxu0  ;;  %3635 = vmatprep.subr.bf16.mxu1 %v4110_v0  ;;  %v2412_v58 = vadd.f32 %v4878_v36, %v2411_v42  ;;  %p3981_p0 = pnand %p3980_p4, %p5144_p11 }
0x1bf9   : > { %p3982_p1 = pneg %p3981_p0 }
0x1bfb   : > { %p3989_p10 = pnand %p3988_p3, %p3982_p1 }
0x1c7f   : > { %v2420_v50 = vpop.xlane.xlu0 %2419 }
0x1cc4   : > { %v2459_v45 = vpop.f32.mrb[64].mxu1 }
0x1cc5   : > { %v3611_v47 = vpop.f32.mrb[65].mxu1  ;;  %v2465_v48 = vsel %vm941_vm2, %v2459_v45, -inf }
0x1cc6   : > { %2466 = vmax.xlane.f32.xlu1 %v2465_v48  ;;  %v2462_v49 = vpop.f32.mrb[66].mxu1 }
0x1cc7   : > { %v3612_v33 = vpop.f32.mrb[67].mxu1 }
0x1d53   : > { %v2467_v39 = vpop.xlane.xlu1 %2466 }
0x1d54   : > { %v2468_v51 = vmax.f32 %v2420_v50, %v2467_v39 }
0x1d56   : > { %v2469_v53 = vsub.f32 %v2420_v50, %v2468_v51  ;;  %v2472_v54 = vsub.f32 %v2459_v45, %v2468_v51 }
0x1d58   : > { %v2470_v56 = vmul.f32 1.442695, %v2469_v53  ;;  %v2473_v57 = vmul.f32 1.442695, %v2472_v54 }
0x1d5a   : > { %3830 = vpow2.f32 %v2470_v56 }
0x1d5b   : > { %3832 = vpow2.f32 %v2473_v57 }
0x1d64   : > { %v3831_v2 = vpop.eup %3830 }
0x1d65   : > { %v3833_v59 = vpop.eup %3832  ;;  %v2479_v60 = vmul.f32 %v3831_v2, %v2412_v58 }
0x1d66   : > { %v2475_v4 = vsel %vm941_vm2, %v3833_v59, 0.0  ;;  %v2480_v61 = vpack.c.bf16 %v3833_v59, %v3833_v59 }
0x1d67   : > { %2476 = vadd.xlane.f32.xlu0 %v2475_v4 }
0x1d68   : > { %3616 = vmatmul.mubr.msk.bf16.vlgmr.msra.gmra.mrb[68].mxu0 %vm941_vm2, %v2480_v61 }
0x1d69   : > { %3628 = vmatpush3.bf16.msra.mxu0 %v4803_v55  ;;  %3631 = vmatprep.mubr.msk.bf16.mxu0 %vm4111_vm0, %v4110_v0 }
0x1d6a   : > { %3629 = vmatprep.subr.bf16.mxu0 %v4110_v0 }
0x1d6d   : > { %3630 = vmatpush3.bf16.msra.mxu0 %v4812_v46 }
0x1d6e   : > { %3643 = vmatprep.subr.bf16.mxu0 %v4110_v0 }
0x1df4   : > { %v2477_v62 = vpop.xlane.xlu0 %2476 }
0x1df5   : > { %v2478_v52 = vadd.f32 %v3831_v2, %v2477_v62 }
0x1df7   : > { %3834 = vrcp.f32 %v2478_v52 }
0x1e01   : > { %v3835_v9 = vpop.eup %3834 }
0x1e3b   : > { %v2518_v63 = vpop.f32.mrb[68].mxu0 }
0x1e3c   : > { %v2524_v6 = vadd.f32 %v2518_v63, %v2479_v60  ;;  %v3617_v8 = vpop.f32.mrb[69].mxu0 }
0x1e3d   : > { %v2521_v13 = vpop.f32.mrb[70].mxu0 }
0x1e3e   : > { %v2526_v14 = vmul.f32 %v3835_v9, %v2524_v6  ;;  %v3618_v5 = vpop.f32.mrb[71].mxu0 }
0x1e40   : > { %v2527_v55 = vadd.f32 %v2526_v14, %v4822_v10  ;;  %v4895_v10 = vld [vmem:[%s5138_s18] ss:$0 sm:$0xff] }
0x1e42   : > { %v2528_v15 = vsel %vm733_vm1, %v2527_v55, 0.0 }
0x1e43   : > { %2529 = vadd.xlane.f32.xlu1 %v2528_v15 }
0x1ed0   : > { %v2530_v17 = vpop.xlane.xlu1 %2529 }
0x1ed1   : > { %v2531_v46 = vmul.f32 0.03125, %v2530_v17 }
0x1ed3   : > { %v2532_v26 = vsub.f32 %v2527_v55, %v2531_v46 }
0x1ed5   : > { %v2533_v19 = vmul.f32 %v2532_v26, %v2532_v26 }
0x1ed7   : > { %v2534_v21 = vsel %vm733_vm1, %v2533_v19, 0.0 }
0x1ed8   : > { %2535 = vadd.xlane.f32.xlu0 %v2534_v21 }
0x1f65   : > { %v2536_v16 = vpop.xlane.xlu0 %2535 }
0x1f66   : > { %v2537_v27 = vmul.f32 0.03125, %v2536_v16  ;;  %v3780_v16 = vld [vmem:[%s5140_s11] sm:$0xff]  }
0x1f68   : > { %v2538_v22 = vadd.f32 1e-05, %v2537_v27  ;;  %v3781_v27 = vld [vmem:[%s5140_s11 + $0x8] sm:$0xff]  }
0x1f6a   : > { %3836 = vrsqrt.f32 %v2538_v22 }
0x1f74   : > { %v3837_v25 = vpop.eup %3836 }
0x1f75   : > { %v2540_v28 = vmul.f32 %v3837_v25, %v2532_v26 }
0x1f77   : > { %v2541_v30 = vmul.f32 %v4895_v10, %v2540_v28 }
0x1f79   : > { %v2542_v12 = vadd.f32 %v4902_v11, %v2541_v30 }
0x1f7b   : > { %v4905_v35 = vadd.f32 %v3222_v32, %v2542_v12 }
0x1f7d   : > { %v2546_v1 = vpack.c.bf16 %v4905_v35, %v4905_v35 }
0x1f7f   : > { %3624 = vmatmul.mubr.msk.bf16.vlgmr.msra.gmra.mrb[68].mxu1 %vm733_vm1, %v2546_v1  ;;  %3632 = vmatmul.mubr.msk.bf16.vlgmr.msra.gmra.mrb[72].mxu0 %vm733_vm1, %v2546_v1 }
0x1f80   : > { %3636 = vmatpush3.bf16.msra.mxu1 %v4831_v23  ;;  %3639 = vmatprep.mubr.msk.bf16.mxu1 %vm4111_vm0, %v4110_v0 }
0x1f81   : > { %3637 = vmatprep.subr.bf16.mxu1 %v4110_v0  ;;  %3644 = vmatpush3.bf16.msra.mxu0 %v4761_v18 }
0x1f82   : > { %3645 = vmatprep.subr.bf16.mxu0 %v4110_v0  ;;  %3647 = vmatprep.mubr.msk.bf16.mxu0 %vm4111_vm0, %v4110_v0 }
0x1f84   : > { %3638 = vmatpush3.bf16.msra.mxu1 %v4844_v7 }
0x1f85   : > { %3646 = vmatpush3.bf16.msra.mxu0 %v4850_v20  ;;  %3651 = vmatprep.subr.bf16.mxu1 %v4110_v0 }
0x1f86   : > { %3657 = vmatprep.subr.bf16.mxu0 %v4110_v0 }
0x1f87   : > { %3640 = vmatmul.mubr.msk.bf16.vlgmr.msra.gmra.mrb[72].mxu1 %vm733_vm1, %v2546_v1 }
0x1f88   : > { %3652 = vmatpush3.bf16.msra.mxu1 %v4518_v34  ;;  %3653 = vmatprep.mubr.msk.bf16.mxu1 %vm4111_vm0, %v4110_v0 }
0x2052   : > { %v2584_v18 = vpop.f32.mrb[68].mxu1  ;;  %v2624_v23 = vpop.f32.mrb[72].mxu0 }
0x2053   : > { %v2585_v37 = vadd.f32 %v4860_v29, %v2584_v18  ;;  %v2625_v24 = vadd.f32 %v4863_v31, %v2624_v23  ;;  %v3625_v7 = vpop.f32.mrb[69].mxu1  ;;  %v3633_v38 = vpop.f32.mrb[73].mxu0  ;;  %v4112_v23 = vmov -inf  }
0x2054   : > { %v2587_v20 = vpop.f32.mrb[70].mxu1  ;;  %v2627_v40 = vpop.f32.mrb[74].mxu0  ;;  %2798 = vst.msk [vmem:[#allocation2] sm:$0xff] %vm2797_vm4, %v4112_v23 }
0x2055   : > { %v2674_v41 = vpack.c.bf16 %v2585_v37, %v2585_v37  ;;  %v3626_v42 = vpop.f32.mrb[71].mxu1  ;;  %v3634_v43 = vpop.f32.mrb[75].mxu0  ;;  %v2670_v3 = vmul.f32 %v2625_v24, %v2585_v37  ;;  %v4113_v40 = vmov 0  }
0x2056   : > { %3770 = vset.pattern.permute.xlu1 %v4113_v40  ;;  %3771 = vset.pattern.permute.xlu0 %v4113_v40 }
0x2057   : > { %3648 = vmatmul.mubr.msk.bf16.vlgmr.msra.gmra.mrb[76].mxu0 %vm733_vm1, %v2674_v41  ;;  %v2671_v34 = vsel %vm733_vm1, %v2670_v3, 0.0 }
0x2058   : > { %2672 = vadd.xlane.f32.xlu1 %v2671_v34  ;;  %3661 = vmatprep.mubr.msk.bf16.mxu0 %vm4111_vm0, %v4110_v0 }
0x2059   : > { %3658 = vmatpush3.bf16.msra.mxu0 %v3780_v16 }
0x205a   : > { %v2664_v44 = vpop.f32.mrb[72].mxu1  ;;  %3659 = vmatprep.subr.bf16.mxu0 %v4110_v0 }
0x205b   : > { %v3641_v29 = vpop.f32.mrb[73].mxu1  ;;  %v2665_v2 = vadd.f32 %v4878_v36, %v2664_v44  ;;  %v4967_v0 = vld [vmem:[#allocation2] sm:$0xff] }
0x205c   : > { %v2667_v45 = vpop.f32.mrb[74].mxu1 }
0x205d   : > { %v3642_v31 = vpop.f32.mrb[75].mxu1  ;;  %3660 = vmatpush3.bf16.msra.mxu0 %v3781_v27 }
0x20e5   : > { %v2673_v39 = vpop.xlane.xlu1 %2672 }
0x212a   : > { %v2712_v47 = vpop.f32.mrb[76].mxu0 }
0x212b   : > { %v3649_v48 = vpop.f32.mrb[77].mxu0  ;;  %v2718_v49 = vsel %vm941_vm2, %v2712_v47, -inf }
0x212c   : > { %2719 = vmax.xlane.f32.xlu0 %v2718_v49  ;;  %v2715_v33 = vpop.f32.mrb[78].mxu0 }
0x212d   : > { %v3650_v50 = vpop.f32.mrb[79].mxu0 }
0x21b9   : > { %v2720_v51 = vpop.xlane.xlu0 %2719 }
0x21ba   : > { %v2721_v53 = vmax.f32 %v2673_v39, %v2720_v51 }
0x21bc   : > { %v2722_v54 = vsub.f32 %v2673_v39, %v2721_v53  ;;  %v2725_v56 = vsub.f32 %v2712_v47, %v2721_v53 }
0x21be   : > { %v2723_v57 = vmul.f32 1.442695, %v2722_v54  ;;  %v2726_v58 = vmul.f32 1.442695, %v2725_v56 }
0x21c0   : > { %3838 = vpow2.f32 %v2723_v57 }
0x21c1   : > { %3840 = vpow2.f32 %v2726_v58 }
0x21ca   : > { %v3839_v59 = vpop.eup %3838 }
0x21cb   : > { %v3841_v60 = vpop.eup %3840  ;;  %v2732_v4 = vmul.f32 %v3839_v59, %v2665_v2 }
0x21cc   : > { %v2728_v61 = vsel %vm941_vm2, %v3841_v60, 0.0  ;;  %v2733_v62 = vpack.c.bf16 %v3841_v60, %v3841_v60 }
0x21cd   : > { %2729 = vadd.xlane.f32.xlu1 %v2728_v61 }
0x21ce   : > { %3654 = vmatmul.mubr.msk.bf16.vlgmr.msra.gmra.mrb[76].mxu1 %vm941_vm2, %v2733_v62 }
0x225a   : > { %v2730_v52 = vpop.xlane.xlu1 %2729 }
0x225b   : > { %v2731_v63 = vadd.f32 %v3839_v59, %v2730_v52 }
0x225d   : > { %3842 = vrcp.f32 %v2731_v63 }
0x2267   : > { %v3843_v13 = vpop.eup %3842 }
0x22a1   : > { %v2771_v6 = vpop.f32.mrb[76].mxu1 }
0x22a2   : > { %v2777_v8 = vadd.f32 %v2771_v6, %v2732_v4  ;;  %v3655_v9 = vpop.f32.mrb[77].mxu1 }
0x22a3   : > { %v2774_v14 = vpop.f32.mrb[78].mxu1 }
0x22a4   : > { %v2779_v5 = vmul.f32 %v3843_v13, %v2777_v8  ;;  %v3656_v55 = vpop.f32.mrb[79].mxu1 }
0x22a6   : > { %v2780_v36 = vadd.f32 %v2779_v5, %v4905_v35 }
0x22a8   : > { %v2781_v15 = vsel %vm733_vm1, %v2780_v36, 0.0 }
0x22a9   : > { %2782 = vadd.xlane.f32.xlu0 %v2781_v15 }
0x2336   : > { %v2783_v17 = vpop.xlane.xlu0 %2782 }
0x2337   : > { %v2784_v46 = vmul.f32 0.03125, %v2783_v17 }
0x2339   : > { %v2785_v26 = vsub.f32 %v2780_v36, %v2784_v46 }
0x233b   : > { %v2786_v19 = vmul.f32 %v2785_v26, %v2785_v26 }
0x233d   : > { %v2787_v21 = vsel %vm733_vm1, %v2786_v19, 0.0 }
0x233e   : > { %2788 = vadd.xlane.f32.xlu1 %v2787_v21 }
0x23cb   : > { %v2789_v22 = vpop.xlane.xlu1 %2788 }
0x23cc   : > { %v2790_v25 = vmul.f32 0.03125, %v2789_v22 }
0x23ce   : > { %v2791_v28 = vadd.f32 1e-05, %v2790_v25 }
0x23d0   : > { %3844 = vrsqrt.f32 %v2791_v28 }
0x23da   : > { %v3845_v30 = vpop.eup %3844 }
0x23db   : > { %v2793_v32 = vmul.f32 %v3845_v30, %v2785_v26 }
0x23dd   : > { %v2794_v12 = vmul.f32 %v4895_v10, %v2793_v32  ;;  %v3228_v10 = vld [vmem:[%s5141_s15] ss:$0 sm:$0xff]  ;;  %s2906_s15 = scalar_lea.sflag [#allocation6], %s4399_s21 }
0x23df   : > { %v2795_v35 = vadd.f32 %v4902_v11, %v2794_v12 }
0x23e1   : > { %2796 = vst.msk [vmem:[%s4950_s30] sm:$0xff] %vm733_vm1, %v2795_v35 }
0x23e8   : > { %v2800_v1 = vld [vmem:[%s4950_s30] sm:$0xff] }
0x23e9   : > { %v2801_v18 = vpack.c.bf16 %v2800_v1, %v2800_v1 }
0x23eb   : > { %3662 = vmatmul.mubr.msk.bf16.vlgmr.msra.gmra.mrb[80].mxu0 %vm733_vm1, %v2801_v18 }
0x24be   : > { %v2863_v11 = vpop.f32.mrb[80].mxu0 }
0x24bf   : > { %v2864_v37 = vadd.f32 %v3228_v10, %v2863_v11  ;;  %v3663_v24 = vpop.f32.mrb[81].mxu0 }
0x24c0   : > { %v2866_v7 = vpop.f32.mrb[82].mxu0 }
0x24c1   : > { %v3664_v38 = vpop.f32.mrb[83].mxu0  ;;  %v2871_v20 = vsel %vm2869_vm5, %v2864_v37, -inf  ;;  %2870 = vst.msk [vmem:[%s4963_s16] sm:$0xff] %vm2869_vm5, %v2864_v37 }
0x24c2   : > { %2872 = vmax.xlane.f32.xlu0 %v2871_v20 }
0x254f   : > { %v2873_v41 = vpop.xlane.xlu0 %2872 }
0x2550   : > { %v4970_v42 = vmax.f32 %v4967_v0, %v2873_v41 }
0x2552   : > { %v2877_v43 = vsub.f32 %v4967_v0, %v4970_v42  ;;  %2895 = vst.msk [vmem:[#allocation2] sm:$0xff] %vm2797_vm4, %v4970_v42  ;;  %2883 = vperm.xlu1 %3770, %v4970_v42  }
0x25d1   : > { %v2884_v3 = vpop.permute.xlu1 %2883 }
0x25d2   : > { %v2886_v34 = vsub.f32 %v2864_v37, %v2884_v3 }
0x25d4   : > { %v2887_v44 = vmul.f32 1.442695, %v2886_v34 }
0x25d6   : > { %3846 = vpow2.f32 %v2887_v44 }
0x25e0   : > { %v3847_v29 = vpop.eup %3846 }
0x25e1   : > { %v2889_v45 = vsel %vm2869_vm5, %v3847_v29, 0.0 }
0x25e2   : > { %2890 = vadd.xlane.f32.xlu0 %v2889_v45 }
0x25e3   : > { %3992 = shalt.err (!%p3989_p10)
}
0x25e4   : > { %s3993_s30 = scalar_lea.hbm %s4985_s14, 128  ;;  %s3997_s1 = scalar_lea.hbm %s5143_s19, 256 }
0x25e5   : > { %p3994_p13 = scmp.ne.s32.totalorder %s4985_s14, %s3993_s30  ;;  %p3998_p12 = scmp.lt.u32.totalorder %s4985_s14, %s5143_s19 }
0x25e6   : > { %p3999_p6 = scmp.lt.u32.totalorder %s3997_s1, %s3993_s30  ;;  %p4001_p4 = scmp.lt.u32.totalorder %s3993_s30, %s4985_s14 }
0x25e7   : > { %p3995_p2 = pnand %p3994_p13, %p5144_p11 }
0x25e8   : > { %p4000_p7 = por %p3999_p6, %p3998_p12 }
0x25e9   : > { %p3996_p8 = pneg %p3995_p2 }
0x25ea   : > { %p4002_p0 = por %p4001_p4, %p4000_p7 }
0x25ec   : > { %p4003_p1 = pnand %p4002_p0, %p3996_p8 }
0x25ee   : > { %4006 = shalt.err (!%p4003_p1)
}
0x25ef   : > { %3679 = dma.vmem_to_hbm [thread:$0]  (%p5144_p11), %s2929_s26, 128, %s4985_s14, %s2906_s15  }
0x25f0   : > { %s5145_s3 = sshll.u32 %s4093_s24, 7  ;;  %s5146_s20 = sld [smem:[#allocation36_spill]] }
0x25f1   : > { %s2942_s1 = sshll.u32 %s4963_s16, 4  ;;  %s2911_s30 = scalar_lea.sflag [#allocation14], %s4399_s21  ;;  %s2943_s1 = int_to_ptr.vmem [resolvable:$true] %s2942_s1 }
0x25f2   : > { %s4007_s2 = scalar_lea.vmem %s2943_s1, 128  ;;  %s4115_s4 = smov [#allocation13]  }
0x25f3   : > { %p4008_p9 = scmp.ne.s32.totalorder %s2943_s1, %s4007_s2  ;;  %s4011_s5 = sshll.u32 %s4115_s4, 4  ;;  %s4012_s5 = int_to_ptr.vmem [resolvable:$false] %s4011_s5 }
0x25f4   : > { %s4013_s6 = scalar_lea.vmem %s4012_s5, 256  ;;  %p4014_p10 = scmp.lt.s32.totalorder %s2943_s1, %s4012_s5 }
0x25f5   : > { %p4009_p5 = pnand %p4008_p9, %p5144_p11  ;;  %p4015_p13 = scmp.lt.s32.totalorder %s4013_s6, %s4007_s2 }
0x25f6   : > { %s5010_s17 = scalar_lea.hbm %s5146_s20, %s5145_s3 }
0x25f7   : > { %p4010_p3 = pneg %p4009_p5  ;;  %p4016_p2 = por %p4015_p13, %p4014_p10 }
0x25f9   : > { %p4017_p8 = pnand %p4016_p2, %p4010_p3 }
0x25fb   : > { %4020 = shalt.err (!%p4017_p8)
}
0x25fc   : > { %s4021_s24 = scalar_lea.hbm %s5010_s17, 128  ;;  %s4025_s4 = scalar_lea.hbm %s5146_s20, 256 }
0x25fd   : > { %p4022_p12 = scmp.ne.s32.totalorder %s5010_s17, %s4021_s24  ;;  %p4026_p4 = scmp.lt.u32.totalorder %s5010_s17, %s5146_s20 }
0x25fe   : > { %p4027_p0 = scmp.lt.u32.totalorder %s4025_s4, %s4021_s24  ;;  %p4029_p9 = scmp.lt.u32.totalorder %s4021_s24, %s5010_s17 }
0x25ff   : > { %p4023_p6 = pnand %p4022_p12, %p5144_p11 }
0x2600   : > { %p4028_p1 = por %p4027_p0, %p4026_p4 }
0x2601   : > { %p4024_p7 = pneg %p4023_p6 }
0x2602   : > { %p4030_p5 = por %p4029_p9, %p4028_p1 }
0x2604   : > { %p4031_p3 = pnand %p4030_p5, %p4024_p7 }
0x2606   : > { %4034 = shalt.err (!%p4031_p3)
}
0x2607   : > { %3680 = dma.vmem_to_hbm [thread:$0]  (%p5144_p11), %s2943_s1, 128, %s5010_s17, %s2911_s30   ;;  %v2878_v31 = vmul.f32 1.442695, %v2877_v43  ;;  %v2876_v48 = vld [vmem:[#allocation3] sm:$0xff]  ;;  %v2899_v54 = vld [vmem:[#allocation2] sm:$0xff] }
0x2608   : > { %s5147_s6 = sshll.u32 %s4425_s0, 3  ;;  %s5148_s15 = sld [smem:[#allocation37_spill]] }
0x2609   : > { %3848 = vpow2.f32 %v2878_v31 }
0x260e   : > { %s659_s3 = scalar_lea.vmem %s5148_s15, %s5147_s6 }
0x2613   : > { %v3849_v47 = vpop.eup %3848 }
0x2614   : > { %v2880_v49 = vmul.f32 %v3849_v47, %v2876_v48 }
0x266f   : > { %v2891_v33 = vpop.xlane.xlu0 %2890 }
0x2670   : > { %v2892_v50 = vadd.f32 %v2891_v33, %v2880_v49 }
0x2672   : > { %2894 = vst.msk [vmem:[#allocation3] sm:$0xff] %vm2797_vm4, %v2892_v50 }
0x2679   : > { %v2900_v39 = vld [vmem:[#allocation3] sm:$0xff] }
0x267a   : > { %3850 = vlog2.f32 %v2900_v39 }
0x2684   : > { %v3851_v51 = vpop.eup %3850 }
0x2685   : > { %v2902_v53 = vmul.f32 0.6931472, %v3851_v51 }
0x2687   : > { %v2903_v56 = vadd.f32 %v2902_v53, %v2899_v54 }
0x2689   : > { %2904 = vst.msk [vmem:[%s659_s3] sm:$0xff] %vm2797_vm4, %v2903_v56 }
0x268a PF: > { %s5149_s29 = sld [smem:[#allocation20_spill]]  ;;  %s5150_s28 = sld [smem:[#allocation23_spill]] }
0x268b   : > { %s5151_s17 = sld [smem:[#allocation21_spill]] }
0x2690   : > { %s2957_s1 = sand.u32 1, %s5149_s29   ;;  %p5152_p11 = scmp.ne.s32.totalorder %s5150_s28, 0 }
0x2691   : > { %p5153_p10 = scmp.ge.s32.totalorder %s5151_s17, 2  ;;  %s2958_s30 = scalar_lea.sflag [#allocation6], %s2957_s1 }
0x2693   : > { %p3698_p13 = pnand %p5153_p10, %p5152_p11 }
0x2695   : > { %4072 = dma.done.wait (!%p3698_p13), %s2958_s30, 128  }
0x2696   : > { %4074 = vsyncadd (!%p3698_p13), %s2958_s30, 4294967168  ;;  %s2967_s0 = scalar_lea.sflag [#allocation14], %s2957_s1 }
0x2697   : > { %4076 = dma.done.wait (!%p3698_p13), %s2967_s0, 128  }
0x2698   : > { %4078 = vsyncadd (!%p3698_p13), %s2967_s0, 4294967168  ;;  %s38_s26 = sadd.s32 1, %s5151_s17   ;;  %s5154_s21 = smov %s4085_s22 }
0x2699   : > { %p35_p2 = scmp.ge.s32.totalorder %s38_s26, 4   ;;  %s5155_s22 = smov %s4089_s23 }
0x269a   : > { %s5156_s23 = smov %s4366_s12  ;;  %s5157_s24 = smov %s4097_s25 }
0x269b   : > { %s5158_s25 = smov %s5160_s13  ;;  %37 = sbr.rel (!%p35_p2) target bundleno = 25 (0x19), region = 186 }
0x26a2   :  { %2979 = vsyncpa [#allocation5], 1 }
0x26a3   :  { %2981 = vsyncpa [#allocation5 + $0x1], 1 }
0x26a4   :  { %2982 = vsyncpa [#allocation8], 1 }
0x26a5   :  { %2983 = vsyncpa [#allocation11], 1 }
0x26a6   :  { %2984 = vsyncpa [#allocation6], 1 }
0x26a7   :  { %2986 = vsyncpa [#allocation6 + $0x1], 1 }
0x26a8   :  { %2987 = vsyncpa [#allocation14], 1 }
0x26a9   :  { %2989 = vsyncpa [#allocation14 + $0x1], 1 }

</bundles_post_ra>
